<compile_context>
chip_gen: v7x
topology: tpu7x:2x2x1
jax: 0.10.0
libtpu: 0.0.40
codegen_flags: <defaults>
</compile_context>

<pallas_src>
import functools

import jax
import jax.numpy as jnp
from jax.experimental import pallas as pl
from jax.experimental.pallas import tpu as pltpu


def _round_up(v, m):
    return (v + m - 1) // m * m


def _flexible_nerf_kernel(*refs, num_xyz_layers, compute_dtype):
    # ref order: x, w1, wx_0..wx_{L-2}, wf, w_dir, w_out, bias_pack, out
    x_ref = refs[0]
    w1_ref = refs[1]
    wx_refs = refs[2:2 + num_xyz_layers]
    wf_ref, wdir_ref, wout_ref, bias_ref, o_ref = refs[2 + num_xyz_layers:]

    acc_t = jnp.float32
    cdt = compute_dtype
    hidden = w1_ref.shape[1]
    half = wdir_ref.shape[1]
    out_w = wout_ref.shape[1]

    def bias(row, width):                      # [1, width] f32 row of the bias pack
        return bias_ref[row:row + 1, :width]

    # x streamed as f32; cast to the MXU compute dtype in-kernel (VPU work,
    # hidden under the matmuls).
    x = x_ref[...].astype(cdt)

    # layer1 over the xyz slice (slice folded into zero-padded w1). No ReLU.
    h = (jnp.dot(x, w1_ref[...], preferred_element_type=acc_t)
         + bias(0, hidden)).astype(cdt)

    # xyz trunk (skip connection never taken with the reference defaults).
    for li in range(num_xyz_layers):
        h = jnp.maximum(
            jnp.dot(h, wx_refs[li][...], preferred_element_type=acc_t)
            + bias(1 + li, hidden), 0.0).astype(cdt)

    feat = jnp.maximum(
        jnp.dot(h, wf_ref[...], preferred_element_type=acc_t)
        + bias(1 + num_xyz_layers, hidden), 0.0).astype(cdt)

    # layers_dir[0](cat(feat, view)) as ONE matmul: feat is `hidden` (=128)
    # lanes, so x starts on a lane-tile boundary (cheap concat, no relayout);
    # W_dir = [wd[:hidden] ; zeros(dim_xyz rows) ; wd[hidden:]].
    dir_in = jnp.concatenate([feat, x], axis=-1)
    dir_h = jnp.maximum(
        jnp.dot(dir_in, wdir_ref[...], preferred_element_type=acc_t)
        + bias(2 + num_xyz_layers, half), 0.0).astype(cdt)

    # fused output head as ONE matmul over cat(h, dir_h):
    # cols 0..2 = fc_rgb(dir_h), col 3 = fc_alpha(h).
    out_in = jnp.concatenate([h, dir_h], axis=-1)
    out = (jnp.dot(out_in, wout_ref[...], preferred_element_type=acc_t)
           + bias(3 + num_xyz_layers, out_w))
    o_ref[...] = out.astype(o_ref.dtype)


@functools.partial(jax.jit, static_argnames=("block_rows", "compute_dtype"))
def flexible_nerf_forward(x, params, *, block_rows=2048, compute_dtype=jnp.bfloat16):
    """FlexibleNeRFModel forward. x: [N, dim_xyz + dim_dir] float32 -> [N, 4] float32."""
    n, d_in = x.shape

    w1, b1 = params["layer1"]
    xyz_layers = params["layers_xyz"]
    wf, bf = params["fc_feat"]
    wd, bd = params["layers_dir"][0]
    wa, ba = params["fc_alpha"]
    wr, br = params["fc_rgb"]

    dim_xyz, hidden = w1.shape
    half = wd.shape[1]
    dim_dir = wd.shape[0] - hidden
    assert d_in == dim_xyz + dim_dir, (d_in, dim_xyz, dim_dir)

    cdt = jnp.dtype(compute_dtype)
    f32 = jnp.float32
    num_xyz = len(xyz_layers)

    # ---- fold all slicing / concatenation into (tiny) host-side weight prep ----
    # layer1 consumes x[:, :dim_xyz]: zero-pad its K dim so the kernel uses
    # full-width x (no in-kernel lane slicing of x).
    w1p = jnp.zeros((d_in, hidden), cdt).at[:dim_xyz, :].set(w1.astype(cdt))
    # layers_dir[0] consumes cat(feat, view): one [hidden + d_in, half] weight
    # with zero rows over the xyz part of x.
    wdirp = jnp.zeros((hidden + d_in, half), cdt)
    wdirp = wdirp.at[:hidden, :].set(wd[:hidden, :].astype(cdt))
    wdirp = wdirp.at[hidden + dim_xyz:, :].set(wd[hidden:, :].astype(cdt))
    # fused 4-wide output head over cat(h, dir_h): col 3 <- fc_alpha(h),
    # cols 0..2 <- fc_rgb(dir_h).
    woutp = jnp.zeros((hidden + half, 4), cdt)
    woutp = woutp.at[:hidden, 3:4].set(wa.astype(cdt))
    woutp = woutp.at[hidden:, :3].set(wr.astype(cdt))
    # all biases packed into one f32 [8, 128] array (single constant-index ref).
    nb = num_xyz + 4
    bw = max(hidden, 128)
    bias_pack = jnp.zeros((_round_up(nb, 8), bw), f32)
    bias_pack = bias_pack.at[0, :hidden].set(b1.astype(f32))
    for i, (_, bx) in enumerate(xyz_layers):
        bias_pack = bias_pack.at[1 + i, :hidden].set(bx.astype(f32))
    bias_pack = bias_pack.at[1 + num_xyz, :hidden].set(bf.astype(f32))
    bias_pack = bias_pack.at[2 + num_xyz, :half].set(bd.astype(f32))
    bias_pack = bias_pack.at[3 + num_xyz, :3].set(br.astype(f32))
    bias_pack = bias_pack.at[3 + num_xyz, 3:4].set(ba.astype(f32))

    weight_args = ([w1p] + [w.astype(cdt) for (w, _) in xyz_layers]
                   + [wf.astype(cdt), wdirp, woutp, bias_pack])

    # ---- batch tiling: clipped final block, no host-side padding / cast of x ----
    # Blocks are multiples of 16 rows (bf16 sublane tile); force >= 2 grid steps
    # whenever possible (both v7x TensorCores get work); cap at block_rows
    # (VMEM-friendly on v7x's 64 MiB).
    block = max(16, min(block_rows, _round_up(pl.cdiv(n, 2), 16)))
    grid = (pl.cdiv(n, block),)

    # x is the only streamed input (default double-buffering is plenty: the
    # kernel is MXU-bound); weights/biases stay VMEM-resident via constant maps.
    in_specs = [pl.BlockSpec((block, d_in), lambda i: (i, 0))]
    in_specs += [pl.BlockSpec(a.shape, lambda i: (0, 0)) for a in weight_args]
    out_specs = pl.BlockSpec((block, 4), lambda i: (i, 0))

    rows = grid[0] * block
    flops = 2 * rows * (d_in * hidden + num_xyz * hidden * hidden
                        + hidden * hidden + (hidden + d_in) * half
                        + (hidden + half) * 4)
    bytes_accessed = (n * d_in * 4 + n * 4 * 4
                      + sum(int(a.size) * a.dtype.itemsize for a in weight_args))
    cost = pl.CostEstimate(flops=int(flops), transcendentals=0,
                           bytes_accessed=int(bytes_accessed))

    kernel = functools.partial(_flexible_nerf_kernel,
                               num_xyz_layers=num_xyz, compute_dtype=cdt)
    out = pl.pallas_call(
        kernel,
        out_shape=jax.ShapeDtypeStruct((n, 4), f32),
        grid=grid,
        in_specs=in_specs,
        out_specs=out_specs,
        compiler_params=pltpu.CompilerParams(
            dimension_semantics=("parallel",),
            vmem_limit_bytes=32 * 1024 * 1024),
        cost_estimate=cost,
    )(x, *weight_args)
    return out


def init_params(key, num_layers=4, hidden_size=128, skip_connect_every=4,
                num_encoding_fn_xyz=6, num_encoding_fn_dir=4,
                include_input_xyz=True, include_input_dir=True,
                use_viewdirs=True, dtype=jnp.float32):
    """Mirrors torch.nn.Linear default init (U(-1/sqrt(fan_in), +)). Weights are [in, out]."""
    # TODO(synk): use_viewdirs=False head (single fc_out) not implemented.
    assert use_viewdirs, "use_viewdirs=False head not implemented"
    # Skip-connection configs (num_layers > skip_connect_every + 1) raise an
    # AttributeError in the reference forward itself, so they are not supported.
    assert num_layers <= skip_connect_every + 1

    dim_xyz = (3 if include_input_xyz else 0) + 2 * 3 * num_encoding_fn_xyz
    dim_dir = (3 if include_input_dir else 0) + 2 * 3 * num_encoding_fn_dir

    def linear(k, fan_in, fan_out):
        kw, kb = jax.random.split(k)
        bound = 1.0 / float(fan_in) ** 0.5
        w = jax.random.uniform(kw, (fan_in, fan_out), dtype, -bound, bound)
        b = jax.random.uniform(kb, (fan_out,), dtype, -bound, bound)
        return w, b

    keys = jax.random.split(key, num_layers + 4)
    layer1 = linear(keys[0], dim_xyz, hidden_size)
    layers_xyz = tuple(linear(keys[1 + i], hidden_size, hidden_size)
                       for i in range(num_layers - 1))
    fc_feat = linear(keys[num_layers], hidden_size, hidden_size)
    layers_dir = (linear(keys[num_layers + 1], dim_dir + hidden_size, hidden_size // 2),)
    fc_alpha = linear(keys[num_layers + 2], hidden_size, 1)
    fc_rgb = linear(keys[num_layers + 3], hidden_size // 2, 3)

    params = {
        "layer1": layer1,
        "layers_xyz": layers_xyz,
        "fc_feat": fc_feat,
        "layers_dir": layers_dir,
        "fc_alpha": fc_alpha,
        "fc_rgb": fc_rgb,
    }
    dims = {"dim_xyz": dim_xyz, "dim_dir": dim_dir, "hidden": hidden_size}
    return params, dims


def reference_forward(x, params):
    """Pure-JAX f32 mirror of FlexibleNeRFModel.forward (defaults, use_viewdirs=True)."""
    w1, b1 = params["layer1"]
    dim_xyz = w1.shape[0]
    xyz, view = x[:, :dim_xyz], x[:, dim_xyz:]
    h = xyz @ w1 + b1                      # no ReLU after layer1
    for w, b in params["layers_xyz"]:
        h = jnp.maximum(h @ w + b, 0.0)
    wf, bf = params["fc_feat"]
    wa, ba = params["fc_alpha"]
    wr, br = params["fc_rgb"]
    feat = jnp.maximum(h @ wf + bf, 0.0)
    alpha = h @ wa + ba
    d = jnp.concatenate([feat, view], axis=-1)
    for w, b in params["layers_dir"]:
        d = jnp.maximum(d @ w + b, 0.0)
    rgb = d @ wr + br
    return jnp.concatenate([rgb, alpha], axis=-1)


if __name__ == "__main__":
    key = jax.random.PRNGKey(0)
    kp, kx = jax.random.split(key)

    params, dims = init_params(kp)
    d_in = dims["dim_xyz"] + dims["dim_dir"]   # 39 + 27 = 66

    n = 1000  # deliberately ragged -> exercises the clipped (masked) final block
    x = jax.random.normal(kx, (n, d_in), dtype=jnp.float32)

    ref = reference_forward(x, params)

    # exact path: f32 compute must match the reference tightly (block=512, grid=2)
    out_f32 = flexible_nerf_forward(x, params, compute_dtype=jnp.float32)
    out_f32 = jax.block_until_ready(out_f32)
    assert out_f32.shape == (n, 4) and out_f32.dtype == jnp.float32
    assert jnp.allclose(out_f32, ref, atol=1e-4, rtol=1e-4), \
        float(jnp.max(jnp.abs(out_f32 - ref)))

    # default fast path: bf16 weights/compute with f32 accumulation (approximate)
    out_bf16 = flexible_nerf_forward(x, params)
    out_bf16 = jax.block_until_ready(out_bf16)
    assert out_bf16.shape == (n, 4) and out_bf16.dtype == jnp.float32
    assert jnp.allclose(out_bf16, ref, atol=5e-2, rtol=5e-2), \
        float(jnp.max(jnp.abs(out_bf16 - ref)))

    # small-block path: multi-step grid (8 steps) over the same ragged batch
    out_small = flexible_nerf_forward(x, params, block_rows=128,
                                      compute_dtype=jnp.float32)
    out_small = jax.block_until_ready(out_small)
    assert jnp.allclose(out_small, ref, atol=1e-4, rtol=1e-4), \
        float(jnp.max(jnp.abs(out_small - ref)))

    print("KERNEL_OK")
</pallas_src>

<mosaic_0001>
module attributes {stable_mosaic.version = 11 : i64} {
  func.func @_flexible_nerf_kernel(%arg0: i32, %arg1: memref<512x66xf32, #tpu.memory_space<vmem>>, %arg2: memref<66x128xf32, #tpu.memory_space<vmem>>, %arg3: memref<128x128xf32, #tpu.memory_space<vmem>>, %arg4: memref<128x128xf32, #tpu.memory_space<vmem>>, %arg5: memref<128x128xf32, #tpu.memory_space<vmem>>, %arg6: memref<128x128xf32, #tpu.memory_space<vmem>>, %arg7: memref<194x64xf32, #tpu.memory_space<vmem>>, %arg8: memref<192x4xf32, #tpu.memory_space<vmem>>, %arg9: memref<8x128xf32, #tpu.memory_space<vmem>>, %arg10: memref<512x4xf32, #tpu.memory_space<vmem>>) attributes {dimension_semantics = [#tpu.dimension_semantics<parallel>], iteration_bounds = array<i64: 2>, scalar_prefetch = 0 : i64, scratch_operands = 0 : i64, tpu.core_type = #tpu.core_type<tc>, window_params = [{transform_indices = @transform_0, window_bounds = array<i64: 512, 66>}, {pipeline_mode = #tpu.pipeline_mode<synchronous>, transform_indices = @transform_1, window_bounds = array<i64: 66, 128>}, {pipeline_mode = #tpu.pipeline_mode<synchronous>, transform_indices = @transform_2, window_bounds = array<i64: 128, 128>}, {pipeline_mode = #tpu.pipeline_mode<synchronous>, transform_indices = @transform_3, window_bounds = array<i64: 128, 128>}, {pipeline_mode = #tpu.pipeline_mode<synchronous>, transform_indices = @transform_4, window_bounds = array<i64: 128, 128>}, {pipeline_mode = #tpu.pipeline_mode<synchronous>, transform_indices = @transform_5, window_bounds = array<i64: 128, 128>}, {pipeline_mode = #tpu.pipeline_mode<synchronous>, transform_indices = @transform_6, window_bounds = array<i64: 194, 64>}, {pipeline_mode = #tpu.pipeline_mode<synchronous>, transform_indices = @transform_7, window_bounds = array<i64: 192, 4>}, {pipeline_mode = #tpu.pipeline_mode<synchronous>, transform_indices = @transform_8, window_bounds = array<i64: 8, 128>}, {transform_indices = @transform_9, window_bounds = array<i64: 512, 4>}]} {
    %c0 = arith.constant 0 : index
    %c0_0 = arith.constant 0 : index
    %0 = vector.load %arg1[%c0, %c0_0] : memref<512x66xf32, #tpu.memory_space<vmem>>, vector<512x66xf32>
    %c0_1 = arith.constant 0 : index
    %c0_2 = arith.constant 0 : index
    %1 = vector.load %arg2[%c0_1, %c0_2] : memref<66x128xf32, #tpu.memory_space<vmem>>, vector<66x128xf32>
    %cst = arith.constant dense<0.000000e+00> : vector<512x128xf32>
    %2 = tpu.matmul %0, %1, %cst {dimension_numbers = #tpu.dot_dimension_numbers<[1], [0], [0], [1], [0, 0, 1, 1], [], []>} : vector<512x66xf32>, vector<66x128xf32>, vector<512x128xf32> -> vector<512x128xf32>
    %c0_3 = arith.constant 0 : index
    %c0_4 = arith.constant 0 : index
    %3 = vector.load %arg9[%c0_3, %c0_4] : memref<8x128xf32, #tpu.memory_space<vmem>>, vector<1x128xf32>
    %4 = vector.broadcast %3 : vector<1x128xf32> to vector<512x128xf32>
    %5 = arith.addf %2, %4 : vector<512x128xf32>
    %c0_5 = arith.constant 0 : index
    %c0_6 = arith.constant 0 : index
    %6 = vector.load %arg3[%c0_5, %c0_6] : memref<128x128xf32, #tpu.memory_space<vmem>>, vector<128x128xf32>
    %cst_7 = arith.constant dense<0.000000e+00> : vector<512x128xf32>
    %7 = tpu.matmul %5, %6, %cst_7 {dimension_numbers = #tpu.dot_dimension_numbers<[1], [0], [0], [1], [0, 0, 1, 1], [], []>} : vector<512x128xf32>, vector<128x128xf32>, vector<512x128xf32> -> vector<512x128xf32>
    %c1 = arith.constant 1 : index
    %c0_8 = arith.constant 0 : index
    %8 = vector.load %arg9[%c1, %c0_8] : memref<8x128xf32, #tpu.memory_space<vmem>>, vector<1x128xf32>
    %9 = vector.broadcast %8 : vector<1x128xf32> to vector<512x128xf32>
    %10 = arith.addf %7, %9 : vector<512x128xf32>
    %cst_9 = arith.constant 0.000000e+00 : f32
    %11 = vector.broadcast %cst_9 : f32 to vector<512x128xf32>
    %12 = arith.maximumf %10, %11 : vector<512x128xf32>
    %c0_10 = arith.constant 0 : index
    %c0_11 = arith.constant 0 : index
    %13 = vector.load %arg4[%c0_10, %c0_11] : memref<128x128xf32, #tpu.memory_space<vmem>>, vector<128x128xf32>
    %cst_12 = arith.constant dense<0.000000e+00> : vector<512x128xf32>
    %14 = tpu.matmul %12, %13, %cst_12 {dimension_numbers = #tpu.dot_dimension_numbers<[1], [0], [0], [1], [0, 0, 1, 1], [], []>} : vector<512x128xf32>, vector<128x128xf32>, vector<512x128xf32> -> vector<512x128xf32>
    %c2 = arith.constant 2 : index
    %c0_13 = arith.constant 0 : index
    %15 = vector.load %arg9[%c2, %c0_13] : memref<8x128xf32, #tpu.memory_space<vmem>>, vector<1x128xf32>
    %16 = vector.broadcast %15 : vector<1x128xf32> to vector<512x128xf32>
    %17 = arith.addf %14, %16 : vector<512x128xf32>
    %cst_14 = arith.constant 0.000000e+00 : f32
    %18 = vector.broadcast %cst_14 : f32 to vector<512x128xf32>
    %19 = arith.maximumf %17, %18 : vector<512x128xf32>
    %c0_15 = arith.constant 0 : index
    %c0_16 = arith.constant 0 : index
    %20 = vector.load %arg5[%c0_15, %c0_16] : memref<128x128xf32, #tpu.memory_space<vmem>>, vector<128x128xf32>
    %cst_17 = arith.constant dense<0.000000e+00> : vector<512x128xf32>
    %21 = tpu.matmul %19, %20, %cst_17 {dimension_numbers = #tpu.dot_dimension_numbers<[1], [0], [0], [1], [0, 0, 1, 1], [], []>} : vector<512x128xf32>, vector<128x128xf32>, vector<512x128xf32> -> vector<512x128xf32>
    %c3 = arith.constant 3 : index
    %c0_18 = arith.constant 0 : index
    %22 = vector.load %arg9[%c3, %c0_18] : memref<8x128xf32, #tpu.memory_space<vmem>>, vector<1x128xf32>
    %23 = vector.broadcast %22 : vector<1x128xf32> to vector<512x128xf32>
    %24 = arith.addf %21, %23 : vector<512x128xf32>
    %cst_19 = arith.constant 0.000000e+00 : f32
    %25 = vector.broadcast %cst_19 : f32 to vector<512x128xf32>
    %26 = arith.maximumf %24, %25 : vector<512x128xf32>
    %c0_20 = arith.constant 0 : index
    %c0_21 = arith.constant 0 : index
    %27 = vector.load %arg6[%c0_20, %c0_21] : memref<128x128xf32, #tpu.memory_space<vmem>>, vector<128x128xf32>
    %cst_22 = arith.constant dense<0.000000e+00> : vector<512x128xf32>
    %28 = tpu.matmul %26, %27, %cst_22 {dimension_numbers = #tpu.dot_dimension_numbers<[1], [0], [0], [1], [0, 0, 1, 1], [], []>} : vector<512x128xf32>, vector<128x128xf32>, vector<512x128xf32> -> vector<512x128xf32>
    %c4 = arith.constant 4 : index
    %c0_23 = arith.constant 0 : index
    %29 = vector.load %arg9[%c4, %c0_23] : memref<8x128xf32, #tpu.memory_space<vmem>>, vector<1x128xf32>
    %30 = vector.broadcast %29 : vector<1x128xf32> to vector<512x128xf32>
    %31 = arith.addf %28, %30 : vector<512x128xf32>
    %cst_24 = arith.constant 0.000000e+00 : f32
    %32 = vector.broadcast %cst_24 : f32 to vector<512x128xf32>
    %33 = arith.maximumf %31, %32 : vector<512x128xf32>
    %34 = tpu.concatenate %33, %0 in 1 : vector<512x128xf32>, vector<512x66xf32> -> vector<512x194xf32>
    %c0_25 = arith.constant 0 : index
    %c0_26 = arith.constant 0 : index
    %35 = vector.load %arg7[%c0_25, %c0_26] : memref<194x64xf32, #tpu.memory_space<vmem>>, vector<194x64xf32>
    %cst_27 = arith.constant dense<0.000000e+00> : vector<512x64xf32>
    %36 = tpu.matmul %34, %35, %cst_27 {dimension_numbers = #tpu.dot_dimension_numbers<[1], [0], [0], [1], [0, 0, 1, 1], [], []>} : vector<512x194xf32>, vector<194x64xf32>, vector<512x64xf32> -> vector<512x64xf32>
    %c5 = arith.constant 5 : index
    %c0_28 = arith.constant 0 : index
    %37 = vector.load %arg9[%c5, %c0_28] : memref<8x128xf32, #tpu.memory_space<vmem>>, vector<1x64xf32>
    %38 = vector.broadcast %37 : vector<1x64xf32> to vector<512x64xf32>
    %39 = arith.addf %36, %38 : vector<512x64xf32>
    %cst_29 = arith.constant 0.000000e+00 : f32
    %40 = vector.broadcast %cst_29 : f32 to vector<512x64xf32>
    %41 = arith.maximumf %39, %40 : vector<512x64xf32>
    %42 = tpu.concatenate %26, %41 in 1 : vector<512x128xf32>, vector<512x64xf32> -> vector<512x192xf32>
    %c0_30 = arith.constant 0 : index
    %c0_31 = arith.constant 0 : index
    %43 = vector.load %arg8[%c0_30, %c0_31] : memref<192x4xf32, #tpu.memory_space<vmem>>, vector<192x4xf32>
    %cst_32 = arith.constant dense<0.000000e+00> : vector<512x4xf32>
    %44 = tpu.matmul %42, %43, %cst_32 {dimension_numbers = #tpu.dot_dimension_numbers<[1], [0], [0], [1], [0, 0, 1, 1], [], []>} : vector<512x192xf32>, vector<192x4xf32>, vector<512x4xf32> -> vector<512x4xf32>
    %c6 = arith.constant 6 : index
    %c0_33 = arith.constant 0 : index
    %45 = vector.load %arg9[%c6, %c0_33] : memref<8x128xf32, #tpu.memory_space<vmem>>, vector<1x4xf32>
    %46 = vector.broadcast %45 : vector<1x4xf32> to vector<512x4xf32>
    %47 = arith.addf %44, %46 : vector<512x4xf32>
    %c0_34 = arith.constant 0 : index
    %c0_35 = arith.constant 0 : index
    %48 = vector.load %arg10[%c0_34, %c0_35] : memref<512x4xf32, #tpu.memory_space<vmem>>, vector<512x4xf32>
    tpu.vector_store %arg10[%c0_34, %c0_35], %47 {strides = array<i32>} : memref<512x4xf32, #tpu.memory_space<vmem>>, vector<512x4xf32>,
    return
  }
  func.func @transform_0(%arg0: i32) -> (i32, i32) {
    %c0_i32 = arith.constant 0 : i32
    %c0_i32_0 = arith.constant 0 : i32
    return %arg0, %c0_i32 : i32, i32
  }
  func.func @transform_1(%arg0: i32) -> (i32, i32) {
    %c0_i32 = arith.constant 0 : i32
    %c0_i32_0 = arith.constant 0 : i32
    %c0_i32_1 = arith.constant 0 : i32
    return %c0_i32, %c0_i32_0 : i32, i32
  }
  func.func @transform_2(%arg0: i32) -> (i32, i32) {
    %c0_i32 = arith.constant 0 : i32
    %c0_i32_0 = arith.constant 0 : i32
    %c0_i32_1 = arith.constant 0 : i32
    return %c0_i32, %c0_i32_0 : i32, i32
  }
  func.func @transform_3(%arg0: i32) -> (i32, i32) {
    %c0_i32 = arith.constant 0 : i32
    %c0_i32_0 = arith.constant 0 : i32
    %c0_i32_1 = arith.constant 0 : i32
    return %c0_i32, %c0_i32_0 : i32, i32
  }
  func.func @transform_4(%arg0: i32) -> (i32, i32) {
    %c0_i32 = arith.constant 0 : i32
    %c0_i32_0 = arith.constant 0 : i32
    %c0_i32_1 = arith.constant 0 : i32
    return %c0_i32, %c0_i32_0 : i32, i32
  }
  func.func @transform_5(%arg0: i32) -> (i32, i32) {
    %c0_i32 = arith.constant 0 : i32
    %c0_i32_0 = arith.constant 0 : i32
    %c0_i32_1 = arith.constant 0 : i32
    return %c0_i32, %c0_i32_0 : i32, i32
  }
  func.func @transform_6(%arg0: i32) -> (i32, i32) {
    %c0_i32 = arith.constant 0 : i32
    %c0_i32_0 = arith.constant 0 : i32
    %c0_i32_1 = arith.constant 0 : i32
    return %c0_i32, %c0_i32_0 : i32, i32
  }
  func.func @transform_7(%arg0: i32) -> (i32, i32) {
    %c0_i32 = arith.constant 0 : i32
    %c0_i32_0 = arith.constant 0 : i32
    %c0_i32_1 = arith.constant 0 : i32
    return %c0_i32, %c0_i32_0 : i32, i32
  }
  func.func @transform_8(%arg0: i32) -> (i32, i32) {
    %c0_i32 = arith.constant 0 : i32
    %c0_i32_0 = arith.constant 0 : i32
    %c0_i32_1 = arith.constant 0 : i32
    return %c0_i32, %c0_i32_0 : i32, i32
  }
  func.func @transform_9(%arg0: i32) -> (i32, i32) {
    %c0_i32 = arith.constant 0 : i32
    %c0_i32_0 = arith.constant 0 : i32
    return %arg0, %c0_i32 : i32, i32
  }
}

</mosaic_0001>

<bundles_post_ra>
// kernel: flexible_nerf_forward.1
= control target key start
LH: loop header
LB: loop body
LE: loop exit
PB: predicated region body
PF: predicated region fallthrough
CT: control target
= control target key end

     0   :  { %s6282_s30 = smov 0   ;;  %s6284_s10 = smov 0   ;;  %s8523_s0 = inlined_call_operand.vmem [shape: f32[1000,66], index: 0, kind: input, shape index: {}]   ;;  %s8524_s1 = inlined_call_operand.vmem [shape: f32[66,128], index: 1, kind: input, shape index: {}]   ;;  %s8525_s2 = inlined_call_operand.vmem [shape: f32[128,128], index: 2, kind: input, shape index: {}]   ;;  %s8526_s3 = inlined_call_operand.vmem [shape: f32[128,128], index: 3, kind: input, shape index: {}]   ;;  %s8527_s4 = inlined_call_operand.vmem [shape: f32[128,128], index: 4, kind: input, shape index: {}]   ;;  %s8528_s5 = inlined_call_operand.vmem [shape: f32[128,128], index: 5, kind: input, shape index: {}]   ;;  %s8529_s6 = inlined_call_operand.vmem [shape: f32[194,64], index: 6, kind: input, shape index: {}]   ;;  %s8530_s7 = inlined_call_operand.vmem [shape: f32[192,4], index: 7, kind: input, shape index: {}]   ;;  %s8531_s8 = inlined_call_operand.vmem [shape: f32[8,128], index: 8, kind: input, shape index: {}]   ;;  %s8532_s9 = inlined_call_operand.vmem [shape: f32[1000,4], index: 9, kind: output, shape index: {}]  }
   0x1   :  { %s6286_s11 = smov 0  }
   0x2 LB: > { %s6295_s12 = sadd.s32 4294967295, %s6196_s11   ;;  %s6297_s13 = sadd.s32 1, %s6196_s11   ;;  %s6196_s11 = sphi %s6286_s11, %s8798_s11   ;;  %s6192_s10 = sphi %s6284_s10, %s8797_s10   ;;  %s6188_s30 = sphi %s6282_s30, %s8796_s30  }
   0x3   : > { %s217_s14 = ssub.s32 %s6196_s11, %s6297_s13  ;;  %s220_s15 = sadd.s32 1, %s6192_s10 }
   0x4   : > { %p218_p0 = scmp.eq.s32.totalorder %s217_s14, 0  ;;  %p230_p1 = scmp.ne.s32.totalorder %s6192_s10, %s6188_s30 }
   0x5   : > { %p231_p2 = scmp.eq.s32.totalorder %s6295_s12, 1  ;;  %p4518_p3 = scmp.ge.s32.totalorder %s6196_s11, 1 }
   0x6   : > { %s6305_s16 = scalar_select %p218_p0, %s6192_s10, %s220_s15  }
   0x7   : > { %p6307_p4 = por %p231_p2, %p230_p1  ;;  %p296_p5 = scmp.lt.s32.totalorder %s6196_s11, 3 }
   0x9   : > { %p297_p6 = pnand %p4518_p3, %p296_p5 }
   0xb   : > { %300 = sbr.rel (%p297_p6) target bundleno = 1882 (0x75a), region = 56 }
  0x12   : > { %v418_v0 = vld [vmem:[%s8524_s1] sm:$0xff]  ;;  %v419_v1 = vld [vmem:[%s8524_s1 + $0x8] sm:$0xff]  ;;  %v420_v2 = vld [vmem:[%s8524_s1 + $0x10] sm:$0xff]  ;;  %s6321_s24 = sshll.u32 %s6295_s12, 6  ;;  %vm432_vm0 = vcmask 539648   ;;  %vm625_vm1 = vcmask 1041408  }
  0x13   : > { %v5762_v3 = vpack.c.bf16 %v419_v1, %v418_v0  ;;  %v421_v4 = vld [vmem:[%s8524_s1 + $0x18] sm:$0xff]  ;;  %p340_p7 = scmp.lt.s32.totalorder %s6321_s24, 124  ;;  %v422_v6 = vld [vmem:[%s8524_s1 + $0x20] sm:$0xff]  ;;  %v423_v7 = vld [vmem:[%s8524_s1 + $0x28] sm:$0xff]  ;;  %vm3405_vm2 = vcmask 523264   ;;  %vm3983_vm3 = vcmask 31744  }
  0x14   : > { %v5766_v5 = vpack.c.bf16 %v421_v4, %v420_v2  ;;  %v5770_v8 = vpack.c.bf16 %v423_v7, %v422_v6  ;;  %v424_v9 = vld [vmem:[%s8524_s1 + $0x30] sm:$0xff]  ;;  %v425_v10 = vld [vmem:[%s8524_s1 + $0x38] sm:$0xff]  ;;  %v426_v13 = vld [vmem:[%s8524_s1 + $0x40] sm:$0x3]  ;;  %s4056_s20 = ssub.s32 (%p6307_p4), 125, %s6321_s24  ;;  %s4740_s21 = sshll.u32 (%p6307_p4), %s6295_s12, 9 }
  0x15   : > { %5763 = vmatprep.subr.bf16.mxu0 %v5762_v3  ;;  %s341_s14 = scalar_select %p340_p7, %s6321_s24, 124  ;;  %5978 = vmatprep.subr.bf16.mxu1 %v5762_v3  ;;  %v5774_v12 = vpack.c.bf16 %v425_v10, %v424_v9  ;;  %v1014_v14 = vld [vmem:[%s8525_s2] sm:$0xff]  ;;  %v1015_v15 = vld [vmem:[%s8525_s2 + $0x8] sm:$0xff]  ;;  %v1016_v18 = vld [vmem:[%s8525_s2 + $0x10] sm:$0xff] }
  0x16   : > { %5765 = vmatpush3.bf16.msra.mxu0 %v5762_v3  ;;  %5983 = vmatpush3.bf16.msra.mxu1 %v5762_v3  ;;  %v1017_v19 = vld [vmem:[%s8525_s2 + $0x18] sm:$0xff]  ;;  %v5778_v22 = vpack.c.bf16 %v1015_v15, %v1014_v14  ;;  %v1018_v26 = vld [vmem:[%s8525_s2 + $0x20] sm:$0xff]  ;;  %v1019_v27 = vld [vmem:[%s8525_s2 + $0x28] sm:$0xff]  ;;  %p4057_p8 = scmp.lt.s32.totalorder (%p6307_p4), %s4056_s20, 64  ;;  %s8324_s26 = scalar_lea.vmem (%p6307_p4), %s8532_s9, %s4740_s21  }
  0x17   : > { %5767 = vmatprep.subr.bf16.mxu0 %v5766_v5  ;;  %s4521_s15 = sshll.u32 %s341_s14, 3  ;;  %5979 = vmatprep.subr.bf16.mxu1 %v5766_v5  ;;  %v5782_v24 = vpack.c.bf16 %v1017_v19, %v1016_v18  ;;  %v5786_v31 = vpack.c.bf16 %v1019_v27, %v1018_v26  ;;  %v1020_v33 = vld [vmem:[%s8525_s2 + $0x30] sm:$0xff]  ;;  %v1021_v34 = vld [vmem:[%s8525_s2 + $0x38] sm:$0xff]  ;;  %v1022_v40 = vld [vmem:[%s8525_s2 + $0x40] sm:$0xff] }
  0x18   : > { %s6343_s25 = scalar_lea.vmem %s8523_s0, %s4521_s15  ;;  %v5790_v38 = vpack.c.bf16 %v1021_v34, %v1020_v33  ;;  %v1023_v41 = vld [vmem:[%s8525_s2 + $0x48] sm:$0xff]  ;;  %v1024_v47 = vld [vmem:[%s8525_s2 + $0x50] sm:$0xff]  ;;  %v1025_v48 = vld [vmem:[%s8525_s2 + $0x58] sm:$0xff] }
  0x19   : > { %v354_v11 = vld [vmem:[%s6343_s25] sm:$0xff]  ;;  %v355_v17 = vld [vmem:[%s6343_s25 + $0x8] sm:$0xff]  ;;  %v356_v20 = vld [vmem:[%s6343_s25 + $0x10] sm:$0xff]  ;;  %v5794_v45 = vpack.c.bf16 %v1023_v41, %v1022_v40  ;;  %v5798_v52 = vpack.c.bf16 %v1025_v48, %v1024_v47 }
  0x1a   : > { %5769 = vmatpush3.bf16.msra.mxu0 %v5766_v5  ;;  %5154 = vmatprep.mubr.msk.f32.mxu0 %vm432_vm0, %v354_v11  ;;  %v386_v16 = vld [vmem:[%s6343_s25 + $0x100] sm:$0xff]  ;;  %v387_v21 = vld [vmem:[%s6343_s25 + $0x108] sm:$0xff]  ;;  %v388_v23 = vld [vmem:[%s6343_s25 + $0x110] sm:$0xff] }
  0x1b   : > { %5771 = vmatprep.subr.bf16.mxu0 %v5770_v8  ;;  %5984 = vmatpush3.bf16.msra.mxu1 %v5766_v5  ;;  %v357_v25 = vld [vmem:[%s6343_s25 + $0x18] sm:$0xff]  ;;  %v358_v28 = vld [vmem:[%s6343_s25 + $0x20] sm:$0xff]  ;;  %v359_v32 = vld [vmem:[%s6343_s25 + $0x28] sm:$0xff] }
  0x1c   : > { %5980 = vmatprep.subr.bf16.mxu1 %v5770_v8  ;;  %5202 = vmatprep.mubr.msk.f32.mxu1 %vm432_vm0, %v386_v16  ;;  %v389_v29 = vld [vmem:[%s6343_s25 + $0x118] sm:$0xff]  ;;  %v390_v30 = vld [vmem:[%s6343_s25 + $0x120] sm:$0xff]  ;;  %v360_v35 = vld [vmem:[%s6343_s25 + $0x30] sm:$0xff] }
  0x1d   : > { %v391_v36 = vld [vmem:[%s6343_s25 + $0x128] sm:$0xff]  ;;  %v392_v37 = vld [vmem:[%s6343_s25 + $0x130] sm:$0xff]  ;;  %v361_v39 = vld [vmem:[%s6343_s25 + $0x38] sm:$0xff] }
  0x1e   : > { %5773 = vmatpush3.bf16.msra.mxu0 %v5770_v8  ;;  %v362_v42 = vld [vmem:[%s6343_s25 + $0x40] sm:$0xff]  ;;  %v393_v43 = vld [vmem:[%s6343_s25 + $0x138] sm:$0xff]  ;;  %v363_v46 = vld [vmem:[%s6343_s25 + $0x48] sm:$0xff] }
  0x1f   : > { %5775 = vmatprep.subr.bf16.mxu0 %v5774_v12  ;;  %5985 = vmatpush3.bf16.msra.mxu1 %v5770_v8  ;;  %v394_v44 = vld [vmem:[%s6343_s25 + $0x140] sm:$0xff]  ;;  %v364_v49 = vld [vmem:[%s6343_s25 + $0x50] sm:$0xff]  ;;  %v395_v50 = vld [vmem:[%s6343_s25 + $0x148] sm:$0xff] }
  0x20   : > { %5981 = vmatprep.subr.bf16.mxu1 %v5774_v12  ;;  %v396_v51 = vld [vmem:[%s6343_s25 + $0x150] sm:$0xff]  ;;  %v365_v53 = vld [vmem:[%s6343_s25 + $0x58] sm:$0xff]  ;;  %v1026_v54 = vld [vmem:[%s8525_s2 + $0x60] sm:$0xff] }
  0x21   : > { %v1027_v55 = vld [vmem:[%s8525_s2 + $0x68] sm:$0xff]  ;;  %v366_v56 = vld [vmem:[%s6343_s25 + $0x60] sm:$0xff]  ;;  %v397_v57 = vld [vmem:[%s6343_s25 + $0x158] sm:$0xff] }
  0x22   : > { %5777 = vmatpush3.bf16.msra.mxu0 %v5774_v12  ;;  %v398_v58 = vld [vmem:[%s6343_s25 + $0x160] sm:$0xff]  ;;  %v5802_v59 = vpack.c.bf16 %v1027_v55, %v1026_v54  ;;  %v367_v60 = vld [vmem:[%s6343_s25 + $0x68] sm:$0xff]  ;;  %v1028_v61 = vld [vmem:[%s8525_s2 + $0x70] sm:$0xff] }
  0x23   : > { %5152 = vmatprep.subr.msk.mxu0 %vm625_vm1, %v426_v13  ;;  %5986 = vmatpush3.bf16.msra.mxu1 %v5774_v12  ;;  %v1029_v62 = vld [vmem:[%s8525_s2 + $0x78] sm:$0xff]  ;;  %v368_v63 = vld [vmem:[%s6343_s25 + $0x70] sm:$0xff]  ;;  %v399_v0 = vld [vmem:[%s6343_s25 + $0x168] sm:$0xff] }
  0x24   : > { %5982 = vmatprep.subr.msk.mxu1 %vm625_vm1, %v426_v13  ;;  %v400_v1 = vld [vmem:[%s6343_s25 + $0x170] sm:$0xff]  ;;  %v5806_v2 = vpack.c.bf16 %v1029_v62, %v1028_v61  ;;  %v369_v3 = vld [vmem:[%s6343_s25 + $0x78] sm:$0xff]  ;;  %v370_v4 = vld [vmem:[%s6343_s25 + $0x80] sm:$0xff] }
  0x25   : > { %v401_v5 = vld [vmem:[%s6343_s25 + $0x178] sm:$0xff]  ;;  %v402_v6 = vld [vmem:[%s6343_s25 + $0x180] sm:$0xff]  ;;  %v371_v7 = vld [vmem:[%s6343_s25 + $0x88] sm:$0xff] }
  0x26   : > { %5153 = vmatpush3.msk.msra.mxu0 %vm625_vm1, %v426_v13  ;;  %v372_v8 = vld [vmem:[%s6343_s25 + $0x90] sm:$0xff]  ;;  %v403_v9 = vld [vmem:[%s6343_s25 + $0x188] sm:$0xff]  ;;  %v373_v11 = vld [vmem:[%s6343_s25 + $0x98] sm:$0xff] }
  0x27   : > { %5155 = vmatmul.mubr.msk.f32.vlgmr.msra.gmra.mrb[0].mxu0 %vm432_vm0, %v355_v17  ;;  %5987 = vmatpush3.msk.msra.mxu1 %vm625_vm1, %v426_v13  ;;  %v404_v10 = vld [vmem:[%s6343_s25 + $0x190] sm:$0xff]  ;;  %v374_v12 = vld [vmem:[%s6343_s25 + $0xa0] sm:$0xff]  ;;  %v405_v13 = vld [vmem:[%s6343_s25 + $0x198] sm:$0xff] }
  0x28   : > { %5157 = vmatprep.mubr.msk.f32.mxu0 %vm432_vm0, %v356_v20  ;;  %5203 = vmatmul.mubr.msk.f32.vlgmr.msra.gmra.mrb[0].mxu1 %vm432_vm0, %v387_v21  ;;  %v406_v14 = vld [vmem:[%s6343_s25 + $0x1a0] sm:$0xff]  ;;  %v375_v15 = vld [vmem:[%s6343_s25 + $0xa8] sm:$0xff]  ;;  %v376_v16 = vld [vmem:[%s6343_s25 + $0xb0] sm:$0xff] }
  0x29   : > { %5205 = vmatprep.mubr.msk.f32.mxu1 %vm432_vm0, %v388_v23  ;;  %5779 = vmatprep.subr.bf16.mxu1 %v5778_v22  ;;  %v407_v17 = vld [vmem:[%s6343_s25 + $0x1a8] sm:$0xff]  ;;  %v408_v18 = vld [vmem:[%s6343_s25 + $0x1b0] sm:$0xff]  ;;  %v377_v19 = vld [vmem:[%s6343_s25 + $0xb8] sm:$0xff] }
  0x2a   : > { %5781 = vmatpush3.bf16.msra.mxu1 %v5778_v22  ;;  %v378_v20 = vld [vmem:[%s6343_s25 + $0xc0] sm:$0xff]  ;;  %v409_v21 = vld [vmem:[%s6343_s25 + $0x1b8] sm:$0xff]  ;;  %v379_v23 = vld [vmem:[%s6343_s25 + $0xc8] sm:$0xff] }
  0x2b   : > { %5158 = vmatmul.mubr.msk.f32.gmra.mrb[2].mxu0 %vm432_vm0, %v357_v25  ;;  %5783 = vmatprep.subr.bf16.mxu1 %v5782_v24  ;;  %v410_v22 = vld [vmem:[%s6343_s25 + $0x1c0] sm:$0xff]  ;;  %v411_v25 = vld [vmem:[%s6343_s25 + $0x1c8] sm:$0xff]  ;;  %v412_v26 = vld [vmem:[%s6343_s25 + $0x1d0] sm:$0xff] }
  0x2c   : > { %5160 = vmatprep.mubr.msk.f32.mxu0 %vm432_vm0, %v358_v28  ;;  %5206 = vmatmul.mubr.msk.f32.gmra.mrb[2].mxu1 %vm432_vm0, %v389_v29  ;;  %v381_v27 = vld [vmem:[%s6343_s25 + $0xd8] sm:$0xff]  ;;  %v382_v28 = vld [vmem:[%s6343_s25 + $0xe0] sm:$0xff]  ;;  %v415_v33 = vld [vmem:[%s6343_s25 + $0x1e8] sm:$0xff] }
  0x2d   : > { %5208 = vmatprep.mubr.msk.f32.mxu1 %vm432_vm0, %v390_v30  ;;  %v413_v29 = vld [vmem:[%s6343_s25 + $0x1d8] sm:$0xff]  ;;  %v414_v30 = vld [vmem:[%s6343_s25 + $0x1e0] sm:$0xff]  ;;  %v416_v34 = vld [vmem:[%s6343_s25 + $0x1f0] sm:$0xff] }
  0x2e   : > { %5785 = vmatpush3.bf16.msra.mxu1 %v5782_v24  ;;  %v380_v24 = vld [vmem:[%s6343_s25 + $0xd0] sm:$0xff]  ;;  %v1487_v41 = vld [vmem:[%s8526_s3 + $0x18] sm:$0xff]  ;;  %v1496_v55 = vld [vmem:[%s8526_s3 + $0x60] sm:$0xff] }
  0x2f   : > { %5161 = vmatmul.mubr.msk.f32.gmra.mrb[4].mxu0 %vm432_vm0, %v359_v32  ;;  %5787 = vmatprep.subr.bf16.mxu1 %v5786_v31  ;;  %v384_v32 = vld [vmem:[%s6343_s25 + $0xf0] sm:$0xff]  ;;  %v1491_v47 = vld [vmem:[%s8526_s3 + $0x38] sm:$0xff] }
  0x30   : > { %5163 = vmatprep.mubr.msk.f32.mxu0 %vm432_vm0, %v360_v35  ;;  %5209 = vmatmul.mubr.msk.f32.gmra.mrb[4].mxu1 %vm432_vm0, %v391_v36  ;;  %v385_v35 = vld [vmem:[%s6343_s25 + $0xf8] sm:$0xff]  ;;  %v1486_v40 = vld [vmem:[%s8526_s3 + $0x10] sm:$0xff] }
  0x31   : > { %5211 = vmatprep.mubr.msk.f32.mxu1 %vm432_vm0, %v392_v37  ;;  %v417_v36 = vld [vmem:[%s6343_s25 + $0x1f8] sm:$0xff]  ;;  %v1484_v37 = vld [vmem:[%s8526_s3] sm:$0xff]  ;;  %v1498_v62 = vld [vmem:[%s8526_s3 + $0x70] sm:$0xff] }
  0x32   : > { %5789 = vmatpush3.bf16.msra.mxu1 %v5786_v31  ;;  %v383_v31 = vld [vmem:[%s6343_s25 + $0xe8] sm:$0xff] }
  0x33   : > { %5164 = vmatmul.mubr.msk.f32.gmra.mrb[6].mxu0 %vm432_vm0, %v361_v39  ;;  %5791 = vmatprep.subr.bf16.mxu1 %v5790_v38 }
  0x34   : > { %5166 = vmatprep.mubr.msk.f32.mxu0 %vm432_vm0, %v362_v42  ;;  %5212 = vmatmul.mubr.msk.f32.gmra.mrb[6].mxu1 %vm432_vm0, %v393_v43  ;;  %v5814_v42 = vpack.c.bf16 %v1487_v41, %v1486_v40  ;;  %v1488_v43 = vld [vmem:[%s8526_s3 + $0x20] sm:$0xff] }
  0x35   : > { %5214 = vmatprep.mubr.msk.f32.mxu1 %vm432_vm0, %v394_v44  ;;  %v1489_v44 = vld [vmem:[%s8526_s3 + $0x28] sm:$0xff] }
  0x36   : > { %5793 = vmatpush3.bf16.msra.mxu1 %v5790_v38  ;;  %v1485_v38 = vld [vmem:[%s8526_s3 + $0x8] sm:$0xff] }
  0x37   : > { %5167 = vmatmul.mubr.msk.f32.gmra.mrb[8].mxu0 %vm432_vm0, %v363_v46  ;;  %5795 = vmatprep.subr.bf16.mxu1 %v5794_v45  ;;  %v5810_v39 = vpack.c.bf16 %v1485_v38, %v1484_v37  ;;  %v1490_v46 = vld [vmem:[%s8526_s3 + $0x30] sm:$0xff] }
  0x38   : > { %5169 = vmatprep.mubr.msk.f32.mxu0 %vm432_vm0, %v364_v49  ;;  %5215 = vmatmul.mubr.msk.f32.gmra.mrb[8].mxu1 %vm432_vm0, %v395_v50  ;;  %v5822_v48 = vpack.c.bf16 %v1491_v47, %v1490_v46  ;;  %v1492_v49 = vld [vmem:[%s8526_s3 + $0x40] sm:$0xff]  ;;  %v1493_v50 = vld [vmem:[%s8526_s3 + $0x48] sm:$0xff] }
  0x39   : > { %5217 = vmatprep.mubr.msk.f32.mxu1 %vm432_vm0, %v396_v51  ;;  %5811 = vmatprep.subr.bf16.mxu0 %v5810_v39  ;;  %v5826_v51 = vpack.c.bf16 %v1493_v50, %v1492_v49 }
  0x3a   : > { %5797 = vmatpush3.bf16.msra.mxu1 %v5794_v45  ;;  %5813 = vmatpush3.bf16.msra.mxu0 %v5810_v39  ;;  %v5818_v45 = vpack.c.bf16 %v1489_v44, %v1488_v43 }
  0x3b   : > { %5170 = vmatmul.mubr.msk.f32.gmra.mrb[10].mxu0 %vm432_vm0, %v365_v53  ;;  %5799 = vmatprep.subr.bf16.mxu1 %v5798_v52  ;;  %v1495_v53 = vld [vmem:[%s8526_s3 + $0x58] sm:$0xff] }
  0x3c   : > { %5172 = vmatprep.mubr.msk.f32.mxu0 %vm432_vm0, %v366_v56  ;;  %5218 = vmatmul.mubr.msk.f32.gmra.mrb[10].mxu1 %vm432_vm0, %v397_v57  ;;  %v1497_v56 = vld [vmem:[%s8526_s3 + $0x68] sm:$0xff] }
  0x3d   : > { %5220 = vmatprep.mubr.msk.f32.mxu1 %vm432_vm0, %v398_v58  ;;  %5815 = vmatprep.subr.bf16.mxu0 %v5814_v42  ;;  %v5834_v57 = vpack.c.bf16 %v1497_v56, %v1496_v55  ;;  %v6573_v58 = vld [vmem:[%s8531_s8] ss:$0 sm:$0xff] }
  0x3e   : > { %5801 = vmatpush3.bf16.msra.mxu1 %v5798_v52  ;;  %5817 = vmatpush3.bf16.msra.mxu0 %v5814_v42  ;;  %v1494_v52 = vld [vmem:[%s8526_s3 + $0x50] sm:$0xff] }
  0x3f   : > { %5173 = vmatmul.mubr.msk.f32.gmra.mrb[12].mxu0 %vm432_vm0, %v367_v60  ;;  %5803 = vmatprep.subr.bf16.mxu1 %v5802_v59  ;;  %v5830_v54 = vpack.c.bf16 %v1495_v53, %v1494_v52 }
  0x40   : > { %5175 = vmatprep.mubr.msk.f32.mxu0 %vm432_vm0, %v368_v63  ;;  %5221 = vmatmul.mubr.msk.f32.gmra.mrb[12].mxu1 %vm432_vm0, %v399_v0  ;;  %v1499_v63 = vld [vmem:[%s8526_s3 + $0x78] sm:$0xff] }
  0x41   : > { %5223 = vmatprep.mubr.msk.f32.mxu1 %vm432_vm0, %v400_v1  ;;  %5819 = vmatprep.subr.bf16.mxu0 %v5818_v45 }
  0x42   : > { %5805 = vmatpush3.bf16.msra.mxu1 %v5802_v59  ;;  %5821 = vmatpush3.bf16.msra.mxu0 %v5818_v45 }
  0x43   : > { %5176 = vmatmul.mubr.msk.f32.gmra.mrb[14].mxu0 %vm432_vm0, %v369_v3  ;;  %5807 = vmatprep.subr.bf16.mxu1 %v5806_v2  ;;  %v5838_v3 = vpack.c.bf16 %v1499_v63, %v1498_v62 }
  0x44   : > { %5178 = vmatprep.mubr.msk.f32.mxu0 %vm432_vm0, %v370_v4  ;;  %5224 = vmatmul.mubr.msk.f32.gmra.mrb[14].mxu1 %vm432_vm0, %v401_v5 }
  0x45   : > { %5226 = vmatprep.mubr.msk.f32.mxu1 %vm432_vm0, %v402_v6  ;;  %5823 = vmatprep.subr.bf16.mxu0 %v5822_v48 }
  0x46   : > { %5809 = vmatpush3.bf16.msra.mxu1 %v5806_v2  ;;  %5825 = vmatpush3.bf16.msra.mxu0 %v5822_v48 }
  0x47   : > { %5179 = vmatmul.mubr.msk.f32.gmra.mrb[16].mxu0 %vm432_vm0, %v371_v7  ;;  %5827 = vmatprep.subr.bf16.mxu0 %v5826_v51 }
  0x48   : > { %5181 = vmatprep.mubr.msk.f32.mxu0 %vm432_vm0, %v372_v8  ;;  %5227 = vmatmul.mubr.msk.f32.gmra.mrb[16].mxu1 %vm432_vm0, %v403_v9 }
  0x49   : > { %5229 = vmatprep.mubr.msk.f32.mxu1 %vm432_vm0, %v404_v10 }
  0x4a   : > { %5829 = vmatpush3.bf16.msra.mxu0 %v5826_v51 }
  0x4b   : > { %5182 = vmatmul.mubr.msk.f32.gmra.mrb[18].mxu0 %vm432_vm0, %v373_v11  ;;  %5831 = vmatprep.subr.bf16.mxu0 %v5830_v54 }
  0x4c   : > { %5184 = vmatprep.mubr.msk.f32.mxu0 %vm432_vm0, %v374_v12  ;;  %5230 = vmatmul.mubr.msk.f32.gmra.mrb[18].mxu1 %vm432_vm0, %v405_v13 }
  0x4d   : > { %5232 = vmatprep.mubr.msk.f32.mxu1 %vm432_vm0, %v406_v14 }
  0x4e   : > { %5833 = vmatpush3.bf16.msra.mxu0 %v5830_v54 }
  0x4f   : > { %5185 = vmatmul.mubr.msk.f32.gmra.mrb[20].mxu0 %vm432_vm0, %v375_v15  ;;  %5835 = vmatprep.subr.bf16.mxu0 %v5834_v57 }
  0x50   : > { %5187 = vmatprep.mubr.msk.f32.mxu0 %vm432_vm0, %v376_v16  ;;  %5233 = vmatmul.mubr.msk.f32.gmra.mrb[20].mxu1 %vm432_vm0, %v407_v17 }
  0x51   : > { %5235 = vmatprep.mubr.msk.f32.mxu1 %vm432_vm0, %v408_v18 }
  0x52   : > { %5837 = vmatpush3.bf16.msra.mxu0 %v5834_v57 }
  0x53   : > { %5188 = vmatmul.mubr.msk.f32.gmra.mrb[22].mxu0 %vm432_vm0, %v377_v19  ;;  %5839 = vmatprep.subr.bf16.mxu0 %v5838_v3 }
  0x54   : > { %5190 = vmatprep.mubr.msk.f32.mxu0 %vm432_vm0, %v378_v20  ;;  %5236 = vmatmul.mubr.msk.f32.gmra.mrb[22].mxu1 %vm432_vm0, %v409_v21 }
  0x55   : > { %5238 = vmatprep.mubr.msk.f32.mxu1 %vm432_vm0, %v410_v22 }
  0x56   : > { %5841 = vmatpush3.bf16.msra.mxu0 %v5838_v3 }
  0x57   : > { %5191 = vmatmul.mubr.msk.f32.gmra.mrb[24].mxu0 %vm432_vm0, %v379_v23 }
  0x58   : > { %5193 = vmatprep.mubr.msk.f32.mxu0 %vm432_vm0, %v380_v24  ;;  %5239 = vmatmul.mubr.msk.f32.gmra.mrb[24].mxu1 %vm432_vm0, %v411_v25 }
  0x59   : > { %5241 = vmatprep.mubr.msk.f32.mxu1 %vm432_vm0, %v412_v26 }
  0x5b   : > { %5194 = vmatmul.mubr.msk.f32.gmra.mrb[26].mxu0 %vm432_vm0, %v381_v27 }
  0x5c   : > { %5196 = vmatprep.mubr.msk.f32.mxu0 %vm432_vm0, %v382_v28  ;;  %5242 = vmatmul.mubr.msk.f32.gmra.mrb[26].mxu1 %vm432_vm0, %v413_v29 }
  0x5d   : > { %5244 = vmatprep.mubr.msk.f32.mxu1 %vm432_vm0, %v414_v30 }
  0x5f   : > { %5197 = vmatmul.mubr.msk.f32.gmra.mrb[28].mxu0 %vm432_vm0, %v383_v31 }
  0x60   : > { %5199 = vmatprep.mubr.msk.f32.mxu0 %vm432_vm0, %v384_v32  ;;  %5245 = vmatmul.mubr.msk.f32.gmra.mrb[28].mxu1 %vm432_vm0, %v415_v33 }
  0x61   : > { %5247 = vmatprep.mubr.msk.f32.mxu1 %vm432_vm0, %v416_v34 }
  0x63   : > { %5200 = vmatmul.mubr.msk.f32.gmra.mrb[30].mxu0 %vm432_vm0, %v385_v35 }
  0x64   : > { %5248 = vmatmul.mubr.msk.f32.gmra.mrb[30].mxu1 %vm432_vm0, %v417_v36 }
  0xfa   : > { %v5156_v59 = vpop.f32.mrb[0].mxu0 }
  0xfb   : > { %v695_v60 = vpop.f32.mrb[1].mxu0  ;;  %v5204_v61 = vpop.f32.mrb[0].mxu1  ;;  %v701_v4 = vadd.f32 %v5156_v59, %v6573_v58 }
  0xfc   : > { %v696_v0 = vadd.f32 %v6573_v58, %v695_v60  ;;  %v6583_v1 = vadd.f32 %v5204_v61, %v6573_v58  ;;  %v6585_v2 = vpop.f32.mrb[1].mxu1 }
  0xfe   : > { %v5159_v5 = vpop.f32.mrb[2].mxu0  ;;  %5282 = vmatprep.mubr.f32.mxu1 %v696_v0 }
  0xff   : > { %v711_v6 = vadd.f32 %v5159_v5, %v6573_v58  ;;  %v705_v7 = vpop.f32.mrb[3].mxu0  ;;  %5283 = vmatmul.mubr.f32.vlgmr.msra.gmra.mrb[32].mxu1 %v701_v4  ;;  %v5207_v8 = vpop.f32.mrb[2].mxu1 }
 0x100   : > { %v706_v9 = vadd.f32 %v6573_v58, %v705_v7  ;;  %v6591_v10 = vadd.f32 %v5207_v8, %v6573_v58  ;;  %v865_v11 = vpop.f32.mrb[3].mxu1 }
 0x101   : > { %v6594_v12 = vadd.f32 %v6573_v58, %v865_v11 }
 0x102   : > { %v5162_v13 = vpop.f32.mrb[4].mxu0  ;;  %5285 = vmatprep.mubr.f32.mxu1 %v706_v9 }
 0x103   : > { %v721_v14 = vadd.f32 %v5162_v13, %v6573_v58  ;;  %v715_v15 = vpop.f32.mrb[5].mxu0  ;;  %5286 = vmatmul.mubr.f32.gmra.mrb[34].mxu1 %v711_v6  ;;  %v5210_v16 = vpop.f32.mrb[4].mxu1 }
 0x104   : > { %v716_v17 = vadd.f32 %v6573_v58, %v715_v15  ;;  %v6599_v18 = vadd.f32 %v5210_v16, %v6573_v58  ;;  %v875_v19 = vpop.f32.mrb[5].mxu1 }
 0x105   : > { %v6602_v20 = vadd.f32 %v6573_v58, %v875_v19 }
 0x106   : > { %5288 = vmatprep.mubr.f32.mxu1 %v716_v17  ;;  %v5165_v21 = vpop.f32.mrb[6].mxu0 }
 0x107   : > { %5289 = vmatmul.mubr.f32.gmra.mrb[36].mxu1 %v721_v14  ;;  %v731_v22 = vadd.f32 %v5165_v21, %v6573_v58  ;;  %v725_v23 = vpop.f32.mrb[7].mxu0  ;;  %v5213_v24 = vpop.f32.mrb[6].mxu1 }
 0x108   : > { %v726_v25 = vadd.f32 %v6573_v58, %v725_v23  ;;  %v6607_v26 = vadd.f32 %v5213_v24, %v6573_v58  ;;  %v885_v27 = vpop.f32.mrb[7].mxu1 }
 0x109   : > { %v6610_v28 = vadd.f32 %v6573_v58, %v885_v27 }
 0x10a   : > { %5291 = vmatprep.mubr.f32.mxu1 %v726_v25  ;;  %v5168_v29 = vpop.f32.mrb[8].mxu0 }
 0x10b   : > { %5292 = vmatmul.mubr.f32.gmra.mrb[38].mxu1 %v731_v22  ;;  %v741_v30 = vadd.f32 %v5168_v29, %v6573_v58  ;;  %v735_v31 = vpop.f32.mrb[9].mxu0  ;;  %v5216_v32 = vpop.f32.mrb[8].mxu1 }
 0x10c   : > { %v736_v33 = vadd.f32 %v6573_v58, %v735_v31  ;;  %v6615_v34 = vadd.f32 %v5216_v32, %v6573_v58  ;;  %v895_v35 = vpop.f32.mrb[9].mxu1 }
 0x10d   : > { %v6618_v36 = vadd.f32 %v6573_v58, %v895_v35 }
 0x10e   : > { %5294 = vmatprep.mubr.f32.mxu1 %v736_v33  ;;  %v5171_v37 = vpop.f32.mrb[10].mxu0 }
 0x10f   : > { %5295 = vmatmul.mubr.f32.gmra.mrb[40].mxu1 %v741_v30  ;;  %v751_v38 = vadd.f32 %v5171_v37, %v6573_v58  ;;  %v745_v39 = vpop.f32.mrb[11].mxu0  ;;  %v5219_v40 = vpop.f32.mrb[10].mxu1 }
 0x110   : > { %v746_v41 = vadd.f32 %v6573_v58, %v745_v39  ;;  %v6623_v42 = vadd.f32 %v5219_v40, %v6573_v58  ;;  %v905_v43 = vpop.f32.mrb[11].mxu1 }
 0x111   : > { %v6626_v44 = vadd.f32 %v6573_v58, %v905_v43 }
 0x112   : > { %5297 = vmatprep.mubr.f32.mxu1 %v746_v41  ;;  %v5174_v45 = vpop.f32.mrb[12].mxu0 }
 0x113   : > { %5298 = vmatmul.mubr.f32.gmra.mrb[42].mxu1 %v751_v38  ;;  %v761_v46 = vadd.f32 %v5174_v45, %v6573_v58  ;;  %v755_v47 = vpop.f32.mrb[13].mxu0  ;;  %v5222_v48 = vpop.f32.mrb[12].mxu1 }
 0x114   : > { %v756_v49 = vadd.f32 %v6573_v58, %v755_v47  ;;  %v6631_v50 = vadd.f32 %v5222_v48, %v6573_v58  ;;  %v915_v51 = vpop.f32.mrb[13].mxu1 }
 0x115   : > { %v6634_v52 = vadd.f32 %v6573_v58, %v915_v51 }
 0x116   : > { %5300 = vmatprep.mubr.f32.mxu1 %v756_v49  ;;  %v5177_v53 = vpop.f32.mrb[14].mxu0 }
 0x117   : > { %5301 = vmatmul.mubr.f32.gmra.mrb[44].mxu1 %v761_v46  ;;  %v771_v54 = vadd.f32 %v5177_v53, %v6573_v58  ;;  %v765_v55 = vpop.f32.mrb[15].mxu0  ;;  %v5225_v56 = vpop.f32.mrb[14].mxu1 }
 0x118   : > { %v766_v57 = vadd.f32 %v6573_v58, %v765_v55  ;;  %v6639_v59 = vadd.f32 %v5225_v56, %v6573_v58  ;;  %v925_v60 = vpop.f32.mrb[15].mxu1 }
 0x119   : > { %v6642_v61 = vadd.f32 %v6573_v58, %v925_v60 }
 0x11a   : > { %5303 = vmatprep.mubr.f32.mxu1 %v766_v57  ;;  %v5180_v62 = vpop.f32.mrb[16].mxu0 }
 0x11b   : > { %5304 = vmatmul.mubr.f32.gmra.mrb[46].mxu1 %v771_v54  ;;  %v781_v63 = vadd.f32 %v5180_v62, %v6573_v58  ;;  %v775_v0 = vpop.f32.mrb[17].mxu0  ;;  %v5228_v3 = vpop.f32.mrb[16].mxu1 }
 0x11c   : > { %v776_v4 = vadd.f32 %v6573_v58, %v775_v0  ;;  %v6647_v5 = vadd.f32 %v5228_v3, %v6573_v58  ;;  %v935_v6 = vpop.f32.mrb[17].mxu1 }
 0x11d   : > { %v6650_v7 = vadd.f32 %v6573_v58, %v935_v6 }
 0x11e   : > { %5306 = vmatprep.mubr.f32.mxu1 %v776_v4  ;;  %v5183_v8 = vpop.f32.mrb[18].mxu0 }
 0x11f   : > { %5307 = vmatmul.mubr.f32.gmra.mrb[48].mxu1 %v781_v63  ;;  %v791_v9 = vadd.f32 %v5183_v8, %v6573_v58  ;;  %v785_v11 = vpop.f32.mrb[19].mxu0  ;;  %v5231_v13 = vpop.f32.mrb[18].mxu1 }
 0x120   : > { %v786_v14 = vadd.f32 %v6573_v58, %v785_v11  ;;  %v6655_v15 = vadd.f32 %v5231_v13, %v6573_v58  ;;  %v945_v16 = vpop.f32.mrb[19].mxu1 }
 0x121   : > { %v6658_v17 = vadd.f32 %v6573_v58, %v945_v16 }
 0x122   : > { %5309 = vmatprep.mubr.f32.mxu1 %v786_v14  ;;  %v5186_v19 = vpop.f32.mrb[20].mxu0 }
 0x123   : > { %5310 = vmatmul.mubr.f32.gmra.mrb[50].mxu1 %v791_v9  ;;  %v801_v21 = vadd.f32 %v5186_v19, %v6573_v58  ;;  %v795_v22 = vpop.f32.mrb[21].mxu0  ;;  %v5234_v23 = vpop.f32.mrb[20].mxu1 }
 0x124   : > { %v796_v24 = vadd.f32 %v6573_v58, %v795_v22  ;;  %v6663_v25 = vadd.f32 %v5234_v23, %v6573_v58  ;;  %v955_v27 = vpop.f32.mrb[21].mxu1  ;;  %v856_v22 = vadd.f32 %v6573_v58, %v6585_v2 }
 0x125   : > { %v6666_v29 = vadd.f32 %v6573_v58, %v955_v27 }
 0x126   : > { %5312 = vmatprep.mubr.f32.mxu1 %v796_v24  ;;  %v5189_v30 = vpop.f32.mrb[22].mxu0 }
 0x127   : > { %5313 = vmatmul.mubr.f32.gmra.mrb[52].mxu1 %v801_v21  ;;  %v811_v31 = vadd.f32 %v5189_v30, %v6573_v58  ;;  %v805_v32 = vpop.f32.mrb[23].mxu0  ;;  %v5237_v33 = vpop.f32.mrb[22].mxu1  ;;  %v1968_v30 = vld [vmem:[%s8527_s4 + $0x70] sm:$0xff] }
 0x128   : > { %v806_v35 = vadd.f32 %v6573_v58, %v805_v32  ;;  %v6671_v37 = vadd.f32 %v5237_v33, %v6573_v58  ;;  %v965_v38 = vpop.f32.mrb[23].mxu1 }
 0x129   : > { %v6674_v39 = vadd.f32 %v6573_v58, %v965_v38 }
 0x12a   : > { %5315 = vmatprep.mubr.f32.mxu1 %v806_v35  ;;  %v5192_v40 = vpop.f32.mrb[24].mxu0 }
 0x12b   : > { %5316 = vmatmul.mubr.f32.gmra.mrb[54].mxu1 %v811_v31  ;;  %v821_v41 = vadd.f32 %v5192_v40, %v6573_v58  ;;  %v815_v43 = vpop.f32.mrb[25].mxu0  ;;  %v5240_v45 = vpop.f32.mrb[24].mxu1  ;;  %v1969_v31 = vld [vmem:[%s8527_s4 + $0x78] sm:$0xff] }
 0x12c   : > { %v816_v46 = vadd.f32 %v6573_v58, %v815_v43  ;;  %v981_v47 = vadd.f32 %v5240_v45, %v6573_v58  ;;  %v975_v48 = vpop.f32.mrb[25].mxu1  ;;  %v5870_v35 = vpack.c.bf16 %v1969_v31, %v1968_v30 }
 0x12d   : > { %v976_v49 = vadd.f32 %v6573_v58, %v975_v48 }
 0x12e   : > { %5318 = vmatprep.mubr.f32.mxu1 %v816_v46  ;;  %v5195_v51 = vpop.f32.mrb[26].mxu0 }
 0x12f   : > { %5319 = vmatmul.mubr.f32.gmra.mrb[56].mxu1 %v821_v41  ;;  %v831_v53 = vadd.f32 %v5195_v51, %v6573_v58  ;;  %v825_v54 = vpop.f32.mrb[27].mxu0  ;;  %v5243_v55 = vpop.f32.mrb[26].mxu1 }
 0x130   : > { %v826_v56 = vadd.f32 %v6573_v58, %v825_v54  ;;  %v991_v57 = vadd.f32 %v5243_v55, %v6573_v58  ;;  %v985_v60 = vpop.f32.mrb[27].mxu1 }
 0x131   : > { %v986_v62 = vadd.f32 %v6573_v58, %v985_v60 }
 0x132   : > { %5321 = vmatprep.mubr.f32.mxu1 %v826_v56  ;;  %v5198_v63 = vpop.f32.mrb[28].mxu0 }
 0x133   : > { %5322 = vmatmul.mubr.f32.gmra.mrb[58].mxu1 %v831_v53  ;;  %v841_v0 = vadd.f32 %v5198_v63, %v6573_v58  ;;  %v835_v3 = vpop.f32.mrb[29].mxu0  ;;  %v5246_v4 = vpop.f32.mrb[28].mxu1 }
 0x134   : > { %v836_v6 = vadd.f32 %v6573_v58, %v835_v3  ;;  %v1001_v8 = vadd.f32 %v5246_v4, %v6573_v58  ;;  %v995_v9 = vpop.f32.mrb[29].mxu1 }
 0x135   : > { %v996_v11 = vadd.f32 %v6573_v58, %v995_v9 }
 0x136   : > { %5324 = vmatprep.mubr.f32.mxu1 %v836_v6  ;;  %v5201_v13 = vpop.f32.mrb[30].mxu0 }
 0x137   : > { %5325 = vmatmul.mubr.f32.gmra.mrb[60].mxu1 %v841_v0  ;;  %v851_v14 = vadd.f32 %v5201_v13, %v6573_v58  ;;  %v845_v16 = vpop.f32.mrb[31].mxu0  ;;  %v5249_v19 = vpop.f32.mrb[30].mxu1 }
 0x138   : > { %v846_v21 = vadd.f32 %v6573_v58, %v845_v16  ;;  %v1011_v23 = vadd.f32 %v5249_v19, %v6573_v58  ;;  %v1005_v24 = vpop.f32.mrb[31].mxu1 }
 0x139   : > { %v1006_v27 = vadd.f32 %v6573_v58, %v1005_v24  ;;  %v1954_v58 = vld [vmem:[%s8527_s4] sm:$0xff] }
 0x13a   : > { %5327 = vmatprep.mubr.f32.mxu1 %v846_v21 }
 0x13b   : > { %5328 = vmatmul.mubr.f32.gmra.mrb[62].mxu1 %v851_v14 }
 0x13c   : > { %5330 = vmatprep.mubr.f32.mxu1 %v856_v22 }
 0x13f   : > { %5331 = vmatmul.mubr.f32.gmra.mrb[64].mxu1 %v6583_v1  ;;  %v1955_v1 = vld [vmem:[%s8527_s4 + $0x8] sm:$0xff] }
 0x140   : > { %5333 = vmatprep.mubr.f32.mxu1 %v6594_v12  ;;  %v5842_v2 = vpack.c.bf16 %v1955_v1, %v1954_v58  ;;  %v1957_v12 = vld [vmem:[%s8527_s4 + $0x18] sm:$0xff] }
 0x142   : > { %5843 = vmatprep.subr.bf16.mxu1 %v5842_v2 }
 0x143   : > { %5334 = vmatmul.mubr.f32.gmra.mrb[66].mxu1 %v6591_v10  ;;  %v1956_v10 = vld [vmem:[%s8527_s4 + $0x10] sm:$0xff] }
 0x144   : > { %5336 = vmatprep.mubr.f32.mxu1 %v6602_v20  ;;  %5845 = vmatpush3.bf16.msra.mxu1 %v5842_v2  ;;  %v1958_v20 = vld [vmem:[%s8527_s4 + $0x20] sm:$0xff] }
 0x147   : > { %5337 = vmatmul.mubr.f32.gmra.mrb[68].mxu1 %v6599_v18  ;;  %v5846_v18 = vpack.c.bf16 %v1957_v12, %v1956_v10 }
 0x148   : > { %5339 = vmatprep.mubr.f32.mxu1 %v6610_v28 }
 0x149   : > { %5847 = vmatprep.subr.bf16.mxu1 %v5846_v18 }
 0x14a   : > { %5849 = vmatpush3.bf16.msra.mxu1 %v5846_v18 }
 0x14b   : > { %5340 = vmatmul.mubr.f32.gmra.mrb[70].mxu1 %v6607_v26  ;;  %v1959_v26 = vld [vmem:[%s8527_s4 + $0x28] sm:$0xff] }
 0x14c   : > { %5342 = vmatprep.mubr.f32.mxu1 %v6618_v36  ;;  %v5850_v28 = vpack.c.bf16 %v1959_v26, %v1958_v20  ;;  %v1961_v36 = vld [vmem:[%s8527_s4 + $0x38] sm:$0xff] }
 0x14e   : > { %5851 = vmatprep.subr.bf16.mxu1 %v5850_v28 }
 0x14f   : > { %5343 = vmatmul.mubr.f32.gmra.mrb[72].mxu1 %v6615_v34  ;;  %v1960_v34 = vld [vmem:[%s8527_s4 + $0x30] sm:$0xff] }
 0x150   : > { %5345 = vmatprep.mubr.f32.mxu1 %v6626_v44  ;;  %5853 = vmatpush3.bf16.msra.mxu1 %v5850_v28  ;;  %v1962_v44 = vld [vmem:[%s8527_s4 + $0x40] sm:$0xff] }
 0x153   : > { %5346 = vmatmul.mubr.f32.gmra.mrb[74].mxu1 %v6623_v42  ;;  %v5854_v42 = vpack.c.bf16 %v1961_v36, %v1960_v34 }
 0x154   : > { %5348 = vmatprep.mubr.f32.mxu1 %v6634_v52 }
 0x155   : > { %5855 = vmatprep.subr.bf16.mxu1 %v5854_v42 }
 0x156   : > { %5857 = vmatpush3.bf16.msra.mxu1 %v5854_v42 }
 0x157   : > { %5349 = vmatmul.mubr.f32.gmra.mrb[76].mxu1 %v6631_v50  ;;  %v1963_v50 = vld [vmem:[%s8527_s4 + $0x48] sm:$0xff] }
 0x158   : > { %5351 = vmatprep.mubr.f32.mxu1 %v6642_v61  ;;  %v5858_v52 = vpack.c.bf16 %v1963_v50, %v1962_v44  ;;  %v1965_v61 = vld [vmem:[%s8527_s4 + $0x58] sm:$0xff] }
 0x15a   : > { %5859 = vmatprep.subr.bf16.mxu1 %v5858_v52 }
 0x15b   : > { %5352 = vmatmul.mubr.f32.gmra.mrb[78].mxu1 %v6639_v59  ;;  %v1964_v59 = vld [vmem:[%s8527_s4 + $0x50] sm:$0xff] }
 0x15c   : > { %5354 = vmatprep.mubr.f32.mxu1 %v6650_v7  ;;  %5861 = vmatpush3.bf16.msra.mxu1 %v5858_v52  ;;  %v1966_v7 = vld [vmem:[%s8527_s4 + $0x60] sm:$0xff] }
 0x15f   : > { %5355 = vmatmul.mubr.f32.gmra.mrb[80].mxu1 %v6647_v5  ;;  %v5862_v5 = vpack.c.bf16 %v1965_v61, %v1964_v59 }
 0x160   : > { %5357 = vmatprep.mubr.f32.mxu1 %v6658_v17 }
 0x161   : > { %5863 = vmatprep.subr.bf16.mxu1 %v5862_v5 }
 0x162   : > { %5865 = vmatpush3.bf16.msra.mxu1 %v5862_v5 }
 0x163   : > { %5358 = vmatmul.mubr.f32.gmra.mrb[82].mxu1 %v6655_v15  ;;  %v1967_v15 = vld [vmem:[%s8527_s4 + $0x68] sm:$0xff] }
 0x164   : > { %5360 = vmatprep.mubr.f32.mxu1 %v6666_v29  ;;  %v5866_v17 = vpack.c.bf16 %v1967_v15, %v1966_v7 }
 0x166   : > { %5867 = vmatprep.subr.bf16.mxu1 %v5866_v17 }
 0x167   : > { %5361 = vmatmul.mubr.f32.gmra.mrb[84].mxu1 %v6663_v25  ;;  %v6762_v25 = vld [vmem:[%s8531_s8 + $0x1] ss:$0 sm:$0xff] }
 0x168   : > { %5363 = vmatprep.mubr.f32.mxu1 %v6674_v39  ;;  %5869 = vmatpush3.bf16.msra.mxu1 %v5866_v17 }
 0x169   : > { %5871 = vmatprep.subr.bf16.mxu1 %v5870_v35 }
 0x16b   : > { %5364 = vmatmul.mubr.f32.gmra.mrb[86].mxu1 %v6671_v37 }
 0x16c   : > { %5366 = vmatprep.mubr.f32.mxu1 %v976_v49  ;;  %5873 = vmatpush3.bf16.msra.mxu1 %v5870_v35 }
 0x16f   : > { %5367 = vmatmul.mubr.f32.gmra.mrb[88].mxu1 %v981_v47 }
 0x170   : > { %5369 = vmatprep.mubr.f32.mxu1 %v986_v62 }
 0x173   : > { %5370 = vmatmul.mubr.f32.gmra.mrb[90].mxu1 %v991_v57 }
 0x174   : > { %5372 = vmatprep.mubr.f32.mxu1 %v996_v11 }
 0x177   : > { %5373 = vmatmul.mubr.f32.gmra.mrb[92].mxu1 %v1001_v8 }
 0x178   : > { %5375 = vmatprep.mubr.f32.mxu1 %v1006_v27 }
 0x17b   : > { %5376 = vmatmul.mubr.f32.gmra.mrb[94].mxu1 %v1011_v23 }
 0x1d2   : > { %v5284_v29 = vpop.f32.mrb[32].mxu1 }
 0x1d3   : > { %v1107_v32 = vadd.f32 %v5284_v29, %v6762_v25  ;;  %v1101_v33 = vpop.f32.mrb[33].mxu1 }
 0x1d4   : > { %v1102_v37 = vadd.f32 %v6762_v25, %v1101_v33 }
 0x1d5   : > { %v1421_v40 = vmax.f32 %v1107_v32, 0.0 }
 0x1d6   : > { %v1420_v38 = vmax.f32 %v1102_v37, 0.0  ;;  %v5287_v39 = vpop.f32.mrb[34].mxu1 }
 0x1d7   : > { %v1117_v41 = vadd.f32 %v5287_v39, %v6762_v25  ;;  %v1111_v43 = vpop.f32.mrb[35].mxu1 }
 0x1d8   : > { %v1112_v45 = vadd.f32 %v6762_v25, %v1111_v43  ;;  %5410 = vmatprep.mubr.f32.mxu0 %v1420_v38 }
 0x1d9   : > { %v1423_v46 = vmax.f32 %v1117_v41, 0.0  ;;  %5411 = vmatmul.mubr.f32.vlgmr.msra.gmra.mrb[32].mxu0 %v1421_v40 }
 0x1da   : > { %v1422_v47 = vmax.f32 %v1112_v45, 0.0  ;;  %v5290_v48 = vpop.f32.mrb[36].mxu1 }
 0x1db   : > { %v1127_v49 = vadd.f32 %v5290_v48, %v6762_v25  ;;  %v1121_v51 = vpop.f32.mrb[37].mxu1 }
 0x1dc   : > { %v1122_v53 = vadd.f32 %v6762_v25, %v1121_v51  ;;  %5413 = vmatprep.mubr.f32.mxu0 %v1422_v47 }
 0x1dd   : > { %v1425_v54 = vmax.f32 %v1127_v49, 0.0  ;;  %5414 = vmatmul.mubr.f32.gmra.mrb[34].mxu0 %v1423_v46 }
 0x1de   : > { %v1424_v55 = vmax.f32 %v1122_v53, 0.0  ;;  %v5293_v56 = vpop.f32.mrb[38].mxu1 }
 0x1df   : > { %v1137_v57 = vadd.f32 %v5293_v56, %v6762_v25  ;;  %v1131_v60 = vpop.f32.mrb[39].mxu1 }
 0x1e0   : > { %5416 = vmatprep.mubr.f32.mxu0 %v1424_v55  ;;  %v1132_v62 = vadd.f32 %v6762_v25, %v1131_v60 }
 0x1e1   : > { %v1427_v63 = vmax.f32 %v1137_v57, 0.0  ;;  %5417 = vmatmul.mubr.f32.gmra.mrb[36].mxu0 %v1425_v54 }
 0x1e2   : > { %v1426_v0 = vmax.f32 %v1132_v62, 0.0  ;;  %v5296_v3 = vpop.f32.mrb[40].mxu1 }
 0x1e3   : > { %v1147_v4 = vadd.f32 %v5296_v3, %v6762_v25  ;;  %v1141_v6 = vpop.f32.mrb[41].mxu1 }
 0x1e4   : > { %5419 = vmatprep.mubr.f32.mxu0 %v1426_v0  ;;  %v1142_v8 = vadd.f32 %v6762_v25, %v1141_v6 }
 0x1e5   : > { %5420 = vmatmul.mubr.f32.gmra.mrb[38].mxu0 %v1427_v63  ;;  %v1429_v9 = vmax.f32 %v1147_v4, 0.0 }
 0x1e6   : > { %v1428_v11 = vmax.f32 %v1142_v8, 0.0  ;;  %v5299_v13 = vpop.f32.mrb[42].mxu1 }
 0x1e7   : > { %v1157_v14 = vadd.f32 %v5299_v13, %v6762_v25  ;;  %v1151_v16 = vpop.f32.mrb[43].mxu1 }
 0x1e8   : > { %5422 = vmatprep.mubr.f32.mxu0 %v1428_v11  ;;  %v1152_v19 = vadd.f32 %v6762_v25, %v1151_v16 }
 0x1e9   : > { %5423 = vmatmul.mubr.f32.gmra.mrb[40].mxu0 %v1429_v9  ;;  %v1431_v21 = vmax.f32 %v1157_v14, 0.0 }
 0x1ea   : > { %v1430_v22 = vmax.f32 %v1152_v19, 0.0  ;;  %v5302_v23 = vpop.f32.mrb[44].mxu1 }
 0x1eb   : > { %v1167_v24 = vadd.f32 %v5302_v23, %v6762_v25  ;;  %v1161_v27 = vpop.f32.mrb[45].mxu1 }
 0x1ec   : > { %5425 = vmatprep.mubr.f32.mxu0 %v1430_v22  ;;  %v1162_v58 = vadd.f32 %v6762_v25, %v1161_v27 }
 0x1ed   : > { %5426 = vmatmul.mubr.f32.gmra.mrb[42].mxu0 %v1431_v21  ;;  %v1433_v1 = vmax.f32 %v1167_v24, 0.0 }
 0x1ee   : > { %v1432_v2 = vmax.f32 %v1162_v58, 0.0  ;;  %v5305_v10 = vpop.f32.mrb[46].mxu1 }
 0x1ef   : > { %v1177_v12 = vadd.f32 %v5305_v10, %v6762_v25  ;;  %v1171_v18 = vpop.f32.mrb[47].mxu1 }
 0x1f0   : > { %5428 = vmatprep.mubr.f32.mxu0 %v1432_v2  ;;  %v1172_v20 = vadd.f32 %v6762_v25, %v1171_v18 }
 0x1f1   : > { %5429 = vmatmul.mubr.f32.gmra.mrb[44].mxu0 %v1433_v1  ;;  %v1435_v26 = vmax.f32 %v1177_v12, 0.0 }
 0x1f2   : > { %v1434_v28 = vmax.f32 %v1172_v20, 0.0  ;;  %v5308_v34 = vpop.f32.mrb[48].mxu1 }
 0x1f3   : > { %v1187_v36 = vadd.f32 %v5308_v34, %v6762_v25  ;;  %v1181_v42 = vpop.f32.mrb[49].mxu1 }
 0x1f4   : > { %5431 = vmatprep.mubr.f32.mxu0 %v1434_v28  ;;  %v1182_v44 = vadd.f32 %v6762_v25, %v1181_v42 }
 0x1f5   : > { %5432 = vmatmul.mubr.f32.gmra.mrb[46].mxu0 %v1435_v26  ;;  %v1437_v50 = vmax.f32 %v1187_v36, 0.0 }
 0x1f6   : > { %v1436_v52 = vmax.f32 %v1182_v44, 0.0  ;;  %v5311_v59 = vpop.f32.mrb[50].mxu1 }
 0x1f7   : > { %v1197_v61 = vadd.f32 %v5311_v59, %v6762_v25  ;;  %v1191_v5 = vpop.f32.mrb[51].mxu1 }
 0x1f8   : > { %5434 = vmatprep.mubr.f32.mxu0 %v1436_v52  ;;  %v1192_v7 = vadd.f32 %v6762_v25, %v1191_v5 }
 0x1f9   : > { %5435 = vmatmul.mubr.f32.gmra.mrb[48].mxu0 %v1437_v50  ;;  %v1439_v15 = vmax.f32 %v1197_v61, 0.0 }
 0x1fa   : > { %v1438_v17 = vmax.f32 %v1192_v7, 0.0  ;;  %v5314_v29 = vpop.f32.mrb[52].mxu1 }
 0x1fb   : > { %v1207_v30 = vadd.f32 %v5314_v29, %v6762_v25  ;;  %v1201_v31 = vpop.f32.mrb[53].mxu1 }
 0x1fc   : > { %5437 = vmatprep.mubr.f32.mxu0 %v1438_v17  ;;  %v1202_v32 = vadd.f32 %v6762_v25, %v1201_v31 }
 0x1fd   : > { %5438 = vmatmul.mubr.f32.gmra.mrb[50].mxu0 %v1439_v15  ;;  %v1441_v33 = vmax.f32 %v1207_v30, 0.0 }
 0x1fe   : > { %v1440_v35 = vmax.f32 %v1202_v32, 0.0  ;;  %v5317_v37 = vpop.f32.mrb[54].mxu1 }
 0x1ff   : > { %v1217_v38 = vadd.f32 %v5317_v37, %v6762_v25  ;;  %v1211_v39 = vpop.f32.mrb[55].mxu1 }
 0x200   : > { %5440 = vmatprep.mubr.f32.mxu0 %v1440_v35  ;;  %v1212_v40 = vadd.f32 %v6762_v25, %v1211_v39 }
 0x201   : > { %5441 = vmatmul.mubr.f32.gmra.mrb[52].mxu0 %v1441_v33  ;;  %v1443_v41 = vmax.f32 %v1217_v38, 0.0 }
 0x202   : > { %v1442_v43 = vmax.f32 %v1212_v40, 0.0  ;;  %v5320_v45 = vpop.f32.mrb[56].mxu1 }
 0x203   : > { %v1227_v46 = vadd.f32 %v5320_v45, %v6762_v25  ;;  %v1221_v47 = vpop.f32.mrb[57].mxu1 }
 0x204   : > { %5443 = vmatprep.mubr.f32.mxu0 %v1442_v43  ;;  %v1222_v48 = vadd.f32 %v6762_v25, %v1221_v47 }
 0x205   : > { %5444 = vmatmul.mubr.f32.gmra.mrb[54].mxu0 %v1443_v41  ;;  %v1445_v49 = vmax.f32 %v1227_v46, 0.0 }
 0x206   : > { %v1444_v51 = vmax.f32 %v1222_v48, 0.0  ;;  %v5323_v53 = vpop.f32.mrb[58].mxu1 }
 0x207   : > { %v1237_v54 = vadd.f32 %v5323_v53, %v6762_v25  ;;  %v1231_v55 = vpop.f32.mrb[59].mxu1 }
 0x208   : > { %5446 = vmatprep.mubr.f32.mxu0 %v1444_v51  ;;  %v1232_v56 = vadd.f32 %v6762_v25, %v1231_v55 }
 0x209   : > { %5447 = vmatmul.mubr.f32.gmra.mrb[56].mxu0 %v1445_v49  ;;  %v1447_v57 = vmax.f32 %v1237_v54, 0.0 }
 0x20a   : > { %v1446_v60 = vmax.f32 %v1232_v56, 0.0  ;;  %v5326_v62 = vpop.f32.mrb[60].mxu1 }
 0x20b   : > { %v1247_v63 = vadd.f32 %v5326_v62, %v6762_v25  ;;  %v1241_v0 = vpop.f32.mrb[61].mxu1 }
 0x20c   : > { %5449 = vmatprep.mubr.f32.mxu0 %v1446_v60  ;;  %v1242_v3 = vadd.f32 %v6762_v25, %v1241_v0 }
 0x20d   : > { %5450 = vmatmul.mubr.f32.gmra.mrb[58].mxu0 %v1447_v57  ;;  %v1449_v4 = vmax.f32 %v1247_v63, 0.0 }
 0x20e   : > { %v1448_v6 = vmax.f32 %v1242_v3, 0.0  ;;  %v5329_v8 = vpop.f32.mrb[62].mxu1 }
 0x20f   : > { %v1257_v9 = vadd.f32 %v5329_v8, %v6762_v25  ;;  %v1251_v11 = vpop.f32.mrb[63].mxu1 }
 0x210   : > { %5452 = vmatprep.mubr.f32.mxu0 %v1448_v6  ;;  %v1252_v13 = vadd.f32 %v6762_v25, %v1251_v11 }
 0x211   : > { %5453 = vmatmul.mubr.f32.gmra.mrb[60].mxu0 %v1449_v4  ;;  %v1451_v14 = vmax.f32 %v1257_v9, 0.0 }
 0x212   : > { %v1450_v16 = vmax.f32 %v1252_v13, 0.0  ;;  %v5332_v19 = vpop.f32.mrb[64].mxu1 }
 0x213   : > { %v1267_v21 = vadd.f32 %v5332_v19, %v6762_v25  ;;  %v1261_v22 = vpop.f32.mrb[65].mxu1 }
 0x214   : > { %5455 = vmatprep.mubr.f32.mxu0 %v1450_v16  ;;  %v1262_v23 = vadd.f32 %v6762_v25, %v1261_v22 }
 0x215   : > { %5456 = vmatmul.mubr.f32.gmra.mrb[62].mxu0 %v1451_v14  ;;  %v1453_v24 = vmax.f32 %v1267_v21, 0.0 }
 0x216   : > { %v1452_v27 = vmax.f32 %v1262_v23, 0.0  ;;  %v5335_v58 = vpop.f32.mrb[66].mxu1 }
 0x217   : > { %v1277_v1 = vadd.f32 %v5335_v58, %v6762_v25  ;;  %v1271_v2 = vpop.f32.mrb[67].mxu1 }
 0x218   : > { %5458 = vmatprep.mubr.f32.mxu0 %v1452_v27  ;;  %v1272_v10 = vadd.f32 %v6762_v25, %v1271_v2 }
 0x219   : > { %5459 = vmatmul.mubr.f32.gmra.mrb[64].mxu0 %v1453_v24  ;;  %v1455_v12 = vmax.f32 %v1277_v1, 0.0 }
 0x21a   : > { %v1454_v18 = vmax.f32 %v1272_v10, 0.0  ;;  %v5338_v20 = vpop.f32.mrb[68].mxu1 }
 0x21b   : > { %v1287_v26 = vadd.f32 %v5338_v20, %v6762_v25  ;;  %v1281_v28 = vpop.f32.mrb[69].mxu1 }
 0x21c   : > { %5461 = vmatprep.mubr.f32.mxu0 %v1454_v18  ;;  %v1282_v34 = vadd.f32 %v6762_v25, %v1281_v28 }
 0x21d   : > { %5462 = vmatmul.mubr.f32.gmra.mrb[66].mxu0 %v1455_v12  ;;  %v1457_v36 = vmax.f32 %v1287_v26, 0.0 }
 0x21e   : > { %v1456_v42 = vmax.f32 %v1282_v34, 0.0  ;;  %v5341_v44 = vpop.f32.mrb[70].mxu1 }
 0x21f   : > { %v1297_v50 = vadd.f32 %v5341_v44, %v6762_v25  ;;  %v1291_v52 = vpop.f32.mrb[71].mxu1 }
 0x220   : > { %5464 = vmatprep.mubr.f32.mxu0 %v1456_v42  ;;  %v1292_v59 = vadd.f32 %v6762_v25, %v1291_v52 }
 0x221   : > { %5465 = vmatmul.mubr.f32.gmra.mrb[68].mxu0 %v1457_v36  ;;  %v1459_v61 = vmax.f32 %v1297_v50, 0.0 }
 0x222   : > { %v1458_v5 = vmax.f32 %v1292_v59, 0.0  ;;  %v5344_v7 = vpop.f32.mrb[72].mxu1 }
 0x223   : > { %v1307_v15 = vadd.f32 %v5344_v7, %v6762_v25  ;;  %v1301_v17 = vpop.f32.mrb[73].mxu1 }
 0x224   : > { %5467 = vmatprep.mubr.f32.mxu0 %v1458_v5  ;;  %v1302_v29 = vadd.f32 %v6762_v25, %v1301_v17 }
 0x225   : > { %5468 = vmatmul.mubr.f32.gmra.mrb[70].mxu0 %v1459_v61  ;;  %v1461_v30 = vmax.f32 %v1307_v15, 0.0 }
 0x226   : > { %v1460_v31 = vmax.f32 %v1302_v29, 0.0  ;;  %v5347_v32 = vpop.f32.mrb[74].mxu1 }
 0x227   : > { %v1317_v33 = vadd.f32 %v5347_v32, %v6762_v25  ;;  %v1311_v35 = vpop.f32.mrb[75].mxu1 }
 0x228   : > { %5470 = vmatprep.mubr.f32.mxu0 %v1460_v31  ;;  %v1312_v37 = vadd.f32 %v6762_v25, %v1311_v35 }
 0x229   : > { %5471 = vmatmul.mubr.f32.gmra.mrb[72].mxu0 %v1461_v30  ;;  %v1463_v38 = vmax.f32 %v1317_v33, 0.0 }
 0x22a   : > { %v1462_v39 = vmax.f32 %v1312_v37, 0.0  ;;  %v5350_v40 = vpop.f32.mrb[76].mxu1  ;;  %v2424_v37 = vld [vmem:[%s8528_s5] sm:$0xff] }
 0x22b   : > { %v1327_v41 = vadd.f32 %v5350_v40, %v6762_v25  ;;  %v1321_v43 = vpop.f32.mrb[77].mxu1  ;;  %v2427_v40 = vld [vmem:[%s8528_s5 + $0x18] sm:$0xff] }
 0x22c   : > { %5473 = vmatprep.mubr.f32.mxu0 %v1462_v39  ;;  %v1322_v45 = vadd.f32 %v6762_v25, %v1321_v43  ;;  %v2428_v43 = vld [vmem:[%s8528_s5 + $0x20] sm:$0xff] }
 0x22d   : > { %5474 = vmatmul.mubr.f32.gmra.mrb[74].mxu0 %v1463_v38  ;;  %v1465_v46 = vmax.f32 %v1327_v41, 0.0  ;;  %v2425_v38 = vld [vmem:[%s8528_s5 + $0x8] sm:$0xff] }
 0x22e   : > { %v1464_v47 = vmax.f32 %v1322_v45, 0.0  ;;  %v5353_v48 = vpop.f32.mrb[78].mxu1  ;;  %v5874_v39 = vpack.c.bf16 %v2425_v38, %v2424_v37  ;;  %v2429_v45 = vld [vmem:[%s8528_s5 + $0x28] sm:$0xff] }
 0x22f   : > { %v1337_v49 = vadd.f32 %v5353_v48, %v6762_v25  ;;  %v1331_v51 = vpop.f32.mrb[79].mxu1  ;;  %v2431_v48 = vld [vmem:[%s8528_s5 + $0x38] sm:$0xff] }
 0x230   : > { %v1332_v53 = vadd.f32 %v6762_v25, %v1331_v51  ;;  %5476 = vmatprep.mubr.f32.mxu0 %v1464_v47  ;;  %5875 = vmatprep.subr.bf16.mxu0 %v5874_v39  ;;  %v2430_v47 = vld [vmem:[%s8528_s5 + $0x30] sm:$0xff]  ;;  %v2432_v51 = vld [vmem:[%s8528_s5 + $0x40] sm:$0xff] }
 0x231   : > { %v1467_v54 = vmax.f32 %v1337_v49, 0.0  ;;  %5477 = vmatmul.mubr.f32.gmra.mrb[76].mxu0 %v1465_v46  ;;  %v5882_v46 = vpack.c.bf16 %v2429_v45, %v2428_v43  ;;  %v5886_v49 = vpack.c.bf16 %v2431_v48, %v2430_v47 }
 0x232   : > { %v1466_v55 = vmax.f32 %v1332_v53, 0.0  ;;  %v5356_v56 = vpop.f32.mrb[80].mxu1  ;;  %5877 = vmatpush3.bf16.msra.mxu0 %v5874_v39  ;;  %v2433_v53 = vld [vmem:[%s8528_s5 + $0x48] sm:$0xff] }
 0x233   : > { %v1347_v57 = vadd.f32 %v5356_v56, %v6762_v25  ;;  %v1341_v60 = vpop.f32.mrb[81].mxu1  ;;  %v2435_v56 = vld [vmem:[%s8528_s5 + $0x58] sm:$0xff] }
 0x234   : > { %v1342_v62 = vadd.f32 %v6762_v25, %v1341_v60  ;;  %5479 = vmatprep.mubr.f32.mxu0 %v1466_v55  ;;  %v2434_v55 = vld [vmem:[%s8528_s5 + $0x50] sm:$0xff]  ;;  %v2436_v60 = vld [vmem:[%s8528_s5 + $0x60] sm:$0xff] }
 0x235   : > { %v1469_v63 = vmax.f32 %v1347_v57, 0.0  ;;  %5480 = vmatmul.mubr.f32.gmra.mrb[78].mxu0 %v1467_v54  ;;  %v5890_v54 = vpack.c.bf16 %v2433_v53, %v2432_v51  ;;  %v5894_v57 = vpack.c.bf16 %v2435_v56, %v2434_v55 }
 0x236   : > { %v1468_v0 = vmax.f32 %v1342_v62, 0.0  ;;  %v5359_v3 = vpop.f32.mrb[82].mxu1  ;;  %v2437_v62 = vld [vmem:[%s8528_s5 + $0x68] sm:$0xff] }
 0x237   : > { %v1357_v4 = vadd.f32 %v5359_v3, %v6762_v25  ;;  %v1351_v6 = vpop.f32.mrb[83].mxu1 }
 0x238   : > { %v1352_v8 = vadd.f32 %v6762_v25, %v1351_v6  ;;  %5482 = vmatprep.mubr.f32.mxu0 %v1468_v0  ;;  %v6879_v0 = vld [vmem:[%s8531_s8 + $0x2] ss:$0 sm:$0xff]  ;;  %v2439_v6 = vld [vmem:[%s8528_s5 + $0x78] sm:$0xff] }
 0x239   : > { %v1471_v9 = vmax.f32 %v1357_v4, 0.0  ;;  %5483 = vmatmul.mubr.f32.gmra.mrb[80].mxu0 %v1469_v63  ;;  %v5898_v63 = vpack.c.bf16 %v2437_v62, %v2436_v60  ;;  %v2438_v4 = vld [vmem:[%s8528_s5 + $0x70] sm:$0xff] }
 0x23a   : > { %v1470_v11 = vmax.f32 %v1352_v8, 0.0  ;;  %v5362_v13 = vpop.f32.mrb[84].mxu1 }
 0x23b   : > { %v1367_v14 = vadd.f32 %v5362_v13, %v6762_v25  ;;  %v1361_v16 = vpop.f32.mrb[85].mxu1 }
 0x23c   : > { %v1362_v19 = vadd.f32 %v6762_v25, %v1361_v16  ;;  %5485 = vmatprep.mubr.f32.mxu0 %v1470_v11  ;;  %v5902_v11 = vpack.c.bf16 %v2439_v6, %v2438_v4 }
 0x23d   : > { %v1473_v21 = vmax.f32 %v1367_v14, 0.0  ;;  %5486 = vmatmul.mubr.f32.gmra.mrb[82].mxu0 %v1471_v9 }
 0x23e   : > { %v1472_v22 = vmax.f32 %v1362_v19, 0.0  ;;  %v5365_v23 = vpop.f32.mrb[86].mxu1 }
 0x23f   : > { %v1377_v24 = vadd.f32 %v5365_v23, %v6762_v25  ;;  %v1371_v27 = vpop.f32.mrb[87].mxu1 }
 0x240   : > { %v1372_v58 = vadd.f32 %v6762_v25, %v1371_v27  ;;  %5488 = vmatprep.mubr.f32.mxu0 %v1472_v22 }
 0x241   : > { %v1475_v1 = vmax.f32 %v1377_v24, 0.0  ;;  %5489 = vmatmul.mubr.f32.gmra.mrb[84].mxu0 %v1473_v21 }
 0x242   : > { %v1474_v2 = vmax.f32 %v1372_v58, 0.0  ;;  %v5368_v10 = vpop.f32.mrb[88].mxu1 }
 0x243   : > { %v1387_v12 = vadd.f32 %v5368_v10, %v6762_v25  ;;  %v1381_v18 = vpop.f32.mrb[89].mxu1 }
 0x244   : > { %v1382_v20 = vadd.f32 %v6762_v25, %v1381_v18  ;;  %5491 = vmatprep.mubr.f32.mxu0 %v1474_v2 }
 0x245   : > { %v1477_v26 = vmax.f32 %v1387_v12, 0.0  ;;  %5492 = vmatmul.mubr.f32.gmra.mrb[86].mxu0 %v1475_v1 }
 0x246   : > { %v1476_v28 = vmax.f32 %v1382_v20, 0.0  ;;  %v5371_v34 = vpop.f32.mrb[90].mxu1 }
 0x247   : > { %v1397_v36 = vadd.f32 %v5371_v34, %v6762_v25  ;;  %v1391_v42 = vpop.f32.mrb[91].mxu1 }
 0x248   : > { %v1392_v44 = vadd.f32 %v6762_v25, %v1391_v42  ;;  %5494 = vmatprep.mubr.f32.mxu0 %v1476_v28 }
 0x249   : > { %v1479_v50 = vmax.f32 %v1397_v36, 0.0  ;;  %5495 = vmatmul.mubr.f32.gmra.mrb[88].mxu0 %v1477_v26 }
 0x24a   : > { %v1478_v52 = vmax.f32 %v1392_v44, 0.0  ;;  %v5374_v59 = vpop.f32.mrb[92].mxu1 }
 0x24b   : > { %v1407_v61 = vadd.f32 %v5374_v59, %v6762_v25  ;;  %v1401_v5 = vpop.f32.mrb[93].mxu1 }
 0x24c   : > { %v1402_v7 = vadd.f32 %v6762_v25, %v1401_v5  ;;  %5497 = vmatprep.mubr.f32.mxu0 %v1478_v52 }
 0x24d   : > { %v1481_v15 = vmax.f32 %v1407_v61, 0.0  ;;  %5498 = vmatmul.mubr.f32.gmra.mrb[90].mxu0 %v1479_v50 }
 0x24e   : > { %v1480_v17 = vmax.f32 %v1402_v7, 0.0  ;;  %v5377_v29 = vpop.f32.mrb[94].mxu1 }
 0x24f   : > { %v1417_v30 = vadd.f32 %v5377_v29, %v6762_v25  ;;  %v1411_v31 = vpop.f32.mrb[95].mxu1 }
 0x250   : > { %v1412_v32 = vadd.f32 %v6762_v25, %v1411_v31  ;;  %5500 = vmatprep.mubr.f32.mxu0 %v1480_v17  ;;  %v2426_v25 = vld [vmem:[%s8528_s5 + $0x10] sm:$0xff] }
 0x251   : > { %v1483_v33 = vmax.f32 %v1417_v30, 0.0  ;;  %5501 = vmatmul.mubr.f32.gmra.mrb[92].mxu0 %v1481_v15  ;;  %v5878_v41 = vpack.c.bf16 %v2427_v40, %v2426_v25 }
 0x252   : > { %v1482_v35 = vmax.f32 %v1412_v32, 0.0 }
 0x253   : > { %5879 = vmatprep.subr.bf16.mxu0 %v5878_v41 }
 0x254   : > { %5503 = vmatprep.mubr.f32.mxu0 %v1482_v35  ;;  %5881 = vmatpush3.bf16.msra.mxu0 %v5878_v41 }
 0x255   : > { %5504 = vmatmul.mubr.f32.gmra.mrb[94].mxu0 %v1483_v33  ;;  %5883 = vmatprep.subr.bf16.mxu0 %v5882_v46 }
 0x258   : > { %5885 = vmatpush3.bf16.msra.mxu0 %v5882_v46 }
 0x259   : > { %5887 = vmatprep.subr.bf16.mxu0 %v5886_v49 }
 0x25c   : > { %5889 = vmatpush3.bf16.msra.mxu0 %v5886_v49 }
 0x25d   : > { %5891 = vmatprep.subr.bf16.mxu0 %v5890_v54 }
 0x260   : > { %5893 = vmatpush3.bf16.msra.mxu0 %v5890_v54 }
 0x261   : > { %5895 = vmatprep.subr.bf16.mxu0 %v5894_v57 }
 0x264   : > { %5897 = vmatpush3.bf16.msra.mxu0 %v5894_v57 }
 0x265   : > { %5899 = vmatprep.subr.bf16.mxu0 %v5898_v63 }
 0x268   : > { %5901 = vmatpush3.bf16.msra.mxu0 %v5898_v63 }
 0x269   : > { %5903 = vmatprep.subr.bf16.mxu0 %v5902_v11 }
 0x26c   : > { %5905 = vmatpush3.bf16.msra.mxu0 %v5902_v11 }
 0x2ac   : > { %v5412_v3 = vpop.f32.mrb[32].mxu0 }
 0x2ad   : > { %v1577_v8 = vadd.f32 %v5412_v3, %v6879_v0  ;;  %v1571_v9 = vpop.f32.mrb[33].mxu0 }
 0x2ae   : > { %v1572_v13 = vadd.f32 %v6879_v0, %v1571_v9 }
 0x2af   : > { %v1891_v19 = vmax.f32 %v1577_v8, 0.0 }
 0x2b0   : > { %v1890_v14 = vmax.f32 %v1572_v13, 0.0  ;;  %v5415_v16 = vpop.f32.mrb[34].mxu0 }
 0x2b1   : > { %v1587_v21 = vadd.f32 %v5415_v16, %v6879_v0  ;;  %v1581_v22 = vpop.f32.mrb[35].mxu0 }
 0x2b2   : > { %v1582_v23 = vadd.f32 %v6879_v0, %v1581_v22  ;;  %5538 = vmatprep.mubr.f32.mxu1 %v1890_v14 }
 0x2b3   : > { %5539 = vmatmul.mubr.f32.vlgmr.msra.gmra.mrb[96].mxu1 %v1891_v19  ;;  %v1893_v58 = vmax.f32 %v1587_v21, 0.0 }
 0x2b4   : > { %v1892_v24 = vmax.f32 %v1582_v23, 0.0  ;;  %v5418_v27 = vpop.f32.mrb[36].mxu0 }
 0x2b5   : > { %v1597_v1 = vadd.f32 %v5418_v27, %v6879_v0  ;;  %v1591_v2 = vpop.f32.mrb[37].mxu0 }
 0x2b6   : > { %v1592_v10 = vadd.f32 %v6879_v0, %v1591_v2  ;;  %5541 = vmatprep.mubr.f32.mxu1 %v1892_v24 }
 0x2b7   : > { %v1895_v12 = vmax.f32 %v1597_v1, 0.0  ;;  %5542 = vmatmul.mubr.f32.gmra.mrb[98].mxu1 %v1893_v58 }
 0x2b8   : > { %v1894_v18 = vmax.f32 %v1592_v10, 0.0  ;;  %v5421_v20 = vpop.f32.mrb[38].mxu0 }
 0x2b9   : > { %v1607_v26 = vadd.f32 %v5421_v20, %v6879_v0  ;;  %v1601_v28 = vpop.f32.mrb[39].mxu0 }
 0x2ba   : > { %5544 = vmatprep.mubr.f32.mxu1 %v1894_v18  ;;  %v1602_v34 = vadd.f32 %v6879_v0, %v1601_v28 }
 0x2bb   : > { %v1897_v36 = vmax.f32 %v1607_v26, 0.0  ;;  %5545 = vmatmul.mubr.f32.gmra.mrb[100].mxu1 %v1895_v12 }
 0x2bc   : > { %v1896_v42 = vmax.f32 %v1602_v34, 0.0  ;;  %v5424_v44 = vpop.f32.mrb[40].mxu0 }
 0x2bd   : > { %v1617_v50 = vadd.f32 %v5424_v44, %v6879_v0  ;;  %v1611_v52 = vpop.f32.mrb[41].mxu0 }
 0x2be   : > { %5547 = vmatprep.mubr.f32.mxu1 %v1896_v42  ;;  %v1612_v59 = vadd.f32 %v6879_v0, %v1611_v52 }
 0x2bf   : > { %5548 = vmatmul.mubr.f32.gmra.mrb[102].mxu1 %v1897_v36  ;;  %v1899_v61 = vmax.f32 %v1617_v50, 0.0 }
 0x2c0   : > { %v1898_v5 = vmax.f32 %v1612_v59, 0.0  ;;  %v5427_v7 = vpop.f32.mrb[42].mxu0 }
 0x2c1   : > { %v1627_v15 = vadd.f32 %v5427_v7, %v6879_v0  ;;  %v1621_v17 = vpop.f32.mrb[43].mxu0 }
 0x2c2   : > { %5550 = vmatprep.mubr.f32.mxu1 %v1898_v5  ;;  %v1622_v29 = vadd.f32 %v6879_v0, %v1621_v17 }
 0x2c3   : > { %5551 = vmatmul.mubr.f32.gmra.mrb[104].mxu1 %v1899_v61  ;;  %v1901_v30 = vmax.f32 %v1627_v15, 0.0 }
 0x2c4   : > { %v1900_v31 = vmax.f32 %v1622_v29, 0.0  ;;  %v5430_v32 = vpop.f32.mrb[44].mxu0 }
 0x2c5   : > { %v1637_v33 = vadd.f32 %v5430_v32, %v6879_v0  ;;  %v1631_v35 = vpop.f32.mrb[45].mxu0 }
 0x2c6   : > { %5553 = vmatprep.mubr.f32.mxu1 %v1900_v31  ;;  %v1632_v37 = vadd.f32 %v6879_v0, %v1631_v35 }
 0x2c7   : > { %5554 = vmatmul.mubr.f32.gmra.mrb[106].mxu1 %v1901_v30  ;;  %v1903_v38 = vmax.f32 %v1637_v33, 0.0 }
 0x2c8   : > { %v1902_v39 = vmax.f32 %v1632_v37, 0.0  ;;  %v5433_v25 = vpop.f32.mrb[46].mxu0 }
 0x2c9   : > { %v1647_v40 = vadd.f32 %v5433_v25, %v6879_v0  ;;  %v1641_v41 = vpop.f32.mrb[47].mxu0 }
 0x2ca   : > { %5556 = vmatprep.mubr.f32.mxu1 %v1902_v39  ;;  %v1642_v43 = vadd.f32 %v6879_v0, %v1641_v41 }
 0x2cb   : > { %5557 = vmatmul.mubr.f32.gmra.mrb[108].mxu1 %v1903_v38  ;;  %v1905_v45 = vmax.f32 %v1647_v40, 0.0 }
 0x2cc   : > { %v1904_v46 = vmax.f32 %v1642_v43, 0.0  ;;  %v5436_v47 = vpop.f32.mrb[48].mxu0 }
 0x2cd   : > { %v1657_v48 = vadd.f32 %v5436_v47, %v6879_v0  ;;  %v1651_v49 = vpop.f32.mrb[49].mxu0 }
 0x2ce   : > { %5559 = vmatprep.mubr.f32.mxu1 %v1904_v46  ;;  %v1652_v51 = vadd.f32 %v6879_v0, %v1651_v49 }
 0x2cf   : > { %5560 = vmatmul.mubr.f32.gmra.mrb[110].mxu1 %v1905_v45  ;;  %v1907_v53 = vmax.f32 %v1657_v48, 0.0 }
 0x2d0   : > { %v1906_v54 = vmax.f32 %v1652_v51, 0.0  ;;  %v5439_v55 = vpop.f32.mrb[50].mxu0 }
 0x2d1   : > { %v1667_v56 = vadd.f32 %v5439_v55, %v6879_v0  ;;  %v1661_v57 = vpop.f32.mrb[51].mxu0 }
 0x2d2   : > { %5562 = vmatprep.mubr.f32.mxu1 %v1906_v54  ;;  %v1662_v60 = vadd.f32 %v6879_v0, %v1661_v57 }
 0x2d3   : > { %5563 = vmatmul.mubr.f32.gmra.mrb[112].mxu1 %v1907_v53  ;;  %v1909_v62 = vmax.f32 %v1667_v56, 0.0 }
 0x2d4   : > { %v1908_v63 = vmax.f32 %v1662_v60, 0.0  ;;  %v5442_v3 = vpop.f32.mrb[52].mxu0 }
 0x2d5   : > { %v1677_v4 = vadd.f32 %v5442_v3, %v6879_v0  ;;  %v1671_v6 = vpop.f32.mrb[53].mxu0 }
 0x2d6   : > { %5565 = vmatprep.mubr.f32.mxu1 %v1908_v63  ;;  %v1672_v8 = vadd.f32 %v6879_v0, %v1671_v6 }
 0x2d7   : > { %5566 = vmatmul.mubr.f32.gmra.mrb[114].mxu1 %v1909_v62  ;;  %v1911_v9 = vmax.f32 %v1677_v4, 0.0 }
 0x2d8   : > { %v1910_v11 = vmax.f32 %v1672_v8, 0.0  ;;  %v5445_v13 = vpop.f32.mrb[54].mxu0 }
 0x2d9   : > { %v1687_v14 = vadd.f32 %v5445_v13, %v6879_v0  ;;  %v1681_v16 = vpop.f32.mrb[55].mxu0 }
 0x2da   : > { %5568 = vmatprep.mubr.f32.mxu1 %v1910_v11  ;;  %v1682_v19 = vadd.f32 %v6879_v0, %v1681_v16 }
 0x2db   : > { %5569 = vmatmul.mubr.f32.gmra.mrb[116].mxu1 %v1911_v9  ;;  %v1913_v21 = vmax.f32 %v1687_v14, 0.0 }
 0x2dc   : > { %v1912_v22 = vmax.f32 %v1682_v19, 0.0  ;;  %v5448_v23 = vpop.f32.mrb[56].mxu0 }
 0x2dd   : > { %v1697_v24 = vadd.f32 %v5448_v23, %v6879_v0  ;;  %v1691_v27 = vpop.f32.mrb[57].mxu0 }
 0x2de   : > { %5571 = vmatprep.mubr.f32.mxu1 %v1912_v22  ;;  %v1692_v58 = vadd.f32 %v6879_v0, %v1691_v27 }
 0x2df   : > { %5572 = vmatmul.mubr.f32.gmra.mrb[118].mxu1 %v1913_v21  ;;  %v1915_v1 = vmax.f32 %v1697_v24, 0.0 }
 0x2e0   : > { %v1914_v2 = vmax.f32 %v1692_v58, 0.0  ;;  %v5451_v10 = vpop.f32.mrb[58].mxu0 }
 0x2e1   : > { %v1707_v12 = vadd.f32 %v5451_v10, %v6879_v0  ;;  %v1701_v18 = vpop.f32.mrb[59].mxu0 }
 0x2e2   : > { %5574 = vmatprep.mubr.f32.mxu1 %v1914_v2  ;;  %v1702_v20 = vadd.f32 %v6879_v0, %v1701_v18 }
 0x2e3   : > { %5575 = vmatmul.mubr.f32.gmra.mrb[120].mxu1 %v1915_v1  ;;  %v1917_v26 = vmax.f32 %v1707_v12, 0.0 }
 0x2e4   : > { %v1916_v28 = vmax.f32 %v1702_v20, 0.0  ;;  %v5454_v34 = vpop.f32.mrb[60].mxu0 }
 0x2e5   : > { %v1717_v36 = vadd.f32 %v5454_v34, %v6879_v0  ;;  %v1711_v42 = vpop.f32.mrb[61].mxu0 }
 0x2e6   : > { %5577 = vmatprep.mubr.f32.mxu1 %v1916_v28  ;;  %v1712_v44 = vadd.f32 %v6879_v0, %v1711_v42 }
 0x2e7   : > { %5578 = vmatmul.mubr.f32.gmra.mrb[122].mxu1 %v1917_v26  ;;  %v1919_v50 = vmax.f32 %v1717_v36, 0.0 }
 0x2e8   : > { %v1918_v52 = vmax.f32 %v1712_v44, 0.0  ;;  %v5457_v59 = vpop.f32.mrb[62].mxu0 }
 0x2e9   : > { %v1727_v61 = vadd.f32 %v5457_v59, %v6879_v0  ;;  %v1721_v5 = vpop.f32.mrb[63].mxu0 }
 0x2ea   : > { %5580 = vmatprep.mubr.f32.mxu1 %v1918_v52  ;;  %v1722_v7 = vadd.f32 %v6879_v0, %v1721_v5 }
 0x2eb   : > { %5581 = vmatmul.mubr.f32.gmra.mrb[124].mxu1 %v1919_v50  ;;  %v1921_v15 = vmax.f32 %v1727_v61, 0.0 }
 0x2ec   : > { %v1920_v17 = vmax.f32 %v1722_v7, 0.0  ;;  %v5460_v29 = vpop.f32.mrb[64].mxu0 }
 0x2ed   : > { %v1737_v30 = vadd.f32 %v5460_v29, %v6879_v0  ;;  %v1731_v31 = vpop.f32.mrb[65].mxu0 }
 0x2ee   : > { %5583 = vmatprep.mubr.f32.mxu1 %v1920_v17  ;;  %v1732_v32 = vadd.f32 %v6879_v0, %v1731_v31 }
 0x2ef   : > { %5584 = vmatmul.mubr.f32.gmra.mrb[126].mxu1 %v1921_v15  ;;  %v1923_v33 = vmax.f32 %v1737_v30, 0.0 }
 0x2f0   : > { %v1922_v35 = vmax.f32 %v1732_v32, 0.0  ;;  %v5463_v37 = vpop.f32.mrb[66].mxu0 }
 0x2f1   : > { %v1747_v38 = vadd.f32 %v5463_v37, %v6879_v0  ;;  %v1741_v39 = vpop.f32.mrb[67].mxu0 }
 0x2f2   : > { %5586 = vmatprep.mubr.f32.mxu1 %v1922_v35  ;;  %v1742_v25 = vadd.f32 %v6879_v0, %v1741_v39 }
 0x2f3   : > { %5587 = vmatmul.mubr.f32.gmra.mrb[128].mxu1 %v1923_v33  ;;  %v1925_v40 = vmax.f32 %v1747_v38, 0.0 }
 0x2f4   : > { %v1924_v41 = vmax.f32 %v1742_v25, 0.0  ;;  %v5466_v43 = vpop.f32.mrb[68].mxu0 }
 0x2f5   : > { %v1757_v45 = vadd.f32 %v5466_v43, %v6879_v0  ;;  %v1751_v46 = vpop.f32.mrb[69].mxu0 }
 0x2f6   : > { %5589 = vmatprep.mubr.f32.mxu1 %v1924_v41  ;;  %v1752_v47 = vadd.f32 %v6879_v0, %v1751_v46 }
 0x2f7   : > { %5590 = vmatmul.mubr.f32.gmra.mrb[130].mxu1 %v1925_v40  ;;  %v1927_v48 = vmax.f32 %v1757_v45, 0.0 }
 0x2f8   : > { %v1926_v49 = vmax.f32 %v1752_v47, 0.0  ;;  %v5469_v51 = vpop.f32.mrb[70].mxu0 }
 0x2f9   : > { %v1767_v53 = vadd.f32 %v5469_v51, %v6879_v0  ;;  %v1761_v54 = vpop.f32.mrb[71].mxu0 }
 0x2fa   : > { %5592 = vmatprep.mubr.f32.mxu1 %v1926_v49  ;;  %v1762_v55 = vadd.f32 %v6879_v0, %v1761_v54 }
 0x2fb   : > { %5593 = vmatmul.mubr.f32.gmra.mrb[132].mxu1 %v1927_v48  ;;  %v1929_v56 = vmax.f32 %v1767_v53, 0.0 }
 0x2fc   : > { %v1928_v57 = vmax.f32 %v1762_v55, 0.0  ;;  %v5472_v60 = vpop.f32.mrb[72].mxu0 }
 0x2fd   : > { %v1777_v62 = vadd.f32 %v5472_v60, %v6879_v0  ;;  %v1771_v63 = vpop.f32.mrb[73].mxu0 }
 0x2fe   : > { %5595 = vmatprep.mubr.f32.mxu1 %v1928_v57  ;;  %v1772_v3 = vadd.f32 %v6879_v0, %v1771_v63 }
 0x2ff   : > { %5596 = vmatmul.mubr.f32.gmra.mrb[134].mxu1 %v1929_v56  ;;  %v1931_v4 = vmax.f32 %v1777_v62, 0.0 }
 0x300   : > { %v1930_v6 = vmax.f32 %v1772_v3, 0.0  ;;  %v5475_v8 = vpop.f32.mrb[74].mxu0 }
 0x301   : > { %v1787_v9 = vadd.f32 %v5475_v8, %v6879_v0  ;;  %v1781_v11 = vpop.f32.mrb[75].mxu0 }
 0x302   : > { %5598 = vmatprep.mubr.f32.mxu1 %v1930_v6  ;;  %v1782_v13 = vadd.f32 %v6879_v0, %v1781_v11 }
 0x303   : > { %5599 = vmatmul.mubr.f32.gmra.mrb[136].mxu1 %v1931_v4  ;;  %v1933_v14 = vmax.f32 %v1787_v9, 0.0 }
 0x304   : > { %v1932_v16 = vmax.f32 %v1782_v13, 0.0  ;;  %v5478_v19 = vpop.f32.mrb[76].mxu0  ;;  %v6078_v13 = vld [vmem:[%s6343_s25] sm:$0xff] }
 0x305   : > { %v1797_v21 = vadd.f32 %v5478_v19, %v6879_v0  ;;  %v1791_v22 = vpop.f32.mrb[77].mxu0 }
 0x306   : > { %5601 = vmatprep.mubr.f32.mxu1 %v1932_v16  ;;  %v1792_v23 = vadd.f32 %v6879_v0, %v1791_v22  ;;  %v2894_v16 = vld [vmem:[%s8529_s6] sm:$0xff]  ;;  %v2897_v22 = vld [vmem:[%s8529_s6 + $0x18] sm:$0xff] }
 0x307   : > { %5602 = vmatmul.mubr.f32.gmra.mrb[138].mxu1 %v1933_v14  ;;  %v1935_v24 = vmax.f32 %v1797_v21, 0.0  ;;  %v8583_v14 = vmov 0.0|0.0   ;;  %v2896_v21 = vld [vmem:[%s8529_s6 + $0x10] sm:$0xff] }
 0x308   : > { %v1934_v27 = vmax.f32 %v1792_v23, 0.0  ;;  %v5481_v58 = vpop.f32.mrb[78].mxu0  ;;  %5906 = vmatprep.subr.bf16.mxu1 %v8583_v14  ;;  %5942 = vmatprep.subr.bf16.mxu0 %v8583_v14  ;;  %v5910_v23 = vpack.c.bf16 %v2897_v22, %v2896_v21 }
 0x309   : > { %v1807_v1 = vadd.f32 %v5481_v58, %v6879_v0  ;;  %v1801_v2 = vpop.f32.mrb[79].mxu0 }
 0x30a   : > { %v1802_v10 = vadd.f32 %v6879_v0, %v1801_v2  ;;  %5604 = vmatprep.mubr.f32.mxu1 %v1934_v27  ;;  %v2899_v27 = vld [vmem:[%s8529_s6 + $0x28] sm:$0xff]  ;;  %v2901_v2 = vld [vmem:[%s8529_s6 + $0x38] sm:$0xff] }
 0x30b   : > { %v1937_v12 = vmax.f32 %v1807_v1, 0.0  ;;  %5605 = vmatmul.mubr.f32.gmra.mrb[140].mxu1 %v1935_v24  ;;  %v2898_v24 = vld [vmem:[%s8529_s6 + $0x20] sm:$0xff]  ;;  %v2900_v1 = vld [vmem:[%s8529_s6 + $0x30] sm:$0xff] }
 0x30c   : > { %v1936_v18 = vmax.f32 %v1802_v10, 0.0  ;;  %v5484_v20 = vpop.f32.mrb[80].mxu0  ;;  %v5913_v58 = vpack.c.bf16 %v2899_v27, %v2898_v24  ;;  %v5916_v10 = vpack.c.bf16 %v2901_v2, %v2900_v1 }
 0x30d   : > { %v1817_v26 = vadd.f32 %v5484_v20, %v6879_v0  ;;  %v1811_v28 = vpop.f32.mrb[81].mxu0 }
 0x30e   : > { %v1812_v34 = vadd.f32 %v6879_v0, %v1811_v28  ;;  %5607 = vmatprep.mubr.f32.mxu1 %v1936_v18  ;;  %v2903_v18 = vld [vmem:[%s8529_s6 + $0x48] sm:$0xff]  ;;  %v2905_v28 = vld [vmem:[%s8529_s6 + $0x58] sm:$0xff] }
 0x30f   : > { %v1939_v36 = vmax.f32 %v1817_v26, 0.0  ;;  %5608 = vmatmul.mubr.f32.gmra.mrb[142].mxu1 %v1937_v12  ;;  %v2902_v12 = vld [vmem:[%s8529_s6 + $0x40] sm:$0xff]  ;;  %v2904_v26 = vld [vmem:[%s8529_s6 + $0x50] sm:$0xff] }
 0x310   : > { %v1938_v42 = vmax.f32 %v1812_v34, 0.0  ;;  %v5487_v44 = vpop.f32.mrb[82].mxu0  ;;  %v5919_v20 = vpack.c.bf16 %v2903_v18, %v2902_v12  ;;  %v5922_v34 = vpack.c.bf16 %v2905_v28, %v2904_v26 }
 0x311   : > { %v1827_v50 = vadd.f32 %v5487_v44, %v6879_v0  ;;  %v1821_v52 = vpop.f32.mrb[83].mxu0 }
 0x312   : > { %v1822_v59 = vadd.f32 %v6879_v0, %v1821_v52  ;;  %5610 = vmatprep.mubr.f32.mxu1 %v1938_v42  ;;  %v2907_v42 = vld [vmem:[%s8529_s6 + $0x68] sm:$0xff]  ;;  %v2909_v52 = vld [vmem:[%s8529_s6 + $0x78] sm:$0xff] }
 0x313   : > { %v1941_v61 = vmax.f32 %v1827_v50, 0.0  ;;  %5611 = vmatmul.mubr.f32.gmra.mrb[144].mxu1 %v1939_v36  ;;  %v2906_v36 = vld [vmem:[%s8529_s6 + $0x60] sm:$0xff]  ;;  %v2908_v50 = vld [vmem:[%s8529_s6 + $0x70] sm:$0xff] }
 0x314   : > { %v1940_v5 = vmax.f32 %v1822_v59, 0.0  ;;  %v5490_v7 = vpop.f32.mrb[84].mxu0  ;;  %v5925_v44 = vpack.c.bf16 %v2907_v42, %v2906_v36  ;;  %v5928_v59 = vpack.c.bf16 %v2909_v52, %v2908_v50 }
 0x315   : > { %v1837_v15 = vadd.f32 %v5490_v7, %v6879_v0  ;;  %v1831_v17 = vpop.f32.mrb[85].mxu0 }
 0x316   : > { %v1832_v29 = vadd.f32 %v6879_v0, %v1831_v17  ;;  %5613 = vmatprep.mubr.f32.mxu1 %v1940_v5  ;;  %v2911_v5 = vld [vmem:[%s8529_s6 + $0x88] sm:$0xff]  ;;  %v2913_v17 = vld [vmem:[%s8529_s6 + $0x98] sm:$0xff] }
 0x317   : > { %v1943_v30 = vmax.f32 %v1837_v15, 0.0  ;;  %5614 = vmatmul.mubr.f32.gmra.mrb[146].mxu1 %v1941_v61  ;;  %v2910_v61 = vld [vmem:[%s8529_s6 + $0x80] sm:$0xff]  ;;  %v2912_v15 = vld [vmem:[%s8529_s6 + $0x90] sm:$0xff] }
 0x318   : > { %v1942_v31 = vmax.f32 %v1832_v29, 0.0  ;;  %v5493_v32 = vpop.f32.mrb[86].mxu0  ;;  %v5931_v7 = vpack.c.bf16 %v2911_v5, %v2910_v61  ;;  %v5934_v29 = vpack.c.bf16 %v2913_v17, %v2912_v15 }
 0x319   : > { %v1847_v33 = vadd.f32 %v5493_v32, %v6879_v0  ;;  %v1841_v35 = vpop.f32.mrb[87].mxu0 }
 0x31a   : > { %v1842_v37 = vadd.f32 %v6879_v0, %v1841_v35  ;;  %5616 = vmatprep.mubr.f32.mxu1 %v1942_v31  ;;  %v2915_v31 = vld [vmem:[%s8529_s6 + $0xa8] sm:$0xff] }
 0x31b   : > { %v1945_v38 = vmax.f32 %v1847_v33, 0.0  ;;  %5617 = vmatmul.mubr.f32.gmra.mrb[148].mxu1 %v1943_v30  ;;  %v2914_v30 = vld [vmem:[%s8529_s6 + $0xa0] sm:$0xff] }
 0x31c   : > { %v1944_v39 = vmax.f32 %v1842_v37, 0.0  ;;  %v5496_v25 = vpop.f32.mrb[88].mxu0  ;;  %v5937_v32 = vpack.c.bf16 %v2915_v31, %v2914_v30  ;;  %v7035_v33 = vld [vmem:[%s8531_s8 + $0x3] ss:$0 sm:$0xff]  ;;  %v2916_v37 = vld [vmem:[%s8529_s6 + $0xb0] sm:$0xff] }
 0x31d   : > { %v1857_v40 = vadd.f32 %v5496_v25, %v6879_v0  ;;  %v1851_v41 = vpop.f32.mrb[89].mxu0 }
 0x31e   : > { %v1852_v43 = vadd.f32 %v6879_v0, %v1851_v41  ;;  %5619 = vmatprep.mubr.f32.mxu1 %v1944_v39 }
 0x31f   : > { %v1947_v45 = vmax.f32 %v1857_v40, 0.0  ;;  %5620 = vmatmul.mubr.f32.gmra.mrb[150].mxu1 %v1945_v38  ;;  %v2917_v38 = vld [vmem:[%s8529_s6 + $0xb8] sm:$0xff] }
 0x320   : > { %v1946_v46 = vmax.f32 %v1852_v43, 0.0  ;;  %v5499_v47 = vpop.f32.mrb[90].mxu0  ;;  %v5940_v40 = vpack.c.bf16 %v2917_v38, %v2916_v37 }
 0x321   : > { %v1867_v48 = vadd.f32 %v5499_v47, %v6879_v0  ;;  %v1861_v49 = vpop.f32.mrb[91].mxu0  ;;  %v2918_v47 = vld [vmem:[%s8529_s6 + $0xc0] sm:$0x3] }
 0x322   : > { %v1862_v51 = vadd.f32 %v6879_v0, %v1861_v49  ;;  %5622 = vmatprep.mubr.f32.mxu1 %v1946_v46  ;;  %v6231_v46 = vmov 0.0  }
 0x323   : > { %v1949_v53 = vmax.f32 %v1867_v48, 0.0  ;;  %5623 = vmatmul.mubr.f32.gmra.mrb[152].mxu1 %v1947_v45 }
 0x324   : > { %v1948_v54 = vmax.f32 %v1862_v51, 0.0  ;;  %v5502_v55 = vpop.f32.mrb[92].mxu0 }
 0x325   : > { %v1877_v56 = vadd.f32 %v5502_v55, %v6879_v0  ;;  %v1871_v57 = vpop.f32.mrb[93].mxu0 }
 0x326   : > { %v1872_v60 = vadd.f32 %v6879_v0, %v1871_v57  ;;  %5625 = vmatprep.mubr.f32.mxu1 %v1948_v54 }
 0x327   : > { %v1951_v62 = vmax.f32 %v1877_v56, 0.0  ;;  %5626 = vmatmul.mubr.f32.gmra.mrb[154].mxu1 %v1949_v53 }
 0x328   : > { %v1950_v63 = vmax.f32 %v1872_v60, 0.0  ;;  %v5505_v3 = vpop.f32.mrb[94].mxu0 }
 0x329   : > { %v1887_v4 = vadd.f32 %v5505_v3, %v6879_v0  ;;  %v1881_v6 = vpop.f32.mrb[95].mxu0 }
 0x32a   : > { %v1882_v8 = vadd.f32 %v6879_v0, %v1881_v6  ;;  %5628 = vmatprep.mubr.f32.mxu1 %v1950_v63  ;;  %v2895_v0 = vld [vmem:[%s8529_s6 + $0x8] sm:$0xff] }
 0x32b   : > { %v1953_v9 = vmax.f32 %v1887_v4, 0.0  ;;  %5629 = vmatmul.mubr.f32.gmra.mrb[156].mxu1 %v1951_v62  ;;  %v5907_v19 = vpack.c.bf16 %v2895_v0, %v2894_v16 }
 0x32c   : > { %v1952_v11 = vmax.f32 %v1882_v8, 0.0 }
 0x32d   : > { %5908 = vmatpush1.bf16.msra.mxu1 %v5907_v19 }
 0x32e   : > { %5631 = vmatprep.mubr.f32.mxu1 %v1952_v11  ;;  %5909 = vmatprep.subr.bf16.mxu1 %v8583_v14 }
 0x32f   : > { %5632 = vmatmul.mubr.f32.gmra.mrb[158].mxu1 %v1953_v9 }
 0x330   : > { %4594 = vmatprep.mubr.msk.f32.mxu1 %vm432_vm0, %v6078_v13 }
 0x331   : > { %5911 = vmatpush1.bf16.msra.mxu1 %v5910_v23 }
 0x332   : > { %5912 = vmatprep.subr.bf16.mxu1 %v8583_v14 }
 0x335   : > { %5914 = vmatpush1.bf16.msra.mxu1 %v5913_v58 }
 0x336   : > { %5915 = vmatprep.subr.bf16.mxu1 %v8583_v14 }
 0x339   : > { %5917 = vmatpush1.bf16.msra.mxu1 %v5916_v10 }
 0x33a   : > { %5918 = vmatprep.subr.bf16.mxu1 %v8583_v14 }
 0x33d   : > { %5920 = vmatpush1.bf16.msra.mxu1 %v5919_v20 }
 0x33e   : > { %5921 = vmatprep.subr.bf16.mxu1 %v8583_v14 }
 0x341   : > { %5923 = vmatpush1.bf16.msra.mxu1 %v5922_v34 }
 0x342   : > { %5924 = vmatprep.subr.bf16.mxu1 %v8583_v14 }
 0x345   : > { %5926 = vmatpush1.bf16.msra.mxu1 %v5925_v44 }
 0x346   : > { %5927 = vmatprep.subr.bf16.mxu1 %v8583_v14 }
 0x349   : > { %5929 = vmatpush1.bf16.msra.mxu1 %v5928_v59 }
 0x34a   : > { %5930 = vmatprep.subr.bf16.mxu1 %v8583_v14 }
 0x34d   : > { %5932 = vmatpush1.bf16.msra.mxu1 %v5931_v7 }
 0x34e   : > { %5933 = vmatprep.subr.bf16.mxu1 %v8583_v14 }
 0x351   : > { %5935 = vmatpush1.bf16.msra.mxu1 %v5934_v29 }
 0x352   : > { %5936 = vmatprep.subr.bf16.mxu1 %v8583_v14 }
 0x355   : > { %5938 = vmatpush1.bf16.msra.mxu1 %v5937_v32 }
 0x356   : > { %5939 = vmatprep.subr.bf16.mxu1 %v8583_v14 }
 0x359   : > { %5941 = vmatpush1.bf16.msra.mxu1 %v5940_v40 }
 0x35a   : > { %2975 = vmatprep.subr.mxu1 %v6231_v46 }
 0x35d   : > { %4593 = vmatpush1.msk.msra.mxu1 %vm625_vm1, %v2918_v47 }
 0x386   : > { %v5540_v35 = vpop.f32.mrb[96].mxu1 }
 0x387   : > { %v7044_v39 = vadd.f32 %v5540_v35, %v7035_v33  ;;  %v2041_v25 = vpop.f32.mrb[97].mxu1 }
 0x388   : > { %v7047_v41 = vadd.f32 %v7035_v33, %v2041_v25 }
 0x389   : > { %v8579_v48 = vmax.f32 %v7044_v39, 0.0 }
 0x38a   : > { %v8582_v43 = vmax.f32 %v7047_v41, 0.0  ;;  %v5543_v45 = vpop.f32.mrb[98].mxu1 }
 0x38b   : > { %v7055_v49 = vadd.f32 %v5543_v45, %v7035_v33  ;;  %v2051_v51 = vpop.f32.mrb[99].mxu1 }
 0x38c   : > { %v7058_v53 = vadd.f32 %v7035_v33, %v2051_v51  ;;  %5666 = vmatprep.mubr.f32.mxu0 %v8582_v43 }
 0x38d   : > { %5667 = vmatmul.mubr.f32.vlgmr.msra.gmra.mrb[96].mxu0 %v8579_v48  ;;  %v8575_v56 = vmax.f32 %v7055_v49, 0.0 }
 0x38e   : > { %v8578_v54 = vmax.f32 %v7058_v53, 0.0  ;;  %v5546_v55 = vpop.f32.mrb[100].mxu1 }
 0x38f   : > { %v7068_v57 = vadd.f32 %v5546_v55, %v7035_v33  ;;  %v2061_v60 = vpop.f32.mrb[101].mxu1 }
 0x390   : > { %v7071_v62 = vadd.f32 %v7035_v33, %v2061_v60  ;;  %5669 = vmatprep.mubr.f32.mxu0 %v8578_v54 }
 0x391   : > { %v8571_v63 = vmax.f32 %v7068_v57, 0.0  ;;  %5670 = vmatmul.mubr.f32.gmra.mrb[98].mxu0 %v8575_v56 }
 0x392   : > { %v8574_v3 = vmax.f32 %v7071_v62, 0.0  ;;  %v5549_v4 = vpop.f32.mrb[102].mxu1 }
 0x393   : > { %v7080_v6 = vadd.f32 %v5549_v4, %v7035_v33  ;;  %v2071_v8 = vpop.f32.mrb[103].mxu1 }
 0x394   : > { %5672 = vmatprep.mubr.f32.mxu0 %v8574_v3  ;;  %v7085_v9 = vadd.f32 %v7035_v33, %v2071_v8 }
 0x395   : > { %v8567_v11 = vmax.f32 %v7080_v6, 0.0  ;;  %5673 = vmatmul.mubr.f32.gmra.mrb[100].mxu0 %v8571_v63 }
 0x396   : > { %v8570_v13 = vmax.f32 %v7085_v9, 0.0  ;;  %v5552_v16 = vpop.f32.mrb[104].mxu1 }
 0x397   : > { %v7092_v0 = vadd.f32 %v5552_v16, %v7035_v33  ;;  %v2081_v19 = vpop.f32.mrb[105].mxu1 }
 0x398   : > { %5675 = vmatprep.mubr.f32.mxu0 %v8570_v13  ;;  %v7097_v21 = vadd.f32 %v7035_v33, %v2081_v19 }
 0x399   : > { %5676 = vmatmul.mubr.f32.gmra.mrb[102].mxu0 %v8567_v11  ;;  %v8565_v22 = vmax.f32 %v7092_v0, 0.0 }
 0x39a   : > { %v8566_v23 = vmax.f32 %v7097_v21, 0.0  ;;  %v5555_v24 = vpop.f32.mrb[106].mxu1 }
 0x39b   : > { %v7104_v27 = vadd.f32 %v5555_v24, %v7035_v33  ;;  %v2091_v58 = vpop.f32.mrb[107].mxu1 }
 0x39c   : > { %5678 = vmatprep.mubr.f32.mxu0 %v8566_v23  ;;  %v7109_v1 = vadd.f32 %v7035_v33, %v2091_v58 }
 0x39d   : > { %5679 = vmatmul.mubr.f32.gmra.mrb[104].mxu0 %v8565_v22  ;;  %v8561_v2 = vmax.f32 %v7104_v27, 0.0 }
 0x39e   : > { %v8562_v10 = vmax.f32 %v7109_v1, 0.0  ;;  %v5558_v12 = vpop.f32.mrb[108].mxu1 }
 0x39f   : > { %v7116_v18 = vadd.f32 %v5558_v12, %v7035_v33  ;;  %v2101_v20 = vpop.f32.mrb[109].mxu1 }
 0x3a0   : > { %5681 = vmatprep.mubr.f32.mxu0 %v8562_v10  ;;  %v7121_v26 = vadd.f32 %v7035_v33, %v2101_v20 }
 0x3a1   : > { %5682 = vmatmul.mubr.f32.gmra.mrb[106].mxu0 %v8561_v2  ;;  %v8557_v28 = vmax.f32 %v7116_v18, 0.0 }
 0x3a2   : > { %v8558_v34 = vmax.f32 %v7121_v26, 0.0  ;;  %v5561_v36 = vpop.f32.mrb[110].mxu1 }
 0x3a3   : > { %v7128_v42 = vadd.f32 %v5561_v36, %v7035_v33  ;;  %v2111_v44 = vpop.f32.mrb[111].mxu1 }
 0x3a4   : > { %5684 = vmatprep.mubr.f32.mxu0 %v8558_v34  ;;  %v7133_v50 = vadd.f32 %v7035_v33, %v2111_v44 }
 0x3a5   : > { %5685 = vmatmul.mubr.f32.gmra.mrb[108].mxu0 %v8557_v28  ;;  %v8553_v52 = vmax.f32 %v7128_v42, 0.0 }
 0x3a6   : > { %v8554_v59 = vmax.f32 %v7133_v50, 0.0  ;;  %v5564_v61 = vpop.f32.mrb[112].mxu1 }
 0x3a7   : > { %v7140_v5 = vadd.f32 %v5564_v61, %v7035_v33  ;;  %v2121_v7 = vpop.f32.mrb[113].mxu1 }
 0x3a8   : > { %5687 = vmatprep.mubr.f32.mxu0 %v8554_v59  ;;  %v7145_v15 = vadd.f32 %v7035_v33, %v2121_v7 }
 0x3a9   : > { %5688 = vmatmul.mubr.f32.gmra.mrb[110].mxu0 %v8553_v52  ;;  %v8549_v17 = vmax.f32 %v7140_v5, 0.0 }
 0x3aa   : > { %v8550_v29 = vmax.f32 %v7145_v15, 0.0  ;;  %v5567_v30 = vpop.f32.mrb[114].mxu1 }
 0x3ab   : > { %v7152_v31 = vadd.f32 %v5567_v30, %v7035_v33  ;;  %v2131_v32 = vpop.f32.mrb[115].mxu1 }
 0x3ac   : > { %5690 = vmatprep.mubr.f32.mxu0 %v8550_v29  ;;  %v7157_v35 = vadd.f32 %v7035_v33, %v2131_v32 }
 0x3ad   : > { %5691 = vmatmul.mubr.f32.gmra.mrb[112].mxu0 %v8549_v17  ;;  %v8545_v37 = vmax.f32 %v7152_v31, 0.0 }
 0x3ae   : > { %v8546_v38 = vmax.f32 %v7157_v35, 0.0  ;;  %v5570_v25 = vpop.f32.mrb[116].mxu1 }
 0x3af   : > { %v7164_v40 = vadd.f32 %v5570_v25, %v7035_v33  ;;  %v2141_v45 = vpop.f32.mrb[117].mxu1 }
 0x3b0   : > { %5693 = vmatprep.mubr.f32.mxu0 %v8546_v38  ;;  %v7169_v46 = vadd.f32 %v7035_v33, %v2141_v45 }
 0x3b1   : > { %5694 = vmatmul.mubr.f32.gmra.mrb[114].mxu0 %v8545_v37  ;;  %v8541_v47 = vmax.f32 %v7164_v40, 0.0 }
 0x3b2   : > { %v8542_v51 = vmax.f32 %v7169_v46, 0.0  ;;  %v5573_v55 = vpop.f32.mrb[118].mxu1 }
 0x3b3   : > { %v7176_v60 = vadd.f32 %v5573_v55, %v7035_v33  ;;  %v2151_v4 = vpop.f32.mrb[119].mxu1 }
 0x3b4   : > { %5696 = vmatprep.mubr.f32.mxu0 %v8542_v51  ;;  %v7181_v8 = vadd.f32 %v7035_v33, %v2151_v4 }
 0x3b5   : > { %8642 = vst [vmem:[#allocation3_spill] sm:$0xff] %v7176_v60  ;;  %5697 = vmatmul.mubr.f32.gmra.mrb[116].mxu0 %v8541_v47  ;;  %v8537_v16 = vmax.f32 %v7176_v60, 0.0 }
 0x3b6   : > { %8643 = vst [vmem:[#allocation4_spill] sm:$0xff] %v7181_v8  ;;  %v8538_v19 = vmax.f32 %v7181_v8, 0.0  ;;  %v5576_v24 = vpop.f32.mrb[120].mxu1 }
 0x3b7   : > { %v7188_v58 = vadd.f32 %v5576_v24, %v7035_v33  ;;  %v2161_v12 = vpop.f32.mrb[121].mxu1 }
 0x3b8   : > { %5699 = vmatprep.mubr.f32.mxu0 %v8538_v19  ;;  %v7193_v20 = vadd.f32 %v7035_v33, %v2161_v12 }
 0x3b9   : > { %8644 = vst [vmem:[#allocation5_spill] sm:$0xff] %v7188_v58  ;;  %5700 = vmatmul.mubr.f32.gmra.mrb[118].mxu0 %v8537_v16  ;;  %v8533_v36 = vmax.f32 %v7188_v58, 0.0 }
 0x3ba   : > { %8645 = vst [vmem:[#allocation6_spill] sm:$0xff] %v7193_v20  ;;  %v8534_v44 = vmax.f32 %v7193_v20, 0.0  ;;  %v5579_v61 = vpop.f32.mrb[122].mxu1 }
 0x3bb   : > { %v7200_v7 = vadd.f32 %v5579_v61, %v7035_v33  ;;  %v2171_v30 = vpop.f32.mrb[123].mxu1 }
 0x3bc   : > { %5702 = vmatprep.mubr.f32.mxu0 %v8534_v44  ;;  %v7205_v32 = vadd.f32 %v7035_v33, %v2171_v30 }
 0x3bd   : > { %8646 = vst [vmem:[#allocation7_spill] sm:$0xff] %v7200_v7  ;;  %5703 = vmatmul.mubr.f32.gmra.mrb[120].mxu0 %v8533_v36  ;;  %v8536_v25 = vmax.f32 %v7200_v7, 0.0 }
 0x3be   : > { %8647 = vst [vmem:[#allocation8_spill] sm:$0xff] %v7205_v32  ;;  %v8535_v45 = vmax.f32 %v7205_v32, 0.0  ;;  %v5582_v55 = vpop.f32.mrb[124].mxu1 }
 0x3bf   : > { %v7212_v4 = vadd.f32 %v5582_v55, %v7035_v33  ;;  %v2181_v24 = vpop.f32.mrb[125].mxu1 }
 0x3c0   : > { %5705 = vmatprep.mubr.f32.mxu0 %v8535_v45  ;;  %v7217_v12 = vadd.f32 %v7035_v33, %v2181_v24 }
 0x3c1   : > { %8648 = vst [vmem:[#allocation9_spill] sm:$0xff] %v7212_v4  ;;  %5706 = vmatmul.mubr.f32.gmra.mrb[122].mxu0 %v8536_v25  ;;  %v8540_v61 = vmax.f32 %v7212_v4, 0.0 }
 0x3c2   : > { %8649 = vst [vmem:[#allocation10_spill] sm:$0xff] %v7217_v12  ;;  %v8539_v30 = vmax.f32 %v7217_v12, 0.0  ;;  %v5585_v36 = vpop.f32.mrb[126].mxu1 }
 0x3c3   : > { %v7224_v44 = vadd.f32 %v5585_v36, %v7035_v33  ;;  %v2191_v55 = vpop.f32.mrb[127].mxu1 }
 0x3c4   : > { %5708 = vmatprep.mubr.f32.mxu0 %v8539_v30  ;;  %v7229_v45 = vadd.f32 %v7035_v33, %v2191_v55 }
 0x3c5   : > { %8650 = vst [vmem:[#allocation11_spill] sm:$0xff] %v7224_v44  ;;  %5709 = vmatmul.mubr.f32.gmra.mrb[124].mxu0 %v8540_v61  ;;  %v8544_v24 = vmax.f32 %v7224_v44, 0.0 }
 0x3c6   : > { %8651 = vst [vmem:[#allocation12_spill] sm:$0xff] %v7229_v45  ;;  %v8543_v25 = vmax.f32 %v7229_v45, 0.0  ;;  %v5588_v16 = vpop.f32.mrb[128].mxu1 }
 0x3c7   : > { %v7236_v19 = vadd.f32 %v5588_v16, %v7035_v33  ;;  %v2201_v36 = vpop.f32.mrb[129].mxu1 }
 0x3c8   : > { %5711 = vmatprep.mubr.f32.mxu0 %v8543_v25  ;;  %v7241_v30 = vadd.f32 %v7035_v33, %v2201_v36 }
 0x3c9   : > { %8652 = vst [vmem:[#allocation13_spill] sm:$0xff] %v7236_v19  ;;  %5712 = vmatmul.mubr.f32.gmra.mrb[126].mxu0 %v8544_v24  ;;  %v8548_v55 = vmax.f32 %v7236_v19, 0.0  ;;  %v6097_v19 = vld [vmem:[%s6343_s25 + $0x98] sm:$0xff] }
 0x3ca   : > { %8653 = vst [vmem:[#allocation14_spill] sm:$0xff] %v7241_v30  ;;  %v8547_v61 = vmax.f32 %v7241_v30, 0.0  ;;  %v5591_v47 = vpop.f32.mrb[130].mxu1 }
 0x3cb   : > { %v7248_v51 = vadd.f32 %v5591_v47, %v7035_v33  ;;  %v2211_v16 = vpop.f32.mrb[131].mxu1 }
 0x3cc   : > { %5714 = vmatprep.mubr.f32.mxu0 %v8547_v61  ;;  %v7253_v25 = vadd.f32 %v7035_v33, %v2211_v16 }
 0x3cd   : > { %8654 = vst [vmem:[#allocation15_spill] sm:$0xff] %v7248_v51  ;;  %5715 = vmatmul.mubr.f32.gmra.mrb[128].mxu0 %v8548_v55  ;;  %v8552_v36 = vmax.f32 %v7248_v51, 0.0 }
 0x3ce   : > { %8655 = vst [vmem:[#allocation16_spill] sm:$0xff] %v7253_v25  ;;  %v8551_v24 = vmax.f32 %v7253_v25, 0.0  ;;  %v5594_v37 = vpop.f32.mrb[132].mxu1 }
 0x3cf   : > { %v7260_v38 = vadd.f32 %v5594_v37, %v7035_v33  ;;  %v2221_v47 = vpop.f32.mrb[133].mxu1 }
 0x3d0   : > { %5717 = vmatprep.mubr.f32.mxu0 %v8551_v24  ;;  %v7265_v61 = vadd.f32 %v7035_v33, %v2221_v47 }
 0x3d1   : > { %8656 = vst [vmem:[#allocation17_spill] sm:$0xff] %v7260_v38  ;;  %5718 = vmatmul.mubr.f32.gmra.mrb[130].mxu0 %v8552_v36  ;;  %v8556_v16 = vmax.f32 %v7260_v38, 0.0 }
 0x3d2   : > { %8657 = vst [vmem:[#allocation18_spill] sm:$0xff] %v7265_v61  ;;  %v8555_v55 = vmax.f32 %v7265_v61, 0.0  ;;  %v5597_v17 = vpop.f32.mrb[134].mxu1  ;;  %v6094_v61 = vld [vmem:[%s6343_s25 + $0x80] sm:$0xff] }
 0x3d3   : > { %v7272_v29 = vadd.f32 %v5597_v17, %v7035_v33  ;;  %v2231_v37 = vpop.f32.mrb[135].mxu1 }
 0x3d4   : > { %5720 = vmatprep.mubr.f32.mxu0 %v8555_v55  ;;  %v7277_v24 = vadd.f32 %v7035_v33, %v2231_v37 }
 0x3d5   : > { %8658 = vst [vmem:[#allocation19_spill] sm:$0xff] %v7272_v29  ;;  %5721 = vmatmul.mubr.f32.gmra.mrb[132].mxu0 %v8556_v16  ;;  %v8560_v47 = vmax.f32 %v7272_v29, 0.0 }
 0x3d6   : > { %8659 = vst [vmem:[#allocation20_spill] sm:$0xff] %v7277_v24  ;;  %v8559_v36 = vmax.f32 %v7277_v24, 0.0  ;;  %v5600_v52 = vpop.f32.mrb[136].mxu1 }
 0x3d7   : > { %v7284_v59 = vadd.f32 %v5600_v52, %v7035_v33  ;;  %v2241_v17 = vpop.f32.mrb[137].mxu1 }
 0x3d8   : > { %5723 = vmatprep.mubr.f32.mxu0 %v8559_v36  ;;  %v7289_v55 = vadd.f32 %v7035_v33, %v2241_v17 }
 0x3d9   : > { %8660 = vst [vmem:[#allocation21_spill] sm:$0xff] %v7284_v59  ;;  %5724 = vmatmul.mubr.f32.gmra.mrb[134].mxu0 %v8560_v47  ;;  %v8564_v37 = vmax.f32 %v7284_v59, 0.0 }
 0x3da   : > { %8661 = vst [vmem:[#allocation22_spill] sm:$0xff] %v7289_v55  ;;  %v8563_v16 = vmax.f32 %v7289_v55, 0.0  ;;  %v5603_v28 = vpop.f32.mrb[138].mxu1 }
 0x3db   : > { %v7296_v34 = vadd.f32 %v5603_v28, %v7035_v33  ;;  %v2251_v52 = vpop.f32.mrb[139].mxu1 }
 0x3dc   : > { %5726 = vmatprep.mubr.f32.mxu0 %v8563_v16  ;;  %v7301_v36 = vadd.f32 %v7035_v33, %v2251_v52 }
 0x3dd   : > { %8662 = vst [vmem:[#allocation23_spill] sm:$0xff] %v7296_v34  ;;  %5727 = vmatmul.mubr.f32.gmra.mrb[136].mxu0 %v8564_v37  ;;  %v8568_v17 = vmax.f32 %v7296_v34, 0.0  ;;  %v6084_v34 = vld [vmem:[%s6343_s25 + $0x30] sm:$0xff] }
 0x3de   : > { %8663 = vst [vmem:[#allocation24_spill] sm:$0xff] %v7301_v36  ;;  %v8569_v47 = vmax.f32 %v7301_v36, 0.0  ;;  %v5606_v2 = vpop.f32.mrb[140].mxu1 }
 0x3df   : > { %v7308_v10 = vadd.f32 %v5606_v2, %v7035_v33  ;;  %v2261_v28 = vpop.f32.mrb[141].mxu1 }
 0x3e0   : > { %5729 = vmatprep.mubr.f32.mxu0 %v8569_v47  ;;  %v7313_v16 = vadd.f32 %v7035_v33, %v2261_v28 }
 0x3e1   : > { %8664 = vst [vmem:[#allocation25_spill] sm:$0xff] %v7308_v10  ;;  %5730 = vmatmul.mubr.f32.gmra.mrb[138].mxu0 %v8568_v17  ;;  %v8572_v52 = vmax.f32 %v7308_v10, 0.0 }
 0x3e2   : > { %8665 = vst [vmem:[#allocation26_spill] sm:$0xff] %v7313_v16  ;;  %v8573_v37 = vmax.f32 %v7313_v16, 0.0  ;;  %v5609_v22 = vpop.f32.mrb[142].mxu1 }
 0x3e3   : > { %v7320_v23 = vadd.f32 %v5609_v22, %v7035_v33  ;;  %v2271_v2 = vpop.f32.mrb[143].mxu1 }
 0x3e4   : > { %v7323_v11 = vadd.f32 %v7035_v33, %v2271_v2  ;;  %5732 = vmatprep.mubr.f32.mxu0 %v8573_v37 }
 0x3e5   : > { %8666 = vst [vmem:[#allocation27_spill] sm:$0xff] %v7320_v23  ;;  %v8576_v28 = vmax.f32 %v7320_v23, 0.0  ;;  %5733 = vmatmul.mubr.f32.gmra.mrb[140].mxu0 %v8572_v52 }
 0x3e6   : > { %8667 = vst [vmem:[#allocation28_spill] sm:$0xff] %v7323_v11  ;;  %v8577_v17 = vmax.f32 %v7323_v11, 0.0  ;;  %v5612_v47 = vpop.f32.mrb[144].mxu1 }
 0x3e7   : > { %v7332_v13 = vadd.f32 %v5612_v47, %v7035_v33  ;;  %v2281_v22 = vpop.f32.mrb[145].mxu1 }
 0x3e8   : > { %v7335_v63 = vadd.f32 %v7035_v33, %v2281_v22  ;;  %5735 = vmatprep.mubr.f32.mxu0 %v8577_v17 }
 0x3e9   : > { %8668 = vst [vmem:[#allocation29_spill] sm:$0xff] %v7332_v13  ;;  %v8580_v2 = vmax.f32 %v7332_v13, 0.0  ;;  %5736 = vmatmul.mubr.f32.gmra.mrb[142].mxu0 %v8576_v28 }
 0x3ea   : > { %8669 = vst [vmem:[#allocation30_spill] sm:$0xff] %v7335_v63  ;;  %v8581_v52 = vmax.f32 %v7335_v63, 0.0  ;;  %v5615_v37 = vpop.f32.mrb[146].mxu1 }
 0x3eb   : > { %v7344_v3 = vadd.f32 %v5615_v37, %v7035_v33  ;;  %v2291_v47 = vpop.f32.mrb[147].mxu1 }
 0x3ec   : > { %v7347_v56 = vadd.f32 %v7035_v33, %v2291_v47  ;;  %5738 = vmatprep.mubr.f32.mxu0 %v8581_v52 }
 0x3ed   : > { %8670 = vst [vmem:[#allocation31_spill] sm:$0xff] %v7344_v3  ;;  %v8585_v22 = vmax.f32 %v7344_v3, 0.0  ;;  %5739 = vmatmul.mubr.f32.gmra.mrb[144].mxu0 %v8580_v2 }
 0x3ee   : > { %8671 = vst [vmem:[#allocation32_spill] sm:$0xff] %v7347_v56  ;;  %v8586_v28 = vmax.f32 %v7347_v56, 0.0  ;;  %v5618_v17 = vpop.f32.mrb[148].mxu1 }
 0x3ef   : > { %v7356_v54 = vadd.f32 %v5618_v17, %v7035_v33  ;;  %v2301_v37 = vpop.f32.mrb[149].mxu1 }
 0x3f0   : > { %v7359_v48 = vadd.f32 %v7035_v33, %v2301_v37  ;;  %5741 = vmatprep.mubr.f32.mxu0 %v8586_v28 }
 0x3f1   : > { %8672 = vst [vmem:[#allocation33_spill] sm:$0xff] %v7356_v54  ;;  %v8589_v47 = vmax.f32 %v7356_v54, 0.0  ;;  %5742 = vmatmul.mubr.f32.gmra.mrb[146].mxu0 %v8585_v22 }
 0x3f2   : > { %8673 = vst [vmem:[#allocation34_spill] sm:$0xff] %v7359_v48  ;;  %v8590_v2 = vmax.f32 %v7359_v48, 0.0  ;;  %v5621_v52 = vpop.f32.mrb[150].mxu1 }
 0x3f3   : > { %v7368_v43 = vadd.f32 %v5621_v52, %v7035_v33  ;;  %v2311_v17 = vpop.f32.mrb[151].mxu1 }
 0x3f4   : > { %v7371_v14 = vadd.f32 %v7035_v33, %v2311_v17  ;;  %5744 = vmatprep.mubr.f32.mxu0 %v8590_v2 }
 0x3f5   : > { %8674 = vst [vmem:[#allocation35_spill] sm:$0xff] %v7368_v43  ;;  %v8593_v37 = vmax.f32 %v7368_v43, 0.0  ;;  %5745 = vmatmul.mubr.f32.gmra.mrb[148].mxu0 %v8589_v47 }
 0x3f6   : > { %8675 = vst [vmem:[#allocation36_spill] sm:$0xff] %v7371_v14  ;;  %v8594_v22 = vmax.f32 %v7371_v14, 0.0  ;;  %v5624_v28 = vpop.f32.mrb[152].mxu1 }
 0x3f7   : > { %v7380_v3 = vadd.f32 %v5624_v28, %v7035_v33  ;;  %v2321_v52 = vpop.f32.mrb[153].mxu1 }
 0x3f8   : > { %v7383_v56 = vadd.f32 %v7035_v33, %v2321_v52  ;;  %5747 = vmatprep.mubr.f32.mxu0 %v8594_v22 }
 0x3f9   : > { %8676 = vst [vmem:[#allocation37_spill] sm:$0xff] %v7380_v3  ;;  %v8597_v17 = vmax.f32 %v7380_v3, 0.0  ;;  %5748 = vmatmul.mubr.f32.gmra.mrb[150].mxu0 %v8593_v37 }
 0x3fa   : > { %8677 = vst [vmem:[#allocation38_spill] sm:$0xff] %v7383_v56  ;;  %v8598_v47 = vmax.f32 %v7383_v56, 0.0  ;;  %v5627_v2 = vpop.f32.mrb[154].mxu1 }
 0x3fb   : > { %v7392_v54 = vadd.f32 %v5627_v2, %v7035_v33  ;;  %v2331_v28 = vpop.f32.mrb[155].mxu1 }
 0x3fc   : > { %v7395_v48 = vadd.f32 %v7035_v33, %v2331_v28  ;;  %5750 = vmatprep.mubr.f32.mxu0 %v8598_v47 }
 0x3fd   : > { %8678 = vst [vmem:[#allocation39_spill] sm:$0xff] %v7392_v54  ;;  %v8601_v52 = vmax.f32 %v7392_v54, 0.0  ;;  %5751 = vmatmul.mubr.f32.gmra.mrb[152].mxu0 %v8597_v17  ;;  %v6079_v54 = vld [vmem:[%s6343_s25 + $0x8] sm:$0xff] }
 0x3fe   : > { %8679 = vst [vmem:[#allocation40_spill] sm:$0xff] %v7395_v48  ;;  %v8606_v37 = vmax.f32 %v7395_v48, 0.0  ;;  %v5630_v22 = vpop.f32.mrb[156].mxu1 }
 0x3ff   : > { %v7404_v43 = vadd.f32 %v5630_v22, %v7035_v33  ;;  %v2341_v2 = vpop.f32.mrb[157].mxu1 }
 0x400   : > { %v7407_v14 = vadd.f32 %v7035_v33, %v2341_v2  ;;  %5753 = vmatprep.mubr.f32.mxu0 %v8606_v37  ;;  %v3380_v37 = vld [vmem:[%s8530_s7 + $0x20] sm:$0xff] }
 0x401   : > { %8680 = vst [vmem:[#allocation41_spill] sm:$0xff] %v7404_v43  ;;  %v8603_v28 = vmax.f32 %v7404_v43, 0.0  ;;  %5754 = vmatmul.mubr.f32.gmra.mrb[154].mxu0 %v8601_v52 }
 0x402   : > { %8681 = vst [vmem:[#allocation42_spill] sm:$0xff] %v7407_v14  ;;  %v8602_v17 = vmax.f32 %v7407_v14, 0.0  ;;  %v5633_v47 = vpop.f32.mrb[158].mxu1 }
 0x403   : > { %v7416_v3 = vadd.f32 %v5633_v47, %v7035_v33  ;;  %v2351_v22 = vpop.f32.mrb[159].mxu1  ;;  %v3377_v47 = vld [vmem:[%s8530_s7 + $0x8] sm:$0xff] }
 0x404   : > { %v7419_v56 = vadd.f32 %v7035_v33, %v2351_v22  ;;  %5756 = vmatprep.mubr.f32.mxu0 %v8602_v17  ;;  %v3376_v33 = vld [vmem:[%s8530_s7] sm:$0xff]  ;;  %v8684_v17 = vmov 0.0|0.0  }
 0x405   : > { %8682 = vst [vmem:[#allocation43_spill] sm:$0xff] %v7416_v3  ;;  %v8604_v2 = vmax.f32 %v7416_v3, 0.0  ;;  %5757 = vmatmul.mubr.f32.gmra.mrb[156].mxu0 %v8603_v28  ;;  %v5943_v22 = vpack.c.bf16 %v3377_v47, %v3376_v33  ;;  %v3378_v28 = vld [vmem:[%s8530_s7 + $0x10] sm:$0xff]  ;;  %v3381_v33 = vld [vmem:[%s8530_s7 + $0x28] sm:$0xff] }
 0x406   : > { %8683 = vst [vmem:[#allocation44_spill] sm:$0xff] %v7419_v56  ;;  %v8605_v52 = vmax.f32 %v7419_v56, 0.0  ;;  %v5949_v47 = vpack.c.bf16 %v3381_v33, %v3380_v37 }
 0x407   : > { %5944 = vmatpush1.bf16.msra.mxu0 %v5943_v22 }
 0x408   : > { %5759 = vmatprep.mubr.f32.mxu0 %v8605_v52  ;;  %5945 = vmatprep.subr.bf16.mxu0 %v8684_v17 }
 0x409   : > { %5760 = vmatmul.mubr.f32.gmra.mrb[158].mxu0 %v8604_v2  ;;  %v3379_v2 = vld [vmem:[%s8530_s7 + $0x18] sm:$0xff] }
 0x40a   : > { %v5946_v52 = vpack.c.bf16 %v3379_v2, %v3378_v28  ;;  %v3382_v28 = vld [vmem:[%s8530_s7 + $0x30] sm:$0xff]  ;;  %v7461_v2 = vld [vmem:[%s8531_s8 + $0x4] ss:$0 sm:$0xff] }
 0x40c   : > { %5947 = vmatpush1.bf16.msra.mxu0 %v5946_v52  ;;  %v3383_v52 = vld [vmem:[%s8530_s7 + $0x38] sm:$0xff] }
 0x40d   : > { %5948 = vmatprep.subr.bf16.mxu0 %v8684_v17  ;;  %v5952_v22 = vpack.c.bf16 %v3383_v52, %v3382_v28 }
 0x410   : > { %5950 = vmatpush1.bf16.msra.mxu0 %v5949_v47 }
 0x411   : > { %5951 = vmatprep.subr.bf16.mxu0 %v8684_v17 }
 0x414   : > { %5953 = vmatpush1.bf16.msra.mxu0 %v5952_v22 }
 0x415   : > { %5954 = vmatprep.subr.bf16.mxu0 %v8684_v17 }
 0x460   : > { %v5668_v3 = vpop.f32.mrb[96].mxu0 }
 0x461   : > { %v2511_v37 = vpop.f32.mrb[97].mxu0  ;;  %v2517_v47 = vadd.f32 %v5668_v3, %v7461_v2  ;;  %v3385_v3 = vld [vmem:[%s8530_s7 + $0x48] sm:$0xff] }
 0x462   : > { %v2512_v33 = vadd.f32 %v7461_v2, %v2511_v37  ;;  %v3384_v37 = vld [vmem:[%s8530_s7 + $0x40] sm:$0xff] }
 0x463   : > { %v2831_v48 = vmax.f32 %v2517_v47, 0.0 }
 0x464   : > { %v2830_v56 = vmax.f32 %v2512_v33, 0.0  ;;  %v5671_v43 = vpop.f32.mrb[98].mxu0  ;;  %v6080_v33 = vld [vmem:[%s6343_s25 + $0x10] sm:$0xff] }
 0x465   : > { %v2521_v14 = vpop.f32.mrb[99].mxu0 }
 0x466   : > { %2992 = vmatmul.mubr.f32.vlgmr.msra.gmra.mrb[160].mxu1 %v2830_v56  ;;  %v2522_v28 = vadd.f32 %v7461_v2, %v2521_v14  ;;  %v2527_v56 = vadd.f32 %v5671_v43, %v7461_v2  ;;  %v3386_v43 = vld [vmem:[%s8530_s7 + $0x50] sm:$0xff] }
 0x467   : > { %4595 = vmatprep.mubr.msk.f32.mxu1 %vm432_vm0, %v6079_v54  ;;  %v5955_v54 = vpack.c.bf16 %v3385_v3, %v3384_v37  ;;  %v6082_v37 = vld [vmem:[%s6343_s25 + $0x20] sm:$0xff] }
 0x468   : > { %v5674_v52 = vpop.f32.mrb[100].mxu0  ;;  %v2832_v14 = vmax.f32 %v2522_v28, 0.0  ;;  %v2833_v63 = vmax.f32 %v2527_v56, 0.0  ;;  %v3387_v28 = vld [vmem:[%s8530_s7 + $0x58] sm:$0xff] }
 0x469   : > { %v2531_v22 = vpop.f32.mrb[101].mxu0  ;;  %5956 = vmatpush1.bf16.msra.mxu0 %v5955_v54  ;;  %v2537_v3 = vadd.f32 %v5674_v52, %v7461_v2 }
 0x46a   : > { %2997 = vmatmul.mubr.f32.gmra.mrb[162].mxu1 %v2831_v48  ;;  %5957 = vmatprep.subr.bf16.mxu0 %v8684_v17  ;;  %v6081_v48 = vld [vmem:[%s6343_s25 + $0x18] sm:$0xff]  ;;  %v2532_v23 = vadd.f32 %v7461_v2, %v2531_v22  ;;  %v5958_v22 = vpack.c.bf16 %v3387_v28, %v3386_v43 }
 0x46b   : > { %4596 = vmatprep.mubr.msk.f32.mxu1 %vm432_vm0, %v6080_v33 }
 0x46c   : > { %v5677_v47 = vpop.f32.mrb[102].mxu0  ;;  %v2834_v54 = vmax.f32 %v2532_v23, 0.0 }
 0x46d   : > { %v2541_v13 = vpop.f32.mrb[103].mxu0  ;;  %5959 = vmatpush1.bf16.msra.mxu0 %v5958_v22  ;;  %v2547_v23 = vadd.f32 %v5677_v47, %v7461_v2 }
 0x46e   : > { %3002 = vmatmul.mubr.f32.gmra.mrb[164].mxu1 %v2832_v14  ;;  %5960 = vmatprep.subr.bf16.mxu0 %v8684_v17 }
 0x46f   : > { %4597 = vmatprep.mubr.msk.f32.mxu1 %vm432_vm0, %v6081_v48  ;;  %v2835_v48 = vmax.f32 %v2537_v3, 0.0  ;;  %v3388_v3 = vld [vmem:[%s8530_s7 + $0x60] sm:$0xff]  ;;  %v2837_v47 = vmax.f32 %v2547_v23, 0.0 }
 0x470   : > { %v5680_v11 = vpop.f32.mrb[104].mxu0 }
 0x471   : > { %v2551_v33 = vpop.f32.mrb[105].mxu0 }
 0x472   : > { %3007 = vmatmul.mubr.f32.gmra.mrb[166].mxu1 %v2833_v63  ;;  %v6083_v63 = vld [vmem:[%s6343_s25 + $0x28] sm:$0xff]  ;;  %v2552_v22 = vadd.f32 %v7461_v2, %v2551_v33 }
 0x473   : > { %4598 = vmatprep.mubr.msk.f32.mxu1 %vm432_vm0, %v6082_v37  ;;  %v2542_v37 = vadd.f32 %v7461_v2, %v2541_v13  ;;  %v3389_v13 = vld [vmem:[%s8530_s7 + $0x68] sm:$0xff] }
 0x474   : > { %v5683_v56 = vpop.f32.mrb[106].mxu0  ;;  %v6087_v33 = vld [vmem:[%s6343_s25 + $0x48] sm:$0xff] }
 0x475   : > { %v2561_v14 = vpop.f32.mrb[107].mxu0  ;;  %v2836_v52 = vmax.f32 %v2542_v37, 0.0  ;;  %v6086_v37 = vld [vmem:[%s6343_s25 + $0x40] sm:$0xff] }
 0x476   : > { %3012 = vmatmul.mubr.f32.gmra.mrb[168].mxu1 %v2834_v54  ;;  %v6085_v54 = vld [vmem:[%s6343_s25 + $0x38] sm:$0xff] }
 0x477   : > { %4599 = vmatprep.mubr.msk.f32.mxu1 %vm432_vm0, %v6083_v63 }
 0x478   : > { %v5686_v10 = vpop.f32.mrb[108].mxu0 }
 0x479   : > { %v2571_v16 = vpop.f32.mrb[109].mxu0 }
 0x47a   : > { %3017 = vmatmul.mubr.f32.gmra.mrb[170].mxu1 %v2835_v48 }
 0x47b   : > { %4600 = vmatprep.mubr.msk.f32.mxu1 %vm432_vm0, %v6084_v34  ;;  %v5961_v34 = vpack.c.bf16 %v3389_v13, %v3388_v3  ;;  %v2562_v13 = vadd.f32 %v7461_v2, %v2561_v14  ;;  %v2567_v14 = vadd.f32 %v5683_v56, %v7461_v2  ;;  %v6090_v56 = vld [vmem:[%s6343_s25 + $0x60] sm:$0xff] }
 0x47c   : > { %v7498_v43 = vpop.f32.mrb[110].mxu0 }
 0x47d   : > { %v2581_v28 = vpop.f32.mrb[111].mxu0  ;;  %5962 = vmatpush1.bf16.msra.mxu0 %v5961_v34  ;;  %v2841_v55 = vmax.f32 %v2567_v14, 0.0 }
 0x47e   : > { %3022 = vmatmul.mubr.f32.gmra.mrb[172].mxu1 %v2836_v52  ;;  %5963 = vmatprep.subr.bf16.mxu0 %v8684_v17  ;;  %v2557_v52 = vadd.f32 %v5680_v11, %v7461_v2  ;;  %v3390_v11 = vld [vmem:[%s8530_s7 + $0x70] sm:$0xff]  ;;  %v2582_v24 = vadd.f32 %v7461_v2, %v2581_v28 }
 0x47f   : > { %4601 = vmatprep.mubr.msk.f32.mxu1 %vm432_vm0, %v6085_v54  ;;  %v2838_v54 = vmax.f32 %v2552_v22, 0.0  ;;  %v3391_v22 = vld [vmem:[%s8530_s7 + $0x78] sm:$0xff]  ;;  %v3394_v28 = vld [vmem:[%s8530_s7 + $0x90] sm:$0xff] }
 0x480   : > { %v7509_v63 = vpop.f32.mrb[112].mxu0  ;;  %v2839_v3 = vmax.f32 %v2557_v52, 0.0  ;;  %v5964_v52 = vpack.c.bf16 %v3391_v22, %v3390_v11  ;;  %v3393_v22 = vld [vmem:[%s8530_s7 + $0x88] sm:$0xff] }
 0x481   : > { %v7511_v48 = vpop.f32.mrb[113].mxu0 }
 0x482   : > { %3027 = vmatmul.mubr.f32.gmra.mrb[174].mxu1 %v2837_v47  ;;  %5965 = vmatpush1.bf16.msra.mxu0 %v5964_v52  ;;  %v2577_v52 = vadd.f32 %v5686_v10, %v7461_v2 }
 0x483   : > { %4602 = vmatprep.mubr.msk.f32.mxu1 %vm432_vm0, %v6086_v37  ;;  %v6088_v37 = vld [vmem:[%s6343_s25 + $0x50] sm:$0xff]  ;;  %5966 = vmatprep.subr.bf16.mxu0 %v8684_v17 }
 0x484   : > { %v7517_v36 = vpop.f32.mrb[114].mxu0 }
 0x485   : > { %v7519_v23 = vpop.f32.mrb[115].mxu0 }
 0x486   : > { %3032 = vmatmul.mubr.f32.gmra.mrb[176].mxu1 %v2838_v54  ;;  %v2840_v54 = vmax.f32 %v2562_v13, 0.0  ;;  %v3392_v13 = vld [vmem:[%s8530_s7 + $0x80] sm:$0xff] }
 0x487   : > { %4603 = vmatprep.mubr.msk.f32.mxu1 %vm432_vm0, %v6087_v33 }
 0x488   : > { %v7524_v34 = vpop.f32.mrb[116].mxu0 }
 0x489   : > { %v7526_v47 = vpop.f32.mrb[117].mxu0 }
 0x48a   : > { %3037 = vmatmul.mubr.f32.gmra.mrb[178].mxu1 %v2839_v3  ;;  %v6089_v3 = vld [vmem:[%s6343_s25 + $0x58] sm:$0xff] }
 0x48b   : > { %4604 = vmatprep.mubr.msk.f32.mxu1 %vm432_vm0, %v6088_v37  ;;  %v2572_v37 = vadd.f32 %v7461_v2, %v2571_v16 }
 0x48c   : > { %v7537_v33 = vpop.f32.mrb[118].mxu0 }
 0x48d   : > { %v7539_v59 = vpop.f32.mrb[119].mxu0  ;;  %v2842_v16 = vmax.f32 %v2572_v37, 0.0  ;;  %v6092_v37 = vld [vmem:[%s6343_s25 + $0x70] sm:$0xff] }
 0x48e   : > { %3042 = vmatmul.mubr.f32.gmra.mrb[180].mxu1 %v2840_v54  ;;  %v5967_v54 = vpack.c.bf16 %v3393_v22, %v3392_v13  ;;  %v2587_v13 = vadd.f32 %v7498_v43, %v7461_v2  ;;  %v2844_v22 = vmax.f32 %v2582_v24, 0.0  ;;  %v2622_v44 = vadd.f32 %v7461_v2, %v7539_v59  ;;  %v6101_v59 = vld [vmem:[%s6343_s25 + $0xb8] sm:$0xff] }
 0x48f   : > { %4605 = vmatprep.mubr.msk.f32.mxu1 %vm432_vm0, %v6089_v3 }
 0x490   : > { %v7545_v29 = vpop.f32.mrb[120].mxu0  ;;  %5968 = vmatpush1.bf16.msra.mxu0 %v5967_v54  ;;  %v2845_v24 = vmax.f32 %v2587_v13, 0.0 }
 0x491   : > { %v7547_v11 = vpop.f32.mrb[121].mxu0  ;;  %5969 = vmatprep.subr.bf16.mxu0 %v8684_v17 }
 0x492   : > { %3047 = vmatmul.mubr.f32.gmra.mrb[182].mxu1 %v2841_v55  ;;  %v6091_v55 = vld [vmem:[%s6343_s25 + $0x68] sm:$0xff] }
 0x493   : > { %4606 = vmatprep.mubr.msk.f32.mxu1 %vm432_vm0, %v6090_v56  ;;  %v2843_v56 = vmax.f32 %v2577_v52, 0.0  ;;  %v3395_v52 = vld [vmem:[%s8530_s7 + $0x98] sm:$0xff] }
 0x494   : > { %v7558_v14 = vpop.f32.mrb[122].mxu0  ;;  %v5970_v43 = vpack.c.bf16 %v3395_v52, %v3394_v28 }
 0x495   : > { %v7560_v3 = vpop.f32.mrb[123].mxu0 }
 0x496   : > { %3052 = vmatmul.mubr.f32.gmra.mrb[184].mxu1 %v2842_v16  ;;  %5971 = vmatpush1.bf16.msra.mxu0 %v5970_v43 }
 0x497   : > { %4607 = vmatprep.mubr.msk.f32.mxu1 %vm432_vm0, %v6091_v55  ;;  %v6093_v55 = vld [vmem:[%s6343_s25 + $0x78] sm:$0xff]  ;;  %5972 = vmatprep.subr.bf16.mxu0 %v8684_v17 }
 0x498   : > { %v7566_v38 = vpop.f32.mrb[124].mxu0 }
 0x499   : > { %v7568_v10 = vpop.f32.mrb[125].mxu0 }
 0x49a   : > { %3057 = vmatmul.mubr.f32.gmra.mrb[186].mxu1 %v2843_v56  ;;  %v2592_v56 = vadd.f32 %v7461_v2, %v7511_v48  ;;  %v6095_v48 = vld [vmem:[%s6343_s25 + $0x88] sm:$0xff] }
 0x49b   : > { %4608 = vmatprep.mubr.msk.f32.mxu1 %vm432_vm0, %v6092_v37 }
 0x49c   : > { %v7574_v16 = vpop.f32.mrb[126].mxu0  ;;  %v2846_v28 = vmax.f32 %v2592_v56, 0.0  ;;  %v3397_v56 = vld [vmem:[%s8530_s7 + $0xa8] sm:$0xff] }
 0x49d   : > { %v7576_v54 = vpop.f32.mrb[127].mxu0 }
 0x49e   : > { %3062 = vmatmul.mubr.f32.gmra.mrb[188].mxu1 %v2844_v22 }
 0x49f   : > { %4609 = vmatprep.mubr.msk.f32.mxu1 %vm432_vm0, %v6093_v55  ;;  %v2597_v55 = vadd.f32 %v7509_v63, %v7461_v2  ;;  %v3396_v63 = vld [vmem:[%s8530_s7 + $0xa0] sm:$0xff] }
 0x4a0   : > { %v7588_v37 = vpop.f32.mrb[128].mxu0 }
 0x4a1   : > { %v7590_v22 = vpop.f32.mrb[129].mxu0  ;;  %v2847_v43 = vmax.f32 %v2597_v55, 0.0  ;;  %v5973_v55 = vpack.c.bf16 %v3397_v56, %v3396_v63  ;;  %v2612_v63 = vadd.f32 %v7461_v2, %v7526_v47  ;;  %v2617_v47 = vadd.f32 %v7524_v34, %v7461_v2  ;;  %v6100_v34 = vld [vmem:[%s6343_s25 + $0xb0] sm:$0xff] }
 0x4a2   : > { %3067 = vmatmul.mubr.f32.gmra.mrb[190].mxu1 %v2845_v24  ;;  %v2602_v24 = vadd.f32 %v7461_v2, %v7519_v23  ;;  %v2607_v23 = vadd.f32 %v7517_v36, %v7461_v2 }
 0x4a3   : > { %4610 = vmatprep.mubr.msk.f32.mxu1 %vm432_vm0, %v6094_v61  ;;  %5974 = vmatpush1.bf16.msra.mxu0 %v5973_v55 }
 0x4a4   : > { %v7597_v13 = vpop.f32.mrb[130].mxu0  ;;  %5975 = vmatprep.subr.bf16.mxu0 %v8684_v17  ;;  %v2849_v30 = vmax.f32 %v2607_v23, 0.0  ;;  %v3398_v17 = vld [vmem:[%s8530_s7 + $0xb0] sm:$0xff] }
 0x4a5   : > { %v7599_v52 = vpop.f32.mrb[131].mxu0 }
 0x4a6   : > { %3072 = vmatmul.mubr.f32.gmra.mrb[192].mxu1 %v2846_v28  ;;  %v6096_v28 = vld [vmem:[%s6343_s25 + $0x90] sm:$0xff] }
 0x4a7   : > { %4611 = vmatprep.mubr.msk.f32.mxu1 %vm432_vm0, %v6095_v48  ;;  %v2848_v48 = vmax.f32 %v2602_v24, 0.0  ;;  %v6098_v24 = vld [vmem:[%s6343_s25 + $0xa0] sm:$0xff] }
 0x4a8   : > { %v7605_v51 = vpop.f32.mrb[132].mxu0 }
 0x4a9   : > { %v7607_v61 = vpop.f32.mrb[133].mxu0 }
 0x4aa   : > { %3077 = vmatmul.mubr.f32.gmra.mrb[194].mxu1 %v2847_v43 }
 0x4ab   : > { %4612 = vmatprep.mubr.msk.f32.mxu1 %vm432_vm0, %v6096_v28  ;;  %v2850_v28 = vmax.f32 %v2612_v63, 0.0  ;;  %v2627_v63 = vadd.f32 %v7537_v33, %v7461_v2  ;;  %v2637_v33 = vadd.f32 %v7545_v29, %v7461_v2  ;;  %v6104_v29 = vld [vmem:[%s6343_s25 + $0xd0] sm:$0xff] }
 0x4ac   : > { %v7619_v25 = vpop.f32.mrb[134].mxu0 }
 0x4ad   : > { %v7621_v43 = vpop.f32.mrb[135].mxu0 }
 0x4ae   : > { %3082 = vmatmul.mubr.f32.gmra.mrb[196].mxu1 %v2848_v48  ;;  %v6099_v48 = vld [vmem:[%s6343_s25 + $0xa8] sm:$0xff] }
 0x4af   : > { %4613 = vmatprep.mubr.msk.f32.mxu1 %vm432_vm0, %v6097_v19  ;;  %v3399_v19 = vld [vmem:[%s8530_s7 + $0xb8] sm:$0xff] }
 0x4b0   : > { %v7628_v56 = vpop.f32.mrb[136].mxu0  ;;  %v5976_v23 = vpack.c.bf16 %v3399_v19, %v3398_v17  ;;  %v2852_v17 = vmax.f32 %v2622_v44, 0.0  ;;  %v6102_v44 = vld [vmem:[%s6343_s25 + $0xc0] sm:$0xff] }
 0x4b1   : > { %v7630_v36 = vpop.f32.mrb[137].mxu0 }
 0x4b2   : > { %3087 = vmatmul.mubr.f32.gmra.mrb[198].mxu1 %v2849_v30  ;;  %5977 = vmatpush1.bf16.msra.mxu0 %v5976_v23  ;;  %v2632_v23 = vadd.f32 %v7461_v2, %v7547_v11  ;;  %v6103_v11 = vld [vmem:[%s6343_s25 + $0xc8] sm:$0xff] }
 0x4b3   : > { %4614 = vmatprep.mubr.msk.f32.mxu1 %vm432_vm0, %v6098_v24  ;;  %v2851_v24 = vmax.f32 %v2617_v47, 0.0  ;;  %v2853_v47 = vmax.f32 %v2627_v63, 0.0  ;;  %v2855_v63 = vmax.f32 %v2637_v33, 0.0 }
 0x4b4   : > { %v7642_v55 = vpop.f32.mrb[138].mxu0 }
 0x4b5   : > { %v7644_v30 = vpop.f32.mrb[139].mxu0 }
 0x4b6   : > { %3092 = vmatmul.mubr.f32.gmra.mrb[200].mxu1 %v2850_v28 }
 0x4b7   : > { %4615 = vmatprep.mubr.msk.f32.mxu1 %vm432_vm0, %v6099_v48 }
 0x4b8   : > { %v7650_v45 = vpop.f32.mrb[140].mxu0 }
 0x4b9   : > { %v7652_v4 = vpop.f32.mrb[141].mxu0 }
 0x4ba   : > { %3097 = vmatmul.mubr.f32.gmra.mrb[202].mxu1 %v2851_v24 }
 0x4bb   : > { %4616 = vmatprep.mubr.msk.f32.mxu1 %vm432_vm0, %v6100_v34  ;;  %v2854_v34 = vmax.f32 %v2632_v23, 0.0  ;;  %v2647_v23 = vadd.f32 %v7558_v14, %v7461_v2  ;;  %v6106_v14 = vld [vmem:[%s6343_s25 + $0xe0] sm:$0xff] }
 0x4bc   : > { %v7658_v19 = vpop.f32.mrb[142].mxu0 }
 0x4bd   : > { %v7660_v28 = vpop.f32.mrb[143].mxu0  ;;  %v2857_v33 = vmax.f32 %v2647_v23, 0.0 }
 0x4be   : > { %3102 = vmatmul.mubr.f32.gmra.mrb[204].mxu1 %v2852_v17 }
 0x4bf   : > { %4617 = vmatprep.mubr.msk.f32.mxu1 %vm432_vm0, %v6101_v59 }
 0x4c0   : > { %v7666_v48 = vpop.f32.mrb[144].mxu0 }
 0x4c1   : > { %v7668_v24 = vpop.f32.mrb[145].mxu0 }
 0x4c2   : > { %3107 = vmatmul.mubr.f32.gmra.mrb[206].mxu1 %v2853_v47  ;;  %v2642_v47 = vadd.f32 %v7461_v2, %v7560_v3  ;;  %v6105_v3 = vld [vmem:[%s6343_s25 + $0xd8] sm:$0xff] }
 0x4c3   : > { %4618 = vmatprep.mubr.msk.f32.mxu1 %vm432_vm0, %v6102_v44 }
 0x4c4   : > { %v7674_v17 = vpop.f32.mrb[146].mxu0 }
 0x4c5   : > { %v7676_v59 = vpop.f32.mrb[147].mxu0 }
 0x4c6   : > { %3112 = vmatmul.mubr.f32.gmra.mrb[208].mxu1 %v2854_v34  ;;  %v2856_v34 = vmax.f32 %v2642_v47, 0.0  ;;  %v2657_v47 = vadd.f32 %v7566_v38, %v7461_v2  ;;  %v6108_v38 = vld [vmem:[%s6343_s25 + $0xf0] sm:$0xff] }
 0x4c7   : > { %4619 = vmatprep.mubr.msk.f32.mxu1 %vm432_vm0, %v6103_v11 }
 0x4c8   : > { %v7682_v12 = vpop.f32.mrb[148].mxu0  ;;  %v2859_v23 = vmax.f32 %v2657_v47, 0.0 }
 0x4c9   : > { %v7684_v44 = vpop.f32.mrb[149].mxu0 }
 0x4ca   : > { %3117 = vmatmul.mubr.f32.gmra.mrb[210].mxu1 %v2855_v63  ;;  %v2652_v63 = vadd.f32 %v7461_v2, %v7568_v10  ;;  %v6107_v10 = vld [vmem:[%s6343_s25 + $0xe8] sm:$0xff] }
 0x4cb   : > { %4620 = vmatprep.mubr.msk.f32.mxu1 %vm432_vm0, %v6104_v29 }
 0x4cc   : > { %v7690_v7 = vpop.f32.mrb[150].mxu0 }
 0x4cd   : > { %v7692_v11 = vpop.f32.mrb[151].mxu0 }
 0x4ce   : > { %3122 = vmatmul.mubr.f32.gmra.mrb[212].mxu1 %v2856_v34  ;;  %v2858_v34 = vmax.f32 %v2652_v63, 0.0  ;;  %v2667_v63 = vadd.f32 %v7574_v16, %v7461_v2  ;;  %v2677_v16 = vadd.f32 %v7588_v37, %v7461_v2  ;;  %v6113_v37 = vld [vmem:[%s6343_s25 + $0x118] sm:$0xff] }
 0x4cf   : > { %4621 = vmatprep.mubr.msk.f32.mxu1 %vm432_vm0, %v6105_v3 }
 0x4d0   : > { %v7698_v32 = vpop.f32.mrb[152].mxu0  ;;  %v2863_v8 = vmax.f32 %v2677_v16, 0.0 }
 0x4d1   : > { %v7700_v29 = vpop.f32.mrb[153].mxu0 }
 0x4d2   : > { %3127 = vmatmul.mubr.f32.gmra.mrb[214].mxu1 %v2857_v33  ;;  %v2662_v33 = vadd.f32 %v7461_v2, %v7576_v54  ;;  %v6109_v54 = vld [vmem:[%s6343_s25 + $0xf8] sm:$0xff] }
 0x4d3   : > { %4622 = vmatprep.mubr.msk.f32.mxu1 %vm432_vm0, %v6106_v14 }
 0x4d4   : > { %v7706_v58 = vpop.f32.mrb[154].mxu0 }
 0x4d5   : > { %v7708_v3 = vpop.f32.mrb[155].mxu0 }
 0x4d6   : > { %3132 = vmatmul.mubr.f32.gmra.mrb[216].mxu1 %v2858_v34  ;;  %v2860_v34 = vmax.f32 %v2662_v33, 0.0 }
 0x4d7   : > { %4623 = vmatprep.mubr.msk.f32.mxu1 %vm432_vm0, %v6107_v10  ;;  %v2861_v10 = vmax.f32 %v2667_v63, 0.0  ;;  %v2682_v63 = vadd.f32 %v7461_v2, %v7599_v52  ;;  %v2697_v52 = vadd.f32 %v7605_v51, %v7461_v2  ;;  %v6117_v51 = vld [vmem:[%s6343_s25 + $0x138] sm:$0xff] }
 0x4d8   : > { %v7714_v20 = vpop.f32.mrb[156].mxu0 }
 0x4d9   : > { %v7716_v14 = vpop.f32.mrb[157].mxu0 }
 0x4da   : > { %3137 = vmatmul.mubr.f32.gmra.mrb[218].mxu1 %v2859_v23  ;;  %v2672_v23 = vadd.f32 %v7461_v2, %v7590_v22  ;;  %v6112_v22 = vld [vmem:[%s6343_s25 + $0x110] sm:$0xff] }
 0x4db   : > { %4624 = vmatprep.mubr.msk.f32.mxu1 %vm432_vm0, %v6108_v38  ;;  %v6110_v38 = vld [vmem:[%s6343_s25 + $0x100] sm:$0xff] }
 0x4dc   : > { %v7722_v60 = vpop.f32.mrb[158].mxu0  ;;  %v2862_v33 = vmax.f32 %v2672_v23, 0.0 }
 0x4dd   : > { %v7724_v47 = vpop.f32.mrb[159].mxu0 }
 0x4de   : > { %3142 = vmatmul.mubr.f32.gmra.mrb[220].mxu1 %v2860_v34  ;;  %v6111_v34 = vld [vmem:[%s6343_s25 + $0x108] sm:$0xff] }
 0x4df   : > { %4625 = vmatprep.mubr.msk.f32.mxu1 %vm432_vm0, %v6109_v54  ;;  %v2687_v54 = vadd.f32 %v7597_v13, %v7461_v2  ;;  %v6115_v13 = vld [vmem:[%s6343_s25 + $0x128] sm:$0xff] }
 0x4e1   : > { %v2865_v23 = vmax.f32 %v2687_v54, 0.0 }
 0x4e2   : > { %3147 = vmatmul.mubr.f32.gmra.mrb[222].mxu1 %v2861_v10  ;;  %v2864_v10 = vmax.f32 %v2682_v63, 0.0  ;;  %v2707_v63 = vadd.f32 %v7619_v25, %v7461_v2  ;;  %v6119_v25 = vld [vmem:[%s6343_s25 + $0x148] sm:$0xff] }
 0x4e3   : > { %4626 = vmatprep.mubr.msk.f32.mxu1 %vm432_vm0, %v6110_v38  ;;  %v2692_v38 = vadd.f32 %v7461_v2, %v7607_v61  ;;  %v6116_v61 = vld [vmem:[%s6343_s25 + $0x130] sm:$0xff] }
 0x4e4   : > { %v2869_v54 = vmax.f32 %v2707_v63, 0.0 }
 0x4e5   : > { %v2866_v16 = vmax.f32 %v2692_v38, 0.0 }
 0x4e6   : > { %3152 = vmatmul.mubr.f32.gmra.mrb[224].mxu1 %v2862_v33  ;;  %v2867_v33 = vmax.f32 %v2697_v52, 0.0  ;;  %v2727_v52 = vadd.f32 %v7642_v55, %v7461_v2  ;;  %v6123_v55 = vld [vmem:[%s6343_s25 + $0x168] sm:$0xff] }
 0x4e7   : > { %4627 = vmatprep.mubr.msk.f32.mxu1 %vm432_vm0, %v6111_v34  ;;  %v2702_v34 = vadd.f32 %v7461_v2, %v7621_v43  ;;  %v6118_v43 = vld [vmem:[%s6343_s25 + $0x140] sm:$0xff] }
 0x4ea   : > { %3157 = vmatmul.mubr.f32.gmra.mrb[226].mxu1 %v2863_v8  ;;  %v6114_v8 = vld [vmem:[%s6343_s25 + $0x120] sm:$0xff] }
 0x4eb   : > { %4628 = vmatprep.mubr.msk.f32.mxu1 %vm432_vm0, %v6112_v22  ;;  %v2868_v22 = vmax.f32 %v2702_v34, 0.0  ;;  %v2737_v34 = vadd.f32 %v7650_v45, %v7461_v2  ;;  %v6125_v45 = vld [vmem:[%s6343_s25 + $0x178] sm:$0xff] }
 0x4ed   : > { %v2875_v63 = vmax.f32 %v2737_v34, 0.0 }
 0x4ee   : > { %3162 = vmatmul.mubr.f32.gmra.mrb[228].mxu1 %v2864_v10  ;;  %v2712_v10 = vadd.f32 %v7461_v2, %v7630_v36  ;;  %v6120_v36 = vld [vmem:[%s6343_s25 + $0x150] sm:$0xff] }
 0x4ef   : > { %4629 = vmatprep.mubr.msk.f32.mxu1 %vm432_vm0, %v6113_v37  ;;  %v2717_v37 = vadd.f32 %v7628_v56, %v7461_v2  ;;  %v6121_v56 = vld [vmem:[%s6343_s25 + $0x158] sm:$0xff] }
 0x4f1   : > { %v2871_v38 = vmax.f32 %v2717_v37, 0.0  ;;  %v2757_v37 = vadd.f32 %v7666_v48, %v7461_v2  ;;  %v6129_v48 = vld [vmem:[%s6343_s25 + $0x198] sm:$0xff] }
 0x4f2   : > { %3167 = vmatmul.mubr.f32.gmra.mrb[230].mxu1 %v2865_v23  ;;  %v2870_v23 = vmax.f32 %v2712_v10, 0.0 }
 0x4f3   : > { %4630 = vmatprep.mubr.msk.f32.mxu1 %vm432_vm0, %v6114_v8  ;;  %v2722_v8 = vadd.f32 %v7461_v2, %v7644_v30  ;;  %v6122_v30 = vld [vmem:[%s6343_s25 + $0x160] sm:$0xff] }
 0x4f6   : > { %3172 = vmatmul.mubr.f32.gmra.mrb[232].mxu1 %v2866_v16  ;;  %v2872_v16 = vmax.f32 %v2722_v8, 0.0  ;;  %v2767_v8 = vadd.f32 %v7674_v17, %v7461_v2  ;;  %v7817_v17 = vld [vmem:[%s8531_s8 + $0x5] ss:$0 sm:$0xff] }
 0x4f7   : > { %4631 = vmatprep.mubr.msk.f32.mxu1 %vm432_vm0, %v6115_v13  ;;  %v2873_v13 = vmax.f32 %v2727_v52, 0.0 }
 0x4f8   : > { %v2881_v52 = vmax.f32 %v2767_v8, 0.0 }
 0x4fa   : > { %3177 = vmatmul.mubr.f32.gmra.mrb[234].mxu1 %v2867_v33  ;;  %v2732_v33 = vadd.f32 %v7461_v2, %v7652_v4  ;;  %v6124_v4 = vld [vmem:[%s6343_s25 + $0x170] sm:$0xff] }
 0x4fb   : > { %4632 = vmatprep.mubr.msk.f32.mxu1 %vm432_vm0, %v6116_v61 }
 0x4fc   : > { %v2874_v61 = vmax.f32 %v2732_v33, 0.0  ;;  %v6131_v33 = vld [vmem:[%s6343_s25 + $0x1a8] sm:$0xff] }
 0x4fe   : > { %3182 = vmatmul.mubr.f32.gmra.mrb[236].mxu1 %v2868_v22  ;;  %v2742_v22 = vadd.f32 %v7461_v2, %v7660_v28  ;;  %v6126_v28 = vld [vmem:[%s6343_s25 + $0x180] sm:$0xff] }
 0x4ff   : > { %4633 = vmatprep.mubr.msk.f32.mxu1 %vm432_vm0, %v6117_v51  ;;  %v2747_v51 = vadd.f32 %v7658_v19, %v7461_v2  ;;  %v6127_v19 = vld [vmem:[%s6343_s25 + $0x188] sm:$0xff] }
 0x501   : > { %v2877_v10 = vmax.f32 %v2747_v51, 0.0 }
 0x502   : > { %3187 = vmatmul.mubr.f32.gmra.mrb[238].mxu1 %v2869_v54  ;;  %v2876_v54 = vmax.f32 %v2742_v22, 0.0 }
 0x503   : > { %4634 = vmatprep.mubr.msk.f32.mxu1 %vm432_vm0, %v6118_v43  ;;  %v2752_v43 = vadd.f32 %v7461_v2, %v7668_v24  ;;  %v6128_v24 = vld [vmem:[%s6343_s25 + $0x190] sm:$0xff] }
 0x506   : > { %3192 = vmatmul.mubr.f32.gmra.mrb[240].mxu1 %v2870_v23  ;;  %v2878_v23 = vmax.f32 %v2752_v43, 0.0 }
 0x507   : > { %4635 = vmatprep.mubr.msk.f32.mxu1 %vm432_vm0, %v6119_v25  ;;  %v2879_v25 = vmax.f32 %v2757_v37, 0.0 }
 0x50a   : > { %3197 = vmatmul.mubr.f32.gmra.mrb[242].mxu1 %v2871_v38  ;;  %v2762_v38 = vadd.f32 %v7461_v2, %v7676_v59  ;;  %v6130_v59 = vld [vmem:[%s6343_s25 + $0x1a0] sm:$0xff] }
 0x50b   : > { %4636 = vmatprep.mubr.msk.f32.mxu1 %vm432_vm0, %v6120_v36 }
 0x50c   : > { %v2880_v36 = vmax.f32 %v2762_v38, 0.0  ;;  %v2797_v38 = vadd.f32 %v7698_v32, %v7461_v2  ;;  %v2802_v32 = vadd.f32 %v7461_v2, %v7708_v3 }
 0x50e   : > { %3202 = vmatmul.mubr.f32.gmra.mrb[244].mxu1 %v2872_v16  ;;  %v2772_v16 = vadd.f32 %v7461_v2, %v7684_v44  ;;  %v2782_v44 = vadd.f32 %v7461_v2, %v7692_v11 }
 0x50f   : > { %4637 = vmatprep.mubr.msk.f32.mxu1 %vm432_vm0, %v6121_v56  ;;  %v2777_v56 = vadd.f32 %v7682_v12, %v7461_v2  ;;  %v6132_v12 = vld [vmem:[%s6343_s25 + $0x1b0] sm:$0xff] }
 0x510   : > { %v2884_v22 = vmax.f32 %v2782_v44, 0.0  ;;  %v2807_v44 = vadd.f32 %v7706_v58, %v7461_v2  ;;  %v2812_v58 = vadd.f32 %v7461_v2, %v7716_v14 }
 0x512   : > { %3207 = vmatmul.mubr.f32.gmra.mrb[246].mxu1 %v2873_v13  ;;  %v2882_v13 = vmax.f32 %v2772_v16, 0.0  ;;  %v2887_v16 = vmax.f32 %v2797_v38, 0.0 }
 0x513   : > { %4638 = vmatprep.mubr.msk.f32.mxu1 %vm432_vm0, %v6122_v30  ;;  %v2883_v30 = vmax.f32 %v2777_v56, 0.0 }
 0x516   : > { %3212 = vmatmul.mubr.f32.gmra.mrb[248].mxu1 %v2874_v61 }
 0x517   : > { %4639 = vmatprep.mubr.msk.f32.mxu1 %vm432_vm0, %v6123_v55 }
 0x51a   : > { %3217 = vmatmul.mubr.f32.gmra.mrb[250].mxu1 %v2875_v63  ;;  %v2787_v63 = vadd.f32 %v7690_v7, %v7461_v2  ;;  %v2792_v7 = vadd.f32 %v7461_v2, %v7700_v29 }
 0x51b   : > { %4640 = vmatprep.mubr.msk.f32.mxu1 %vm432_vm0, %v6124_v4 }
 0x51c   : > { %v2885_v43 = vmax.f32 %v2787_v63, 0.0  ;;  %v8689_v63 = vmax.f32 %v7071_v62, 0.0  ;;  %v6138_v62 = vld [vmem:[%s6343_s25 + $0x1e0] sm:$0xff] }
 0x51e   : > { %3222 = vmatmul.mubr.f32.gmra.mrb[252].mxu1 %v2876_v54 }
 0x51f   : > { %4641 = vmatprep.mubr.msk.f32.mxu1 %vm432_vm0, %v6125_v45  ;;  %v8685_v45 = vmax.f32 %v7047_v41, 0.0  ;;  %v6134_v41 = vld [vmem:[%s6343_s25 + $0x1c0] sm:$0xff] }
 0x522   : > { %3227 = vmatmul.mubr.f32.gmra.mrb[254].mxu1 %v2877_v10  ;;  %v6133_v10 = vld [vmem:[%s6343_s25 + $0x1b8] sm:$0xff] }
 0x523   : > { %4642 = vmatprep.mubr.msk.f32.mxu1 %vm432_vm0, %v6126_v28 }
 0x526   : > { %3232 = vmatmul.mubr.f32.gmra.mrb[0].mxu1 %v2878_v23 }
 0x527   : > { %4643 = vmatprep.mubr.msk.f32.mxu1 %vm432_vm0, %v6127_v19 }
 0x52a   : > { %3237 = vmatmul.mubr.f32.gmra.mrb[2].mxu1 %v2879_v25  ;;  %v8686_v25 = vmax.f32 %v7044_v39, 0.0  ;;  %v6135_v39 = vld [vmem:[%s6343_s25 + $0x1c8] sm:$0xff] }
 0x52b   : > { %4644 = vmatprep.mubr.msk.f32.mxu1 %vm432_vm0, %v6128_v24  ;;  %v2886_v24 = vmax.f32 %v2792_v7, 0.0 }
 0x52e   : > { %3242 = vmatmul.mubr.f32.gmra.mrb[4].mxu1 %v2880_v36 }
 0x52f   : > { %4645 = vmatprep.mubr.msk.f32.mxu1 %vm432_vm0, %v6129_v48 }
 0x532   : > { %3247 = vmatmul.mubr.f32.gmra.mrb[6].mxu1 %v2881_v52  ;;  %v8687_v52 = vmax.f32 %v7058_v53, 0.0  ;;  %v6136_v53 = vld [vmem:[%s6343_s25 + $0x1d0] sm:$0xff] }
 0x533   : > { %4646 = vmatprep.mubr.msk.f32.mxu1 %vm432_vm0, %v6130_v59 }
 0x536   : > { %3252 = vmatmul.mubr.f32.gmra.mrb[8].mxu1 %v2882_v13 }
 0x537   : > { %4647 = vmatprep.mubr.msk.f32.mxu1 %vm432_vm0, %v6131_v33 }
 0x539   : > { %v2993_v34 = vpop.f32.mrb[160].mxu1 }
 0x53a   : > { %v2994_v61 = vadd.f32 %v7817_v17, %v2993_v34  ;;  %v2995_v55 = vpop.f32.mrb[161].mxu1  ;;  %3257 = vmatmul.mubr.f32.gmra.mrb[10].mxu1 %v2883_v30  ;;  %v8688_v30 = vmax.f32 %v7055_v49, 0.0  ;;  %v2888_v34 = vmax.f32 %v2802_v32, 0.0  ;;  %v6137_v49 = vld [vmem:[%s6343_s25 + $0x1d8] sm:$0xff] }
 0x53b   : > { %4648 = vmatprep.mubr.msk.f32.mxu1 %vm432_vm0, %v6132_v12 }
 0x53c   : > { %v3312_v4 = vmax.f32 %v2994_v61, 0.0 }
 0x53d   : > { %v2998_v51 = vpop.f32.mrb[162].mxu1 }
 0x53e   : > { %v2999_v54 = vadd.f32 %v7817_v17, %v2998_v51  ;;  %v3000_v11 = vpop.f32.mrb[163].mxu1  ;;  %3262 = vmatmul.mubr.f32.gmra.mrb[12].mxu1 %v2884_v22  ;;  %4659 = vmatprep.mubr.msk.f32.mxu0 %vm3405_vm2, %v3312_v4  ;;  %v2889_v22 = vmax.f32 %v2807_v44, 0.0  ;;  %v8695_v44 = vmax.f32 %v7109_v1, 0.0  ;;  %v8697_v1 = vmax.f32 %v7121_v26, 0.0 }
 0x53f   : > { %3663 = vmatmul.mubr.f32.vlgmr.msra.gmra.mrb[160].mxu0 %v8685_v45  ;;  %4649 = vmatprep.mubr.msk.f32.mxu1 %vm432_vm0, %v6133_v10  ;;  %v8690_v45 = vmax.f32 %v7068_v57, 0.0  ;;  %v2817_v10 = vadd.f32 %v7714_v20, %v7461_v2  ;;  %v6139_v57 = vld [vmem:[%s6343_s25 + $0x1e8] sm:$0xff]  ;;  %v2822_v20 = vadd.f32 %v7461_v2, %v7724_v47  ;;  %v8699_v26 = vmax.f32 %v7133_v50, 0.0 }
 0x540   : > { %v3313_v28 = vmax.f32 %v2999_v54, 0.0  ;;  %v8701_v50 = vmax.f32 %v7145_v15, 0.0  ;;  %v8703_v15 = vmax.f32 %v7157_v35, 0.0  ;;  %v8705_v35 = vmax.f32 %v7169_v46, 0.0 }
 0x541   : > { %v3003_v37 = vpop.f32.mrb[164].mxu1 }
 0x542   : > { %v3004_v23 = vadd.f32 %v7817_v17, %v3003_v37  ;;  %v3005_v19 = vpop.f32.mrb[165].mxu1  ;;  %3267 = vmatmul.mubr.f32.gmra.mrb[14].mxu1 %v2885_v43  ;;  %4660 = vmatprep.mubr.msk.f32.mxu0 %vm3405_vm2, %v3313_v28  ;;  %v2890_v43 = vmax.f32 %v2812_v58, 0.0 }
 0x543   : > { %3668 = vmatmul.mubr.f32.gmra.mrb[162].mxu0 %v8686_v25  ;;  %4650 = vmatprep.mubr.msk.f32.mxu1 %vm432_vm0, %v6134_v41  ;;  %v2891_v19 = vmax.f32 %v2817_v10, 0.0 }
 0x544   : > { %v3314_v29 = vmax.f32 %v3004_v23, 0.0  ;;  %v8691_v23 = vmax.f32 %v7085_v9, 0.0  ;;  %v6140_v9 = vld [vmem:[%s6343_s25 + $0x1f0] sm:$0xff] }
 0x545   : > { %v3008_v8 = vpop.f32.mrb[166].mxu1 }
 0x546   : > { %v3009_v36 = vadd.f32 %v7817_v17, %v3008_v8  ;;  %v3010_v48 = vpop.f32.mrb[167].mxu1  ;;  %3272 = vmatmul.mubr.f32.gmra.mrb[16].mxu1 %v2886_v24  ;;  %4661 = vmatprep.mubr.msk.f32.mxu0 %vm3405_vm2, %v3314_v29  ;;  %v8692_v29 = vmax.f32 %v7080_v6, 0.0  ;;  %v2827_v8 = vadd.f32 %v7722_v60, %v7461_v2  ;;  %v6141_v6 = vld [vmem:[%s6343_s25 + $0x1f8] sm:$0xff]  ;;  %s332_s25 = sand.u32 1, %s6188_s30  }
 0x547   : > { %3673 = vmatmul.mubr.f32.gmra.mrb[164].mxu0 %v8687_v52  ;;  %4651 = vmatprep.mubr.msk.f32.mxu1 %vm432_vm0, %v6135_v39  ;;  %s4519_s15 = sshll.u32 %s332_s25, 9 }
 0x548   : > { %v3315_v59 = vmax.f32 %v3009_v36, 0.0  ;;  %v2892_v36 = vmax.f32 %v2822_v20, 0.0  ;;  %v2893_v32 = vmax.f32 %v2827_v8, 0.0  ;;  %s8085_s30 = scalar_lea.vmem [#allocation2], %s4519_s15  }
 0x549   : > { %v3013_v56 = vpop.f32.mrb[168].mxu1 }
 0x54a   : > { %v3014_v13 = vadd.f32 %v7817_v17, %v3013_v56  ;;  %v3015_v33 = vpop.f32.mrb[169].mxu1  ;;  %3277 = vmatmul.mubr.f32.gmra.mrb[18].mxu1 %v2887_v16  ;;  %4662 = vmatprep.mubr.msk.f32.mxu0 %vm3405_vm2, %v3315_v59  ;;  %v8693_v16 = vmax.f32 %v7097_v21, 0.0 }
 0x54b   : > { %3678 = vmatmul.mubr.f32.gmra.mrb[166].mxu0 %v8688_v30  ;;  %4652 = vmatprep.mubr.msk.f32.mxu1 %vm432_vm0, %v6136_v53 }
 0x54c   : > { %v3316_v3 = vmax.f32 %v3014_v13, 0.0  ;;  %v8694_v13 = vmax.f32 %v7092_v0, 0.0  ;;  %v8696_v0 = vmax.f32 %v7104_v27, 0.0  ;;  %v8698_v27 = vmax.f32 %v7116_v18, 0.0 }
 0x54d   : > { %v3018_v61 = vpop.f32.mrb[170].mxu1  ;;  %v8700_v18 = vmax.f32 %v7128_v42, 0.0  ;;  %v8702_v42 = vmax.f32 %v7140_v5, 0.0  ;;  %v8704_v5 = vmax.f32 %v7152_v31, 0.0  ;;  %v8706_v31 = vmax.f32 %v7164_v40, 0.0 }
 0x54e   : > { %v3019_v55 = vadd.f32 %v7817_v17, %v3018_v61  ;;  %v3020_v12 = vpop.f32.mrb[171].mxu1  ;;  %3282 = vmatmul.mubr.f32.gmra.mrb[20].mxu1 %v2888_v34  ;;  %4663 = vmatprep.mubr.msk.f32.mxu0 %vm3405_vm2, %v3316_v3 }
 0x54f   : > { %3683 = vmatmul.mubr.f32.gmra.mrb[168].mxu0 %v8689_v63  ;;  %4653 = vmatprep.mubr.msk.f32.mxu1 %vm432_vm0, %v6137_v49 }
 0x550   : > { %v3317_v4 = vmax.f32 %v3019_v55, 0.0 }
 0x551   : > { %v3023_v51 = vpop.f32.mrb[172].mxu1 }
 0x552   : > { %v3024_v54 = vadd.f32 %v7817_v17, %v3023_v51  ;;  %v3025_v11 = vpop.f32.mrb[173].mxu1  ;;  %3287 = vmatmul.mubr.f32.gmra.mrb[22].mxu1 %v2889_v22  ;;  %4664 = vmatprep.mubr.msk.f32.mxu0 %vm3405_vm2, %v3317_v4 }
 0x553   : > { %3688 = vmatmul.mubr.f32.gmra.mrb[170].mxu0 %v8690_v45  ;;  %4654 = vmatprep.mubr.msk.f32.mxu1 %vm432_vm0, %v6138_v62 }
 0x554   : > { %v3318_v14 = vmax.f32 %v3024_v54, 0.0 }
 0x555   : > { %v3028_v7 = vpop.f32.mrb[174].mxu1 }
 0x556   : > { %v3029_v28 = vadd.f32 %v7817_v17, %v3028_v7  ;;  %v3030_v37 = vpop.f32.mrb[175].mxu1  ;;  %3292 = vmatmul.mubr.f32.gmra.mrb[24].mxu1 %v2890_v43  ;;  %4665 = vmatprep.mubr.msk.f32.mxu0 %vm3405_vm2, %v3318_v14 }
 0x557   : > { %3693 = vmatmul.mubr.f32.gmra.mrb[172].mxu0 %v8691_v23  ;;  %4655 = vmatprep.mubr.msk.f32.mxu1 %vm432_vm0, %v6139_v57 }
 0x558   : > { %v3319_v25 = vmax.f32 %v3029_v28, 0.0 }
 0x559   : > { %v3033_v41 = vpop.f32.mrb[176].mxu1 }
 0x55a   : > { %v3034_v38 = vadd.f32 %v7817_v17, %v3033_v41  ;;  %v3035_v24 = vpop.f32.mrb[177].mxu1  ;;  %3297 = vmatmul.mubr.f32.gmra.mrb[26].mxu1 %v2891_v19  ;;  %4666 = vmatprep.mubr.msk.f32.mxu0 %vm3405_vm2, %v3319_v25 }
 0x55b   : > { %3698 = vmatmul.mubr.f32.gmra.mrb[174].mxu0 %v8692_v29  ;;  %4656 = vmatprep.mubr.msk.f32.mxu1 %vm432_vm0, %v6140_v9 }
 0x55c   : > { %v3320_v47 = vmax.f32 %v3034_v38, 0.0 }
 0x55d   : > { %v3038_v48 = vpop.f32.mrb[178].mxu1 }
 0x55e   : > { %v3039_v52 = vadd.f32 %v7817_v17, %v3038_v48  ;;  %v3040_v39 = vpop.f32.mrb[179].mxu1  ;;  %3302 = vmatmul.mubr.f32.gmra.mrb[28].mxu1 %v2892_v36  ;;  %4667 = vmatprep.mubr.msk.f32.mxu0 %vm3405_vm2, %v3320_v47 }
 0x55f   : > { %3703 = vmatmul.mubr.f32.gmra.mrb[176].mxu0 %v8693_v16  ;;  %4657 = vmatprep.mubr.msk.f32.mxu1 %vm432_vm0, %v6141_v6 }
 0x560   : > { %v3321_v59 = vmax.f32 %v3039_v52, 0.0 }
 0x561   : > { %v3043_v56 = vpop.f32.mrb[180].mxu1 }
 0x562   : > { %v3044_v60 = vadd.f32 %v7817_v17, %v3043_v56  ;;  %v3045_v2 = vpop.f32.mrb[181].mxu1  ;;  %3307 = vmatmul.mubr.f32.gmra.mrb[30].mxu1 %v2893_v32  ;;  %4668 = vmatprep.mubr.msk.f32.mxu0 %vm3405_vm2, %v3321_v59 }
 0x563   : > { %3708 = vmatmul.mubr.f32.gmra.mrb[178].mxu0 %v8694_v13 }
 0x564   : > { %v3322_v33 = vmax.f32 %v3044_v60, 0.0 }
 0x565   : > { %v3048_v30 = vpop.f32.mrb[182].mxu1 }
 0x566   : > { %v3049_v21 = vadd.f32 %v7817_v17, %v3048_v30  ;;  %v3050_v53 = vpop.f32.mrb[183].mxu1  ;;  %4669 = vmatprep.mubr.msk.f32.mxu0 %vm3405_vm2, %v3322_v33 }
 0x567   : > { %3713 = vmatmul.mubr.f32.gmra.mrb[180].mxu0 %v8695_v44  ;;  %v8707_v53 = vld [vmem:[#allocation4_spill] sm:$0xff] }
 0x568   : > { %v3323_v34 = vmax.f32 %v3049_v21, 0.0  ;;  %v8708_v46 = vmax.f32 %v8707_v53, 0.0 }
 0x569   : > { %v3053_v3 = vpop.f32.mrb[184].mxu1 }
 0x56a   : > { %v3054_v61 = vadd.f32 %v7817_v17, %v3053_v3  ;;  %v3055_v55 = vpop.f32.mrb[185].mxu1  ;;  %4670 = vmatprep.mubr.msk.f32.mxu0 %vm3405_vm2, %v3323_v34 }
 0x56b   : > { %3718 = vmatmul.mubr.f32.gmra.mrb[182].mxu0 %v8696_v0  ;;  %v8709_v55 = vld [vmem:[#allocation3_spill] sm:$0xff] }
 0x56c   : > { %v3324_v12 = vmax.f32 %v3054_v61, 0.0  ;;  %v8710_v40 = vmax.f32 %v8709_v55, 0.0 }
 0x56d   : > { %v3058_v63 = vpop.f32.mrb[186].mxu1 }
 0x56e   : > { %v3059_v49 = vadd.f32 %v7817_v17, %v3058_v63  ;;  %v3060_v22 = vpop.f32.mrb[187].mxu1  ;;  %4671 = vmatprep.mubr.msk.f32.mxu0 %vm3405_vm2, %v3324_v12 }
 0x56f   : > { %3723 = vmatmul.mubr.f32.gmra.mrb[184].mxu0 %v8697_v1  ;;  %v8711_v22 = vld [vmem:[#allocation6_spill] sm:$0xff] }
 0x570   : > { %v3325_v58 = vmax.f32 %v3059_v49, 0.0  ;;  %v8712_v1 = vmax.f32 %v8711_v22, 0.0 }
 0x571   : > { %v3063_v4 = vpop.f32.mrb[188].mxu1 }
 0x572   : > { %v3064_v51 = vadd.f32 %v7817_v17, %v3063_v4  ;;  %v3065_v54 = vpop.f32.mrb[189].mxu1  ;;  %4672 = vmatprep.mubr.msk.f32.mxu0 %vm3405_vm2, %v3325_v58 }
 0x573   : > { %3728 = vmatmul.mubr.f32.gmra.mrb[186].mxu0 %v8698_v27  ;;  %v8713_v27 = vld [vmem:[#allocation5_spill] sm:$0xff] }
 0x574   : > { %v3326_v11 = vmax.f32 %v3064_v51, 0.0 }
 0x575   : > { %v3068_v45 = vpop.f32.mrb[190].mxu1 }
 0x576   : > { %v3069_v62 = vadd.f32 %v7817_v17, %v3068_v45  ;;  %v3070_v10 = vpop.f32.mrb[191].mxu1  ;;  %4673 = vmatprep.mubr.msk.f32.mxu0 %vm3405_vm2, %v3326_v11  ;;  %v8714_v11 = vmax.f32 %v8713_v27, 0.0 }
 0x577   : > { %3733 = vmatmul.mubr.f32.gmra.mrb[188].mxu0 %v8699_v26 }
 0x578   : > { %v3327_v43 = vmax.f32 %v3069_v62, 0.0 }
 0x579   : > { %v3073_v14 = vpop.f32.mrb[192].mxu1 }
 0x57a   : > { %v3074_v7 = vadd.f32 %v7817_v17, %v3073_v14  ;;  %v3075_v28 = vpop.f32.mrb[193].mxu1  ;;  %4674 = vmatprep.mubr.msk.f32.mxu0 %vm3405_vm2, %v3327_v43  ;;  %v8715_v43 = vld [vmem:[#allocation8_spill] sm:$0xff] }
 0x57b   : > { %3738 = vmatmul.mubr.f32.gmra.mrb[190].mxu0 %v8700_v18  ;;  %v8716_v14 = vmax.f32 %v8715_v43, 0.0 }
 0x57c   : > { %v3328_v37 = vmax.f32 %v3074_v7, 0.0 }
 0x57d   : > { %v3078_v23 = vpop.f32.mrb[194].mxu1 }
 0x57e   : > { %v3079_v57 = vadd.f32 %v7817_v17, %v3078_v23  ;;  %v3080_v19 = vpop.f32.mrb[195].mxu1  ;;  %4675 = vmatprep.mubr.msk.f32.mxu0 %vm3405_vm2, %v3328_v37  ;;  %v8717_v23 = vld [vmem:[#allocation7_spill] sm:$0xff] }
 0x57f   : > { %3743 = vmatmul.mubr.f32.gmra.mrb[192].mxu0 %v8701_v50 }
 0x580   : > { %v3329_v20 = vmax.f32 %v3079_v57, 0.0  ;;  %v8718_v57 = vmax.f32 %v8717_v23, 0.0 }
 0x581   : > { %v3083_v25 = vpop.f32.mrb[196].mxu1 }
 0x582   : > { %v3084_v41 = vadd.f32 %v7817_v17, %v3083_v25  ;;  %v3085_v38 = vpop.f32.mrb[197].mxu1  ;;  %4676 = vmatprep.mubr.msk.f32.mxu0 %vm3405_vm2, %v3329_v20 }
 0x583   : > { %3748 = vmatmul.mubr.f32.gmra.mrb[194].mxu0 %v8702_v42 }
 0x584   : > { %v3330_v24 = vmax.f32 %v3084_v41, 0.0  ;;  %v8719_v41 = vld [vmem:[#allocation10_spill] sm:$0xff] }
 0x585   : > { %v3088_v29 = vpop.f32.mrb[198].mxu1  ;;  %v8720_v38 = vmax.f32 %v8719_v41, 0.0 }
 0x586   : > { %v3089_v9 = vadd.f32 %v7817_v17, %v3088_v29  ;;  %v3090_v8 = vpop.f32.mrb[199].mxu1  ;;  %4677 = vmatprep.mubr.msk.f32.mxu0 %vm3405_vm2, %v3330_v24 }
 0x587   : > { %3753 = vmatmul.mubr.f32.gmra.mrb[196].mxu0 %v8703_v15  ;;  %v8721_v8 = vld [vmem:[#allocation9_spill] sm:$0xff] }
 0x588   : > { %v3331_v36 = vmax.f32 %v3089_v9, 0.0  ;;  %v8722_v15 = vmax.f32 %v8721_v8, 0.0 }
 0x589   : > { %v3093_v47 = vpop.f32.mrb[200].mxu1 }
 0x58a   : > { %v3094_v48 = vadd.f32 %v7817_v17, %v3093_v47  ;;  %v3095_v52 = vpop.f32.mrb[201].mxu1  ;;  %4678 = vmatprep.mubr.msk.f32.mxu0 %vm3405_vm2, %v3331_v36 }
 0x58b   : > { %3758 = vmatmul.mubr.f32.gmra.mrb[198].mxu0 %v8704_v5  ;;  %v8723_v5 = vld [vmem:[#allocation12_spill] sm:$0xff] }
 0x58c   : > { %v3332_v39 = vmax.f32 %v3094_v48, 0.0 }
 0x58d   : > { %v3098_v16 = vpop.f32.mrb[202].mxu1 }
 0x58e   : > { %v3099_v6 = vadd.f32 %v7817_v17, %v3098_v16  ;;  %v3100_v32 = vpop.f32.mrb[203].mxu1  ;;  %4679 = vmatprep.mubr.msk.f32.mxu0 %vm3405_vm2, %v3332_v39  ;;  %v8724_v39 = vmax.f32 %v8723_v5, 0.0 }
 0x58f   : > { %3763 = vmatmul.mubr.f32.gmra.mrb[200].mxu0 %v8705_v35 }
 0x590   : > { %v3333_v59 = vmax.f32 %v3099_v6, 0.0 }
 0x591   : > { %v3103_v56 = vpop.f32.mrb[204].mxu1 }
 0x592   : > { %v3104_v60 = vadd.f32 %v7817_v17, %v3103_v56  ;;  %v3105_v2 = vpop.f32.mrb[205].mxu1  ;;  %4680 = vmatprep.mubr.msk.f32.mxu0 %vm3405_vm2, %v3333_v59  ;;  %v8725_v59 = vld [vmem:[#allocation11_spill] sm:$0xff] }
 0x593   : > { %3768 = vmatmul.mubr.f32.gmra.mrb[202].mxu0 %v8706_v31  ;;  %v8726_v56 = vmax.f32 %v8725_v59, 0.0 }
 0x594   : > { %v3334_v13 = vmax.f32 %v3104_v60, 0.0 }
 0x595   : > { %v3108_v33 = vpop.f32.mrb[206].mxu1 }
 0x596   : > { %v3109_v30 = vadd.f32 %v7817_v17, %v3108_v33  ;;  %v3110_v21 = vpop.f32.mrb[207].mxu1  ;;  %4681 = vmatprep.mubr.msk.f32.mxu0 %vm3405_vm2, %v3334_v13  ;;  %v8727_v33 = vld [vmem:[#allocation14_spill] sm:$0xff] }
 0x597   : > { %3773 = vmatmul.mubr.f32.gmra.mrb[204].mxu0 %v8708_v46 }
 0x598   : > { %v3335_v44 = vmax.f32 %v3109_v30, 0.0  ;;  %v8728_v30 = vmax.f32 %v8727_v33, 0.0 }
 0x599   : > { %v3113_v34 = vpop.f32.mrb[208].mxu1 }
 0x59a   : > { %v3114_v3 = vadd.f32 %v7817_v17, %v3113_v34  ;;  %v3115_v61 = vpop.f32.mrb[209].mxu1  ;;  %4682 = vmatprep.mubr.msk.f32.mxu0 %vm3405_vm2, %v3335_v44  ;;  %v8729_v34 = vld [vmem:[#allocation13_spill] sm:$0xff] }
 0x59b   : > { %3778 = vmatmul.mubr.f32.gmra.mrb[206].mxu0 %v8710_v40 }
 0x59c   : > { %v3336_v0 = vmax.f32 %v3114_v3, 0.0  ;;  %v8730_v3 = vmax.f32 %v8729_v34, 0.0 }
 0x59d   : > { %v3118_v12 = vpop.f32.mrb[210].mxu1 }
 0x59e   : > { %v3119_v63 = vadd.f32 %v7817_v17, %v3118_v12  ;;  %v3120_v49 = vpop.f32.mrb[211].mxu1  ;;  %4683 = vmatprep.mubr.msk.f32.mxu0 %vm3405_vm2, %v3336_v0  ;;  %v8731_v12 = vld [vmem:[#allocation16_spill] sm:$0xff] }
 0x59f   : > { %3783 = vmatmul.mubr.f32.gmra.mrb[208].mxu0 %v8712_v1 }
 0x5a0   : > { %v3337_v58 = vmax.f32 %v3119_v63, 0.0  ;;  %v8732_v63 = vmax.f32 %v8731_v12, 0.0 }
 0x5a1   : > { %v3123_v4 = vpop.f32.mrb[212].mxu1 }
 0x5a2   : > { %v3124_v51 = vadd.f32 %v7817_v17, %v3123_v4  ;;  %v3125_v54 = vpop.f32.mrb[213].mxu1  ;;  %4684 = vmatprep.mubr.msk.f32.mxu0 %vm3405_vm2, %v3337_v58  ;;  %v8733_v4 = vld [vmem:[#allocation15_spill] sm:$0xff] }
 0x5a3   : > { %3788 = vmatmul.mubr.f32.gmra.mrb[210].mxu0 %v8714_v11 }
 0x5a4   : > { %v3338_v45 = vmax.f32 %v3124_v51, 0.0  ;;  %v8734_v51 = vmax.f32 %v8733_v4, 0.0 }
 0x5a5   : > { %v3128_v62 = vpop.f32.mrb[214].mxu1 }
 0x5a6   : > { %v3129_v10 = vadd.f32 %v7817_v17, %v3128_v62  ;;  %v3130_v26 = vpop.f32.mrb[215].mxu1  ;;  %4685 = vmatprep.mubr.msk.f32.mxu0 %vm3405_vm2, %v3338_v45  ;;  %v8735_v62 = vld [vmem:[#allocation18_spill] sm:$0xff] }
 0x5a7   : > { %3793 = vmatmul.mubr.f32.gmra.mrb[212].mxu0 %v8716_v14 }
 0x5a8   : > { %v3339_v7 = vmax.f32 %v3129_v10, 0.0  ;;  %v8736_v10 = vmax.f32 %v8735_v62, 0.0 }
 0x5a9   : > { %v3133_v28 = vpop.f32.mrb[216].mxu1 }
 0x5aa   : > { %v3134_v18 = vadd.f32 %v7817_v17, %v3133_v28  ;;  %v3135_v37 = vpop.f32.mrb[217].mxu1  ;;  %4686 = vmatprep.mubr.msk.f32.mxu0 %vm3405_vm2, %v3339_v7  ;;  %v8737_v28 = vld [vmem:[#allocation17_spill] sm:$0xff] }
 0x5ab   : > { %3798 = vmatmul.mubr.f32.gmra.mrb[214].mxu0 %v8718_v57 }
 0x5ac   : > { %v3340_v19 = vmax.f32 %v3134_v18, 0.0  ;;  %v8738_v18 = vmax.f32 %v8737_v28, 0.0 }
 0x5ad   : > { %v3138_v50 = vpop.f32.mrb[218].mxu1 }
 0x5ae   : > { %v3139_v20 = vadd.f32 %v7817_v17, %v3138_v50  ;;  %v3140_v25 = vpop.f32.mrb[219].mxu1  ;;  %4687 = vmatprep.mubr.msk.f32.mxu0 %vm3405_vm2, %v3340_v19  ;;  %v8739_v50 = vld [vmem:[#allocation20_spill] sm:$0xff] }
 0x5af   : > { %3803 = vmatmul.mubr.f32.gmra.mrb[216].mxu0 %v8720_v38 }
 0x5b0   : > { %v3341_v42 = vmax.f32 %v3139_v20, 0.0  ;;  %v8740_v20 = vmax.f32 %v8739_v50, 0.0 }
 0x5b1   : > { %v3143_v24 = vpop.f32.mrb[220].mxu1 }
 0x5b2   : > { %v3144_v29 = vadd.f32 %v7817_v17, %v3143_v24  ;;  %v3145_v9 = vpop.f32.mrb[221].mxu1  ;;  %4688 = vmatprep.mubr.msk.f32.mxu0 %vm3405_vm2, %v3341_v42  ;;  %v8741_v24 = vld [vmem:[#allocation19_spill] sm:$0xff] }
 0x5b3   : > { %3808 = vmatmul.mubr.f32.gmra.mrb[218].mxu0 %v8722_v15 }
 0x5b4   : > { %v3342_v36 = vmax.f32 %v3144_v29, 0.0  ;;  %v8742_v29 = vmax.f32 %v8741_v24, 0.0 }
 0x5b5   : > { %v3148_v47 = vpop.f32.mrb[222].mxu1 }
 0x5b6   : > { %v3149_v48 = vadd.f32 %v7817_v17, %v3148_v47  ;;  %v3150_v52 = vpop.f32.mrb[223].mxu1  ;;  %4689 = vmatprep.mubr.msk.f32.mxu0 %vm3405_vm2, %v3342_v36  ;;  %v8743_v47 = vld [vmem:[#allocation22_spill] sm:$0xff] }
 0x5b7   : > { %3813 = vmatmul.mubr.f32.gmra.mrb[220].mxu0 %v8724_v39 }
 0x5b8   : > { %v3343_v16 = vmax.f32 %v3149_v48, 0.0  ;;  %v8744_v48 = vmax.f32 %v8743_v47, 0.0 }
 0x5b9   : > { %v3153_v6 = vpop.f32.mrb[224].mxu1 }
 0x5ba   : > { %v3154_v32 = vadd.f32 %v7817_v17, %v3153_v6  ;;  %v3155_v35 = vpop.f32.mrb[225].mxu1  ;;  %4690 = vmatprep.mubr.msk.f32.mxu0 %vm3405_vm2, %v3343_v16  ;;  %v8745_v6 = vld [vmem:[#allocation21_spill] sm:$0xff] }
 0x5bb   : > { %3818 = vmatmul.mubr.f32.gmra.mrb[222].mxu0 %v8726_v56 }
 0x5bc   : > { %v3344_v60 = vmax.f32 %v3154_v32, 0.0  ;;  %v8746_v32 = vmax.f32 %v8745_v6, 0.0 }
 0x5bd   : > { %v3158_v2 = vpop.f32.mrb[226].mxu1 }
 0x5be   : > { %v3159_v31 = vadd.f32 %v7817_v17, %v3158_v2  ;;  %v3160_v13 = vpop.f32.mrb[227].mxu1  ;;  %4691 = vmatprep.mubr.msk.f32.mxu0 %vm3405_vm2, %v3344_v60  ;;  %v8747_v2 = vld [vmem:[#allocation24_spill] sm:$0xff] }
 0x5bf   : > { %3823 = vmatmul.mubr.f32.gmra.mrb[224].mxu0 %v8728_v30 }
 0x5c0   : > { %v3345_v21 = vmax.f32 %v3159_v31, 0.0  ;;  %v8748_v31 = vmax.f32 %v8747_v2, 0.0  ;;  %v8078_v2 = vld [vmem:[%s8531_s8 + $0x6] ss:$0 sm:$0xff] }
 0x5c1   : > { %v3163_v53 = vpop.f32.mrb[228].mxu1 }
 0x5c2   : > { %v3164_v46 = vadd.f32 %v7817_v17, %v3163_v53  ;;  %v3165_v44 = vpop.f32.mrb[229].mxu1  ;;  %4692 = vmatprep.mubr.msk.f32.mxu0 %vm3405_vm2, %v3345_v21  ;;  %v8749_v53 = vld [vmem:[#allocation23_spill] sm:$0xff] }
 0x5c3   : > { %3828 = vmatmul.mubr.f32.gmra.mrb[226].mxu0 %v8730_v3 }
 0x5c4   : > { %v3346_v61 = vmax.f32 %v3164_v46, 0.0  ;;  %v8750_v46 = vmax.f32 %v8749_v53, 0.0 }
 0x5c5   : > { %v3168_v55 = vpop.f32.mrb[230].mxu1 }
 0x5c6   : > { %v3169_v40 = vadd.f32 %v7817_v17, %v3168_v55  ;;  %v3170_v0 = vpop.f32.mrb[231].mxu1  ;;  %4693 = vmatprep.mubr.msk.f32.mxu0 %vm3405_vm2, %v3346_v61  ;;  %v8751_v55 = vld [vmem:[#allocation26_spill] sm:$0xff] }
 0x5c7   : > { %3833 = vmatmul.mubr.f32.gmra.mrb[228].mxu0 %v8732_v63 }
 0x5c8   : > { %v3347_v49 = vmax.f32 %v3169_v40, 0.0  ;;  %v8752_v40 = vmax.f32 %v8751_v55, 0.0 }
 0x5c9   : > { %v3173_v22 = vpop.f32.mrb[232].mxu1 }
 0x5ca   : > { %v3174_v1 = vadd.f32 %v7817_v17, %v3173_v22  ;;  %v3175_v58 = vpop.f32.mrb[233].mxu1  ;;  %4694 = vmatprep.mubr.msk.f32.mxu0 %vm3405_vm2, %v3347_v49  ;;  %v8753_v22 = vld [vmem:[#allocation25_spill] sm:$0xff] }
 0x5cb   : > { %3838 = vmatmul.mubr.f32.gmra.mrb[230].mxu0 %v8734_v51 }
 0x5cc   : > { %v3348_v54 = vmax.f32 %v3174_v1, 0.0  ;;  %v8754_v1 = vmax.f32 %v8753_v22, 0.0 }
 0x5cd   : > { %v3178_v27 = vpop.f32.mrb[234].mxu1 }
 0x5ce   : > { %v3179_v11 = vadd.f32 %v7817_v17, %v3178_v27  ;;  %v3180_v45 = vpop.f32.mrb[235].mxu1  ;;  %4695 = vmatprep.mubr.msk.f32.mxu0 %vm3405_vm2, %v3348_v54  ;;  %v8755_v27 = vld [vmem:[#allocation28_spill] sm:$0xff] }
 0x5cf   : > { %3843 = vmatmul.mubr.f32.gmra.mrb[232].mxu0 %v8736_v10 }
 0x5d0   : > { %v3349_v26 = vmax.f32 %v3179_v11, 0.0  ;;  %v8756_v11 = vmax.f32 %v8755_v27, 0.0 }
 0x5d1   : > { %v3183_v43 = vpop.f32.mrb[236].mxu1 }
 0x5d2   : > { %v3184_v14 = vadd.f32 %v7817_v17, %v3183_v43  ;;  %v3185_v7 = vpop.f32.mrb[237].mxu1  ;;  %4696 = vmatprep.mubr.msk.f32.mxu0 %vm3405_vm2, %v3349_v26  ;;  %v8757_v43 = vld [vmem:[#allocation27_spill] sm:$0xff] }
 0x5d3   : > { %3848 = vmatmul.mubr.f32.gmra.mrb[234].mxu0 %v8738_v18 }
 0x5d4   : > { %v3350_v37 = vmax.f32 %v3184_v14, 0.0  ;;  %v8758_v14 = vmax.f32 %v8757_v43, 0.0 }
 0x5d5   : > { %v3188_v23 = vpop.f32.mrb[238].mxu1 }
 0x5d6   : > { %v3189_v57 = vadd.f32 %v7817_v17, %v3188_v23  ;;  %v3190_v19 = vpop.f32.mrb[239].mxu1  ;;  %4697 = vmatprep.mubr.msk.f32.mxu0 %vm3405_vm2, %v3350_v37  ;;  %v8759_v23 = vld [vmem:[#allocation30_spill] sm:$0xff] }
 0x5d7   : > { %3853 = vmatmul.mubr.f32.gmra.mrb[236].mxu0 %v8740_v20 }
 0x5d8   : > { %v3351_v25 = vmax.f32 %v3189_v57, 0.0  ;;  %v8760_v57 = vmax.f32 %v8759_v23, 0.0 }
 0x5d9   : > { %v3193_v41 = vpop.f32.mrb[240].mxu1 }
 0x5da   : > { %v3194_v38 = vadd.f32 %v7817_v17, %v3193_v41  ;;  %v3195_v42 = vpop.f32.mrb[241].mxu1  ;;  %4698 = vmatprep.mubr.msk.f32.mxu0 %vm3405_vm2, %v3351_v25  ;;  %v8761_v41 = vld [vmem:[#allocation29_spill] sm:$0xff] }
 0x5db   : > { %3858 = vmatmul.mubr.f32.gmra.mrb[238].mxu0 %v8742_v29 }
 0x5dc   : > { %v3352_v9 = vmax.f32 %v3194_v38, 0.0  ;;  %v8762_v38 = vmax.f32 %v8761_v41, 0.0 }
 0x5dd   : > { %v3198_v8 = vpop.f32.mrb[242].mxu1 }
 0x5de   : > { %v3199_v15 = vadd.f32 %v7817_v17, %v3198_v8  ;;  %v3200_v36 = vpop.f32.mrb[243].mxu1  ;;  %4699 = vmatprep.mubr.msk.f32.mxu0 %vm3405_vm2, %v3352_v9  ;;  %v8763_v8 = vld [vmem:[#allocation32_spill] sm:$0xff] }
 0x5df   : > { %3863 = vmatmul.mubr.f32.gmra.mrb[240].mxu0 %v8744_v48 }
 0x5e0   : > { %v3353_v52 = vmax.f32 %v3199_v15, 0.0  ;;  %v8764_v15 = vmax.f32 %v8763_v8, 0.0 }
 0x5e1   : > { %v3203_v5 = vpop.f32.mrb[244].mxu1 }
 0x5e2   : > { %v3204_v39 = vadd.f32 %v7817_v17, %v3203_v5  ;;  %v3205_v16 = vpop.f32.mrb[245].mxu1  ;;  %4700 = vmatprep.mubr.msk.f32.mxu0 %vm3405_vm2, %v3353_v52  ;;  %v8765_v5 = vld [vmem:[#allocation31_spill] sm:$0xff] }
 0x5e3   : > { %3868 = vmatmul.mubr.f32.gmra.mrb[242].mxu0 %v8746_v32 }
 0x5e4   : > { %v3354_v35 = vmax.f32 %v3204_v39, 0.0  ;;  %v8766_v39 = vmax.f32 %v8765_v5, 0.0 }
 0x5e5   : > { %v3208_v59 = vpop.f32.mrb[246].mxu1 }
 0x5e6   : > { %v3209_v56 = vadd.f32 %v7817_v17, %v3208_v59  ;;  %v3210_v60 = vpop.f32.mrb[247].mxu1  ;;  %4701 = vmatprep.mubr.msk.f32.mxu0 %vm3405_vm2, %v3354_v35  ;;  %v8767_v59 = vld [vmem:[#allocation34_spill] sm:$0xff] }
 0x5e7   : > { %3873 = vmatmul.mubr.f32.gmra.mrb[244].mxu0 %v8748_v31 }
 0x5e8   : > { %v3355_v13 = vmax.f32 %v3209_v56, 0.0  ;;  %v8768_v56 = vmax.f32 %v8767_v59, 0.0 }
 0x5e9   : > { %v3213_v33 = vpop.f32.mrb[248].mxu1 }
 0x5ea   : > { %v3214_v30 = vadd.f32 %v7817_v17, %v3213_v33  ;;  %v3215_v21 = vpop.f32.mrb[249].mxu1  ;;  %4702 = vmatprep.mubr.msk.f32.mxu0 %vm3405_vm2, %v3355_v13 }
 0x5eb   : > { %3878 = vmatmul.mubr.f32.gmra.mrb[246].mxu0 %v8750_v46  ;;  %v8769_v46 = vld [vmem:[#allocation33_spill] sm:$0xff] }
 0x5ec   : > { %v3356_v44 = vmax.f32 %v3214_v30, 0.0 }
 0x5ed   : > { %v3218_v34 = vpop.f32.mrb[250].mxu1 }
 0x5ee   : > { %v3219_v3 = vadd.f32 %v7817_v17, %v3218_v34  ;;  %v3220_v61 = vpop.f32.mrb[251].mxu1  ;;  %4703 = vmatprep.mubr.msk.f32.mxu0 %vm3405_vm2, %v3356_v44  ;;  %v8770_v44 = vmax.f32 %v8769_v46, 0.0 }
 0x5ef   : > { %3883 = vmatmul.mubr.f32.gmra.mrb[248].mxu0 %v8752_v40 }
 0x5f0   : > { %v3357_v0 = vmax.f32 %v3219_v3, 0.0 }
 0x5f1   : > { %v3223_v12 = vpop.f32.mrb[252].mxu1 }
 0x5f2   : > { %v3224_v63 = vadd.f32 %v7817_v17, %v3223_v12  ;;  %v3225_v49 = vpop.f32.mrb[253].mxu1  ;;  %4704 = vmatprep.mubr.msk.f32.mxu0 %vm3405_vm2, %v3357_v0 }
 0x5f3   : > { %3888 = vmatmul.mubr.f32.gmra.mrb[250].mxu0 %v8754_v1 }
 0x5f4   : > { %v3358_v58 = vmax.f32 %v3224_v63, 0.0  ;;  %v8771_v63 = vld [vmem:[#allocation36_spill] sm:$0xff] }
 0x5f5   : > { %v3228_v4 = vpop.f32.mrb[254].mxu1  ;;  %v8772_v49 = vmax.f32 %v8771_v63, 0.0 }
 0x5f6   : > { %v3229_v51 = vadd.f32 %v7817_v17, %v3228_v4  ;;  %v3230_v54 = vpop.f32.mrb[255].mxu1  ;;  %4705 = vmatprep.mubr.msk.f32.mxu0 %vm3405_vm2, %v3358_v58 }
 0x5f7   : > { %3893 = vmatmul.mubr.f32.gmra.mrb[252].mxu0 %v8756_v11  ;;  %v8773_v11 = vld [vmem:[#allocation35_spill] sm:$0xff] }
 0x5f8   : > { %v3359_v45 = vmax.f32 %v3229_v51, 0.0 }
 0x5f9   : > { %v3233_v62 = vpop.f32.mrb[0].mxu1 }
 0x5fa   : > { %v3234_v10 = vadd.f32 %v7817_v17, %v3233_v62  ;;  %v3235_v26 = vpop.f32.mrb[1].mxu1  ;;  %4706 = vmatprep.mubr.msk.f32.mxu0 %vm3405_vm2, %v3359_v45  ;;  %v8774_v45 = vmax.f32 %v8773_v11, 0.0 }
 0x5fb   : > { %3898 = vmatmul.mubr.f32.gmra.mrb[254].mxu0 %v8758_v14 }
 0x5fc   : > { %v3360_v7 = vmax.f32 %v3234_v10, 0.0 }
 0x5fd   : > { %v3238_v28 = vpop.f32.mrb[2].mxu1 }
 0x5fe   : > { %v3239_v18 = vadd.f32 %v7817_v17, %v3238_v28  ;;  %v3240_v37 = vpop.f32.mrb[3].mxu1  ;;  %4707 = vmatprep.mubr.msk.f32.mxu0 %vm3405_vm2, %v3360_v7 }
 0x5ff   : > { %3903 = vmatmul.mubr.f32.gmra.mrb[0].mxu0 %v8760_v57 }
 0x600   : > { %v3361_v19 = vmax.f32 %v3239_v18, 0.0  ;;  %v8775_v18 = vld [vmem:[#allocation38_spill] sm:$0xff] }
 0x601   : > { %v3243_v50 = vpop.f32.mrb[4].mxu1  ;;  %v8776_v37 = vmax.f32 %v8775_v18, 0.0 }
 0x602   : > { %v3244_v20 = vadd.f32 %v7817_v17, %v3243_v50  ;;  %v3245_v25 = vpop.f32.mrb[5].mxu1  ;;  %4708 = vmatprep.mubr.msk.f32.mxu0 %vm3405_vm2, %v3361_v19 }
 0x603   : > { %3908 = vmatmul.mubr.f32.gmra.mrb[2].mxu0 %v8762_v38  ;;  %v8777_v38 = vld [vmem:[#allocation37_spill] sm:$0xff] }
 0x604   : > { %v3362_v42 = vmax.f32 %v3244_v20, 0.0 }
 0x605   : > { %v3248_v24 = vpop.f32.mrb[6].mxu1 }
 0x606   : > { %v3249_v29 = vadd.f32 %v7817_v17, %v3248_v24  ;;  %v3250_v9 = vpop.f32.mrb[7].mxu1  ;;  %4709 = vmatprep.mubr.msk.f32.mxu0 %vm3405_vm2, %v3362_v42  ;;  %v8778_v42 = vmax.f32 %v8777_v38, 0.0 }
 0x607   : > { %3913 = vmatmul.mubr.f32.gmra.mrb[4].mxu0 %v8764_v15 }
 0x608   : > { %v3363_v36 = vmax.f32 %v3249_v29, 0.0 }
 0x609   : > { %v3253_v47 = vpop.f32.mrb[8].mxu1 }
 0x60a   : > { %v3254_v48 = vadd.f32 %v7817_v17, %v3253_v47  ;;  %v3255_v52 = vpop.f32.mrb[9].mxu1  ;;  %4710 = vmatprep.mubr.msk.f32.mxu0 %vm3405_vm2, %v3363_v36 }
 0x60b   : > { %3918 = vmatmul.mubr.f32.gmra.mrb[6].mxu0 %v8766_v39 }
 0x60c   : > { %v3364_v16 = vmax.f32 %v3254_v48, 0.0  ;;  %v8779_v48 = vld [vmem:[#allocation40_spill] sm:$0xff] }
 0x60d   : > { %v3258_v6 = vpop.f32.mrb[10].mxu1  ;;  %v8780_v52 = vmax.f32 %v8779_v48, 0.0 }
 0x60e   : > { %v3259_v32 = vadd.f32 %v7817_v17, %v3258_v6  ;;  %v3260_v35 = vpop.f32.mrb[11].mxu1  ;;  %4711 = vmatprep.mubr.msk.f32.mxu0 %vm3405_vm2, %v3364_v16 }
 0x60f   : > { %3923 = vmatmul.mubr.f32.gmra.mrb[8].mxu0 %v8768_v56  ;;  %v8781_v56 = vld [vmem:[#allocation39_spill] sm:$0xff] }
 0x610   : > { %v3365_v60 = vmax.f32 %v3259_v32, 0.0 }
 0x611   : > { %v3263_v31 = vpop.f32.mrb[12].mxu1 }
 0x612   : > { %v3264_v13 = vadd.f32 %v7817_v17, %v3263_v31  ;;  %v3265_v33 = vpop.f32.mrb[13].mxu1  ;;  %v3664_v30 = vpop.f32.mrb[160].mxu0  ;;  %4712 = vmatprep.mubr.msk.f32.mxu0 %vm3405_vm2, %v3365_v60  ;;  %v8782_v60 = vmax.f32 %v8781_v56, 0.0 }
 0x613   : > { %v3665_v21 = vadd.f32 %v8078_v2, %v3664_v30  ;;  %v3666_v53 = vpop.f32.mrb[161].mxu0  ;;  %3928 = vmatmul.mubr.f32.gmra.mrb[10].mxu0 %v8770_v44  ;;  %v8783_v44 = vld [vmem:[#allocation42_spill] sm:$0xff] }
 0x614   : > { %v3366_v34 = vmax.f32 %v3264_v13, 0.0 }
 0x615   : > { %3984 = vst.msk [vmem:[%s8085_s30] sm:$0xff] %vm3983_vm3, %v3665_v21  ;;  %v3268_v3 = vpop.f32.mrb[14].mxu1 }
 0x616   : > { %v3269_v61 = vadd.f32 %v7817_v17, %v3268_v3  ;;  %v3270_v55 = vpop.f32.mrb[15].mxu1  ;;  %v3669_v40 = vpop.f32.mrb[162].mxu0  ;;  %4713 = vmatprep.mubr.msk.f32.mxu0 %vm3405_vm2, %v3366_v34  ;;  %v8784_v34 = vmax.f32 %v8783_v44, 0.0 }
 0x617   : > { %v3670_v0 = vadd.f32 %v8078_v2, %v3669_v40  ;;  %v3671_v12 = vpop.f32.mrb[163].mxu0  ;;  %3933 = vmatmul.mubr.f32.gmra.mrb[12].mxu0 %v8772_v49  ;;  %v8785_v49 = vld [vmem:[#allocation41_spill] sm:$0xff] }
 0x618   : > { %v3367_v22 = vmax.f32 %v3269_v61, 0.0 }
 0x619   : > { %3985 = vst.msk [vmem:[%s8085_s30 + $0x8] sm:$0xff] %vm3983_vm3, %v3670_v0  ;;  %v3273_v1 = vpop.f32.mrb[16].mxu1 }
 0x61a   : > { %v3274_v58 = vadd.f32 %v7817_v17, %v3273_v1  ;;  %v3275_v4 = vpop.f32.mrb[17].mxu1  ;;  %v3674_v51 = vpop.f32.mrb[164].mxu0  ;;  %4714 = vmatprep.mubr.msk.f32.mxu0 %vm3405_vm2, %v3367_v22  ;;  %v8786_v22 = vmax.f32 %v8785_v49, 0.0 }
 0x61b   : > { %v3675_v54 = vadd.f32 %v8078_v2, %v3674_v51  ;;  %v3676_v27 = vpop.f32.mrb[165].mxu0  ;;  %3938 = vmatmul.mubr.f32.gmra.mrb[14].mxu0 %v8774_v45  ;;  %v8787_v45 = vld [vmem:[#allocation44_spill] sm:$0xff] }
 0x61c   : > { %v3368_v62 = vmax.f32 %v3274_v58, 0.0 }
 0x61d   : > { %3986 = vst.msk [vmem:[%s8085_s30 + $0x10] sm:$0xff] %vm3983_vm3, %v3675_v54  ;;  %v3278_v10 = vpop.f32.mrb[18].mxu1 }
 0x61e   : > { %v3279_v26 = vadd.f32 %v7817_v17, %v3278_v10  ;;  %v3280_v43 = vpop.f32.mrb[19].mxu1  ;;  %v3679_v14 = vpop.f32.mrb[166].mxu0  ;;  %4715 = vmatprep.mubr.msk.f32.mxu0 %vm3405_vm2, %v3368_v62  ;;  %v8788_v62 = vmax.f32 %v8787_v45, 0.0 }
 0x61f   : > { %v3680_v7 = vadd.f32 %v8078_v2, %v3679_v14  ;;  %v3681_v28 = vpop.f32.mrb[167].mxu0  ;;  %3943 = vmatmul.mubr.f32.gmra.mrb[16].mxu0 %v8776_v37  ;;  %v8789_v14 = vld [vmem:[#allocation43_spill] sm:$0xff] }
 0x620   : > { %v3369_v23 = vmax.f32 %v3279_v26, 0.0 }
 0x621   : > { %3987 = vst.msk [vmem:[%s8085_s30 + $0x18] sm:$0xff] %vm3983_vm3, %v3680_v7  ;;  %v3283_v57 = vpop.f32.mrb[20].mxu1  ;;  %v8790_v7 = vmax.f32 %v8789_v14, 0.0 }
 0x622   : > { %v3284_v19 = vadd.f32 %v7817_v17, %v3283_v57  ;;  %v3285_v50 = vpop.f32.mrb[21].mxu1  ;;  %v3684_v20 = vpop.f32.mrb[168].mxu0  ;;  %4716 = vmatprep.mubr.msk.f32.mxu0 %vm3405_vm2, %v3369_v23 }
 0x623   : > { %v3685_v25 = vadd.f32 %v8078_v2, %v3684_v20  ;;  %v3686_v41 = vpop.f32.mrb[169].mxu0  ;;  %3948 = vmatmul.mubr.f32.gmra.mrb[18].mxu0 %v8778_v42 }
 0x624   : > { %v3370_v24 = vmax.f32 %v3284_v19, 0.0 }
 0x625   : > { %3988 = vst.msk [vmem:[%s8085_s30 + $0x20] sm:$0xff] %vm3983_vm3, %v3685_v25  ;;  %v3288_v29 = vpop.f32.mrb[22].mxu1 }
 0x626   : > { %v3289_v9 = vadd.f32 %v7817_v17, %v3288_v29  ;;  %v3290_v8 = vpop.f32.mrb[23].mxu1  ;;  %v3689_v15 = vpop.f32.mrb[170].mxu0  ;;  %4717 = vmatprep.mubr.msk.f32.mxu0 %vm3405_vm2, %v3370_v24 }
 0x627   : > { %v3690_v36 = vadd.f32 %v8078_v2, %v3689_v15  ;;  %v3691_v47 = vpop.f32.mrb[171].mxu0  ;;  %3953 = vmatmul.mubr.f32.gmra.mrb[20].mxu0 %v8780_v52 }
 0x628   : > { %v3371_v5 = vmax.f32 %v3289_v9, 0.0 }
 0x629   : > { %3989 = vst.msk [vmem:[%s8085_s30 + $0x28] sm:$0xff] %vm3983_vm3, %v3690_v36  ;;  %v3293_v39 = vpop.f32.mrb[24].mxu1 }
 0x62a   : > { %v3294_v16 = vadd.f32 %v7817_v17, %v3293_v39  ;;  %v3295_v6 = vpop.f32.mrb[25].mxu1  ;;  %v3694_v32 = vpop.f32.mrb[172].mxu0  ;;  %4718 = vmatprep.mubr.msk.f32.mxu0 %vm3405_vm2, %v3371_v5 }
 0x62b   : > { %v3695_v35 = vadd.f32 %v8078_v2, %v3694_v32  ;;  %v3696_v59 = vpop.f32.mrb[173].mxu0  ;;  %3958 = vmatmul.mubr.f32.gmra.mrb[22].mxu0 %v8782_v60 }
 0x62c   : > { %v3372_v31 = vmax.f32 %v3294_v16, 0.0 }
 0x62d   : > { %3990 = vst.msk [vmem:[%s8085_s30 + $0x30] sm:$0xff] %vm3983_vm3, %v3695_v35  ;;  %v3298_v13 = vpop.f32.mrb[26].mxu1 }
 0x62e   : > { %v3299_v33 = vadd.f32 %v7817_v17, %v3298_v13  ;;  %v3300_v30 = vpop.f32.mrb[27].mxu1  ;;  %v3699_v21 = vpop.f32.mrb[174].mxu0  ;;  %4719 = vmatprep.mubr.msk.f32.mxu0 %vm3405_vm2, %v3372_v31 }
 0x62f   : > { %v3700_v53 = vadd.f32 %v8078_v2, %v3699_v21  ;;  %v3701_v46 = vpop.f32.mrb[175].mxu0  ;;  %3963 = vmatmul.mubr.f32.gmra.mrb[24].mxu0 %v8784_v34 }
 0x630   : > { %v3373_v3 = vmax.f32 %v3299_v33, 0.0 }
 0x631   : > { %3991 = vst.msk [vmem:[%s8085_s30 + $0x38] sm:$0xff] %vm3983_vm3, %v3700_v53  ;;  %v3303_v61 = vpop.f32.mrb[28].mxu1 }
 0x632   : > { %v3304_v55 = vadd.f32 %v7817_v17, %v3303_v61  ;;  %v3305_v40 = vpop.f32.mrb[29].mxu1  ;;  %v3704_v0 = vpop.f32.mrb[176].mxu0  ;;  %4720 = vmatprep.mubr.msk.f32.mxu0 %vm3405_vm2, %v3373_v3 }
 0x633   : > { %v3705_v12 = vadd.f32 %v8078_v2, %v3704_v0  ;;  %v3706_v63 = vpop.f32.mrb[177].mxu0  ;;  %3968 = vmatmul.mubr.f32.gmra.mrb[26].mxu0 %v8786_v22 }
 0x634   : > { %v3374_v1 = vmax.f32 %v3304_v55, 0.0 }
 0x635   : > { %3992 = vst.msk [vmem:[%s8085_s30 + $0x40] sm:$0xff] %vm3983_vm3, %v3705_v12  ;;  %v3308_v58 = vpop.f32.mrb[30].mxu1 }
 0x636   : > { %v3309_v4 = vadd.f32 %v7817_v17, %v3308_v58  ;;  %v3310_v51 = vpop.f32.mrb[31].mxu1  ;;  %v3709_v54 = vpop.f32.mrb[178].mxu0  ;;  %4721 = vmatprep.mubr.msk.f32.mxu0 %vm3405_vm2, %v3374_v1 }
 0x637   : > { %v3710_v27 = vadd.f32 %v8078_v2, %v3709_v54  ;;  %v3711_v11 = vpop.f32.mrb[179].mxu0  ;;  %3973 = vmatmul.mubr.f32.gmra.mrb[28].mxu0 %v8788_v62 }
 0x638   : > { %v3375_v10 = vmax.f32 %v3309_v4, 0.0 }
 0x639   : > { %3993 = vst.msk [vmem:[%s8085_s30 + $0x48] sm:$0xff] %vm3983_vm3, %v3710_v27 }
 0x63a   : > { %v3714_v26 = vpop.f32.mrb[180].mxu0  ;;  %4722 = vmatprep.mubr.msk.f32.mxu0 %vm3405_vm2, %v3375_v10 }
 0x63b   : > { %v3715_v17 = vadd.f32 %v8078_v2, %v3714_v26  ;;  %v3716_v43 = vpop.f32.mrb[181].mxu0  ;;  %3978 = vmatmul.mubr.f32.gmra.mrb[30].mxu0 %v8790_v7 }
 0x63d   : > { %3994 = vst.msk [vmem:[%s8085_s30 + $0x50] sm:$0xff] %vm3983_vm3, %v3715_v17 }
 0x63e   : > { %v3719_v28 = vpop.f32.mrb[182].mxu0 }
 0x63f   : > { %v3720_v18 = vadd.f32 %v8078_v2, %v3719_v28  ;;  %v3721_v37 = vpop.f32.mrb[183].mxu0 }
 0x641   : > { %3995 = vst.msk [vmem:[%s8085_s30 + $0x58] sm:$0xff] %vm3983_vm3, %v3720_v18 }
 0x642   : > { %v3724_v23 = vpop.f32.mrb[184].mxu0 }
 0x643   : > { %v3725_v57 = vadd.f32 %v8078_v2, %v3724_v23  ;;  %v3726_v19 = vpop.f32.mrb[185].mxu0 }
 0x645   : > { %3996 = vst.msk [vmem:[%s8085_s30 + $0x60] sm:$0xff] %vm3983_vm3, %v3725_v57 }
 0x646   : > { %v3729_v50 = vpop.f32.mrb[186].mxu0 }
 0x647   : > { %v3730_v20 = vadd.f32 %v8078_v2, %v3729_v50  ;;  %v3731_v25 = vpop.f32.mrb[187].mxu0 }
 0x649   : > { %3997 = vst.msk [vmem:[%s8085_s30 + $0x68] sm:$0xff] %vm3983_vm3, %v3730_v20 }
 0x64a   : > { %v3734_v41 = vpop.f32.mrb[188].mxu0 }
 0x64b   : > { %v3735_v38 = vadd.f32 %v8078_v2, %v3734_v41  ;;  %v3736_v42 = vpop.f32.mrb[189].mxu0 }
 0x64d   : > { %3998 = vst.msk [vmem:[%s8085_s30 + $0x70] sm:$0xff] %vm3983_vm3, %v3735_v38 }
 0x64e   : > { %v3739_v24 = vpop.f32.mrb[190].mxu0 }
 0x64f   : > { %v3740_v29 = vadd.f32 %v8078_v2, %v3739_v24  ;;  %v3741_v9 = vpop.f32.mrb[191].mxu0 }
 0x651   : > { %3999 = vst.msk [vmem:[%s8085_s30 + $0x78] sm:$0xff] %vm3983_vm3, %v3740_v29 }
 0x652   : > { %v3744_v8 = vpop.f32.mrb[192].mxu0 }
 0x653   : > { %v3745_v15 = vadd.f32 %v8078_v2, %v3744_v8  ;;  %v3746_v36 = vpop.f32.mrb[193].mxu0 }
 0x655   : > { %4000 = vst.msk [vmem:[%s8085_s30 + $0x80] sm:$0xff] %vm3983_vm3, %v3745_v15 }
 0x656   : > { %v3749_v47 = vpop.f32.mrb[194].mxu0 }
 0x657   : > { %v3750_v48 = vadd.f32 %v8078_v2, %v3749_v47  ;;  %v3751_v52 = vpop.f32.mrb[195].mxu0 }
 0x659   : > { %4001 = vst.msk [vmem:[%s8085_s30 + $0x88] sm:$0xff] %vm3983_vm3, %v3750_v48 }
 0x65a   : > { %v3754_v5 = vpop.f32.mrb[196].mxu0 }
 0x65b   : > { %v3755_v39 = vadd.f32 %v8078_v2, %v3754_v5  ;;  %v3756_v16 = vpop.f32.mrb[197].mxu0 }
 0x65d   : > { %4002 = vst.msk [vmem:[%s8085_s30 + $0x90] sm:$0xff] %vm3983_vm3, %v3755_v39 }
 0x65e   : > { %v3759_v6 = vpop.f32.mrb[198].mxu0 }
 0x65f   : > { %v3760_v32 = vadd.f32 %v8078_v2, %v3759_v6  ;;  %v3761_v35 = vpop.f32.mrb[199].mxu0 }
 0x661   : > { %4003 = vst.msk [vmem:[%s8085_s30 + $0x98] sm:$0xff] %vm3983_vm3, %v3760_v32 }
 0x662   : > { %v3764_v59 = vpop.f32.mrb[200].mxu0 }
 0x663   : > { %v3765_v56 = vadd.f32 %v8078_v2, %v3764_v59  ;;  %v3766_v60 = vpop.f32.mrb[201].mxu0 }
 0x665   : > { %4004 = vst.msk [vmem:[%s8085_s30 + $0xa0] sm:$0xff] %vm3983_vm3, %v3765_v56 }
 0x666   : > { %v3769_v31 = vpop.f32.mrb[202].mxu0 }
 0x667   : > { %v3770_v13 = vadd.f32 %v8078_v2, %v3769_v31  ;;  %v3771_v33 = vpop.f32.mrb[203].mxu0 }
 0x669   : > { %4005 = vst.msk [vmem:[%s8085_s30 + $0xa8] sm:$0xff] %vm3983_vm3, %v3770_v13 }
 0x66a   : > { %v3774_v30 = vpop.f32.mrb[204].mxu0 }
 0x66b   : > { %v3775_v21 = vadd.f32 %v8078_v2, %v3774_v30  ;;  %v3776_v53 = vpop.f32.mrb[205].mxu0 }
 0x66d   : > { %4006 = vst.msk [vmem:[%s8085_s30 + $0xb0] sm:$0xff] %vm3983_vm3, %v3775_v21 }
 0x66e   : > { %v3779_v46 = vpop.f32.mrb[206].mxu0 }
 0x66f   : > { %v3780_v44 = vadd.f32 %v8078_v2, %v3779_v46  ;;  %v3781_v34 = vpop.f32.mrb[207].mxu0 }
 0x671   : > { %4007 = vst.msk [vmem:[%s8085_s30 + $0xb8] sm:$0xff] %vm3983_vm3, %v3780_v44 }
 0x672   : > { %v3784_v3 = vpop.f32.mrb[208].mxu0 }
 0x673   : > { %v3785_v61 = vadd.f32 %v8078_v2, %v3784_v3  ;;  %v3786_v55 = vpop.f32.mrb[209].mxu0 }
 0x675   : > { %4008 = vst.msk [vmem:[%s8085_s30 + $0xc0] sm:$0xff] %vm3983_vm3, %v3785_v61 }
 0x676   : > { %v3789_v40 = vpop.f32.mrb[210].mxu0 }
 0x677   : > { %v3790_v0 = vadd.f32 %v8078_v2, %v3789_v40  ;;  %v3791_v12 = vpop.f32.mrb[211].mxu0 }
 0x679   : > { %4009 = vst.msk [vmem:[%s8085_s30 + $0xc8] sm:$0xff] %vm3983_vm3, %v3790_v0 }
 0x67a   : > { %v3794_v63 = vpop.f32.mrb[212].mxu0 }
 0x67b   : > { %v3795_v49 = vadd.f32 %v8078_v2, %v3794_v63  ;;  %v3796_v22 = vpop.f32.mrb[213].mxu0 }
 0x67d   : > { %4010 = vst.msk [vmem:[%s8085_s30 + $0xd0] sm:$0xff] %vm3983_vm3, %v3795_v49 }
 0x67e   : > { %v3799_v1 = vpop.f32.mrb[214].mxu0 }
 0x67f   : > { %v3800_v58 = vadd.f32 %v8078_v2, %v3799_v1  ;;  %v3801_v4 = vpop.f32.mrb[215].mxu0 }
 0x681   : > { %4011 = vst.msk [vmem:[%s8085_s30 + $0xd8] sm:$0xff] %vm3983_vm3, %v3800_v58 }
 0x682   : > { %v3804_v51 = vpop.f32.mrb[216].mxu0 }
 0x683   : > { %v3805_v54 = vadd.f32 %v8078_v2, %v3804_v51  ;;  %v3806_v27 = vpop.f32.mrb[217].mxu0 }
 0x685   : > { %4012 = vst.msk [vmem:[%s8085_s30 + $0xe0] sm:$0xff] %vm3983_vm3, %v3805_v54 }
 0x686   : > { %v3809_v11 = vpop.f32.mrb[218].mxu0 }
 0x687   : > { %v3810_v45 = vadd.f32 %v8078_v2, %v3809_v11  ;;  %v3811_v62 = vpop.f32.mrb[219].mxu0 }
 0x689   : > { %4013 = vst.msk [vmem:[%s8085_s30 + $0xe8] sm:$0xff] %vm3983_vm3, %v3810_v45 }
 0x68a   : > { %v3814_v10 = vpop.f32.mrb[220].mxu0 }
 0x68b   : > { %v3815_v26 = vadd.f32 %v8078_v2, %v3814_v10  ;;  %v3816_v17 = vpop.f32.mrb[221].mxu0 }
 0x68d   : > { %4014 = vst.msk [vmem:[%s8085_s30 + $0xf0] sm:$0xff] %vm3983_vm3, %v3815_v26 }
 0x68e   : > { %v3819_v43 = vpop.f32.mrb[222].mxu0 }
 0x68f   : > { %v3820_v14 = vadd.f32 %v8078_v2, %v3819_v43  ;;  %v3821_v7 = vpop.f32.mrb[223].mxu0 }
 0x691   : > { %4015 = vst.msk [vmem:[%s8085_s30 + $0xf8] sm:$0xff] %vm3983_vm3, %v3820_v14 }
 0x692   : > { %v3824_v28 = vpop.f32.mrb[224].mxu0 }
 0x693   : > { %v3825_v18 = vadd.f32 %v8078_v2, %v3824_v28  ;;  %v3826_v37 = vpop.f32.mrb[225].mxu0 }
 0x695   : > { %4016 = vst.msk [vmem:[%s8085_s30 + $0x100] sm:$0xff] %vm3983_vm3, %v3825_v18 }
 0x696   : > { %v3829_v23 = vpop.f32.mrb[226].mxu0 }
 0x697   : > { %v3830_v57 = vadd.f32 %v8078_v2, %v3829_v23  ;;  %v3831_v19 = vpop.f32.mrb[227].mxu0 }
 0x699   : > { %4017 = vst.msk [vmem:[%s8085_s30 + $0x108] sm:$0xff] %vm3983_vm3, %v3830_v57 }
 0x69a   : > { %v3834_v50 = vpop.f32.mrb[228].mxu0 }
 0x69b   : > { %v3835_v20 = vadd.f32 %v8078_v2, %v3834_v50  ;;  %v3836_v25 = vpop.f32.mrb[229].mxu0 }
 0x69d   : > { %4018 = vst.msk [vmem:[%s8085_s30 + $0x110] sm:$0xff] %vm3983_vm3, %v3835_v20 }
 0x69e   : > { %v3839_v41 = vpop.f32.mrb[230].mxu0 }
 0x69f   : > { %v3840_v38 = vadd.f32 %v8078_v2, %v3839_v41  ;;  %v3841_v42 = vpop.f32.mrb[231].mxu0 }
 0x6a1   : > { %4019 = vst.msk [vmem:[%s8085_s30 + $0x118] sm:$0xff] %vm3983_vm3, %v3840_v38 }
 0x6a2   : > { %v3844_v24 = vpop.f32.mrb[232].mxu0 }
 0x6a3   : > { %v3845_v29 = vadd.f32 %v8078_v2, %v3844_v24  ;;  %v3846_v9 = vpop.f32.mrb[233].mxu0 }
 0x6a5   : > { %4020 = vst.msk [vmem:[%s8085_s30 + $0x120] sm:$0xff] %vm3983_vm3, %v3845_v29 }
 0x6a6   : > { %v3849_v8 = vpop.f32.mrb[234].mxu0 }
 0x6a7   : > { %v3850_v15 = vadd.f32 %v8078_v2, %v3849_v8  ;;  %v3851_v36 = vpop.f32.mrb[235].mxu0 }
 0x6a9   : > { %4021 = vst.msk [vmem:[%s8085_s30 + $0x128] sm:$0xff] %vm3983_vm3, %v3850_v15 }
 0x6aa   : > { %v3854_v47 = vpop.f32.mrb[236].mxu0 }
 0x6ab   : > { %v3855_v48 = vadd.f32 %v8078_v2, %v3854_v47  ;;  %v3856_v52 = vpop.f32.mrb[237].mxu0 }
 0x6ad   : > { %4022 = vst.msk [vmem:[%s8085_s30 + $0x130] sm:$0xff] %vm3983_vm3, %v3855_v48 }
 0x6ae   : > { %v3859_v5 = vpop.f32.mrb[238].mxu0 }
 0x6af   : > { %v3860_v39 = vadd.f32 %v8078_v2, %v3859_v5  ;;  %v3861_v16 = vpop.f32.mrb[239].mxu0 }
 0x6b1   : > { %4023 = vst.msk [vmem:[%s8085_s30 + $0x138] sm:$0xff] %vm3983_vm3, %v3860_v39 }
 0x6b2   : > { %v3864_v6 = vpop.f32.mrb[240].mxu0 }
 0x6b3   : > { %v3865_v32 = vadd.f32 %v8078_v2, %v3864_v6  ;;  %v3866_v35 = vpop.f32.mrb[241].mxu0 }
 0x6b5   : > { %4024 = vst.msk [vmem:[%s8085_s30 + $0x140] sm:$0xff] %vm3983_vm3, %v3865_v32 }
 0x6b6   : > { %v3869_v59 = vpop.f32.mrb[242].mxu0 }
 0x6b7   : > { %v3870_v56 = vadd.f32 %v8078_v2, %v3869_v59  ;;  %v3871_v60 = vpop.f32.mrb[243].mxu0 }
 0x6b9   : > { %4025 = vst.msk [vmem:[%s8085_s30 + $0x148] sm:$0xff] %vm3983_vm3, %v3870_v56 }
 0x6ba   : > { %v3874_v31 = vpop.f32.mrb[244].mxu0 }
 0x6bb   : > { %v3875_v13 = vadd.f32 %v8078_v2, %v3874_v31  ;;  %v3876_v33 = vpop.f32.mrb[245].mxu0 }
 0x6bd   : > { %4026 = vst.msk [vmem:[%s8085_s30 + $0x150] sm:$0xff] %vm3983_vm3, %v3875_v13 }
 0x6be   : > { %v3879_v30 = vpop.f32.mrb[246].mxu0 }
 0x6bf   : > { %v3880_v21 = vadd.f32 %v8078_v2, %v3879_v30  ;;  %v3881_v53 = vpop.f32.mrb[247].mxu0 }
 0x6c1   : > { %4027 = vst.msk [vmem:[%s8085_s30 + $0x158] sm:$0xff] %vm3983_vm3, %v3880_v21 }
 0x6c2   : > { %v3884_v46 = vpop.f32.mrb[248].mxu0 }
 0x6c3   : > { %v3885_v44 = vadd.f32 %v8078_v2, %v3884_v46  ;;  %v3886_v34 = vpop.f32.mrb[249].mxu0 }
 0x6c5   : > { %4028 = vst.msk [vmem:[%s8085_s30 + $0x160] sm:$0xff] %vm3983_vm3, %v3885_v44 }
 0x6c6   : > { %v3889_v3 = vpop.f32.mrb[250].mxu0 }
 0x6c7   : > { %v3890_v61 = vadd.f32 %v8078_v2, %v3889_v3  ;;  %v3891_v55 = vpop.f32.mrb[251].mxu0 }
 0x6c9   : > { %4029 = vst.msk [vmem:[%s8085_s30 + $0x168] sm:$0xff] %vm3983_vm3, %v3890_v61 }
 0x6ca   : > { %v3894_v40 = vpop.f32.mrb[252].mxu0 }
 0x6cb   : > { %v3895_v0 = vadd.f32 %v8078_v2, %v3894_v40  ;;  %v3896_v12 = vpop.f32.mrb[253].mxu0 }
 0x6cd   : > { %4030 = vst.msk [vmem:[%s8085_s30 + $0x170] sm:$0xff] %vm3983_vm3, %v3895_v0 }
 0x6ce   : > { %v3899_v63 = vpop.f32.mrb[254].mxu0 }
 0x6cf   : > { %v3900_v49 = vadd.f32 %v8078_v2, %v3899_v63  ;;  %v3901_v22 = vpop.f32.mrb[255].mxu0 }
 0x6d1   : > { %4031 = vst.msk [vmem:[%s8085_s30 + $0x178] sm:$0xff] %vm3983_vm3, %v3900_v49 }
 0x6d2   : > { %v3904_v1 = vpop.f32.mrb[0].mxu0 }
 0x6d3   : > { %v3905_v58 = vadd.f32 %v8078_v2, %v3904_v1  ;;  %v3906_v4 = vpop.f32.mrb[1].mxu0 }
 0x6d5   : > { %4032 = vst.msk [vmem:[%s8085_s30 + $0x180] sm:$0xff] %vm3983_vm3, %v3905_v58 }
 0x6d6   : > { %v3909_v51 = vpop.f32.mrb[2].mxu0 }
 0x6d7   : > { %v3910_v54 = vadd.f32 %v8078_v2, %v3909_v51  ;;  %v3911_v27 = vpop.f32.mrb[3].mxu0 }
 0x6d9   : > { %4033 = vst.msk [vmem:[%s8085_s30 + $0x188] sm:$0xff] %vm3983_vm3, %v3910_v54 }
 0x6da   : > { %v3914_v11 = vpop.f32.mrb[4].mxu0 }
 0x6db   : > { %v3915_v45 = vadd.f32 %v8078_v2, %v3914_v11  ;;  %v3916_v62 = vpop.f32.mrb[5].mxu0 }
 0x6dd   : > { %4034 = vst.msk [vmem:[%s8085_s30 + $0x190] sm:$0xff] %vm3983_vm3, %v3915_v45 }
 0x6de   : > { %v3919_v10 = vpop.f32.mrb[6].mxu0 }
 0x6df   : > { %v3920_v26 = vadd.f32 %v8078_v2, %v3919_v10  ;;  %v3921_v17 = vpop.f32.mrb[7].mxu0 }
 0x6e1   : > { %4035 = vst.msk [vmem:[%s8085_s30 + $0x198] sm:$0xff] %vm3983_vm3, %v3920_v26 }
 0x6e2   : > { %v3924_v43 = vpop.f32.mrb[8].mxu0 }
 0x6e3   : > { %v3925_v14 = vadd.f32 %v8078_v2, %v3924_v43  ;;  %v3926_v7 = vpop.f32.mrb[9].mxu0 }
 0x6e5   : > { %4036 = vst.msk [vmem:[%s8085_s30 + $0x1a0] sm:$0xff] %vm3983_vm3, %v3925_v14 }
 0x6e6   : > { %v3929_v28 = vpop.f32.mrb[10].mxu0 }
 0x6e7   : > { %v3930_v18 = vadd.f32 %v8078_v2, %v3929_v28  ;;  %v3931_v37 = vpop.f32.mrb[11].mxu0 }
 0x6e9   : > { %4037 = vst.msk [vmem:[%s8085_s30 + $0x1a8] sm:$0xff] %vm3983_vm3, %v3930_v18 }
 0x6ea   : > { %v3934_v23 = vpop.f32.mrb[12].mxu0 }
 0x6eb   : > { %v3935_v57 = vadd.f32 %v8078_v2, %v3934_v23  ;;  %v3936_v19 = vpop.f32.mrb[13].mxu0 }
 0x6ed   : > { %4038 = vst.msk [vmem:[%s8085_s30 + $0x1b0] sm:$0xff] %vm3983_vm3, %v3935_v57 }
 0x6ee   : > { %v3939_v50 = vpop.f32.mrb[14].mxu0 }
 0x6ef   : > { %v3940_v20 = vadd.f32 %v8078_v2, %v3939_v50  ;;  %v3941_v25 = vpop.f32.mrb[15].mxu0 }
 0x6f1   : > { %4039 = vst.msk [vmem:[%s8085_s30 + $0x1b8] sm:$0xff] %vm3983_vm3, %v3940_v20 }
 0x6f2   : > { %v3944_v41 = vpop.f32.mrb[16].mxu0 }
 0x6f3   : > { %v3945_v38 = vadd.f32 %v8078_v2, %v3944_v41  ;;  %v3946_v42 = vpop.f32.mrb[17].mxu0 }
 0x6f5   : > { %4040 = vst.msk [vmem:[%s8085_s30 + $0x1c0] sm:$0xff] %vm3983_vm3, %v3945_v38 }
 0x6f6   : > { %v3949_v24 = vpop.f32.mrb[18].mxu0 }
 0x6f7   : > { %v3950_v29 = vadd.f32 %v8078_v2, %v3949_v24  ;;  %v3951_v9 = vpop.f32.mrb[19].mxu0 }
 0x6f9   : > { %4041 = vst.msk [vmem:[%s8085_s30 + $0x1c8] sm:$0xff] %vm3983_vm3, %v3950_v29 }
 0x6fa   : > { %v3954_v8 = vpop.f32.mrb[20].mxu0 }
 0x6fb   : > { %v3955_v15 = vadd.f32 %v8078_v2, %v3954_v8  ;;  %v3956_v36 = vpop.f32.mrb[21].mxu0 }
 0x6fd   : > { %4042 = vst.msk [vmem:[%s8085_s30 + $0x1d0] sm:$0xff] %vm3983_vm3, %v3955_v15 }
 0x6fe   : > { %v3959_v47 = vpop.f32.mrb[22].mxu0 }
 0x6ff   : > { %v3960_v48 = vadd.f32 %v8078_v2, %v3959_v47  ;;  %v3961_v52 = vpop.f32.mrb[23].mxu0 }
 0x701   : > { %4043 = vst.msk [vmem:[%s8085_s30 + $0x1d8] sm:$0xff] %vm3983_vm3, %v3960_v48 }
 0x702   : > { %v3964_v5 = vpop.f32.mrb[24].mxu0 }
 0x703   : > { %v3965_v39 = vadd.f32 %v8078_v2, %v3964_v5  ;;  %v3966_v16 = vpop.f32.mrb[25].mxu0 }
 0x705   : > { %4044 = vst.msk [vmem:[%s8085_s30 + $0x1e0] sm:$0xff] %vm3983_vm3, %v3965_v39 }
 0x706   : > { %v3969_v6 = vpop.f32.mrb[26].mxu0 }
 0x707   : > { %v3970_v32 = vadd.f32 %v8078_v2, %v3969_v6  ;;  %v3971_v35 = vpop.f32.mrb[27].mxu0 }
 0x709   : > { %4045 = vst.msk [vmem:[%s8085_s30 + $0x1e8] sm:$0xff] %vm3983_vm3, %v3970_v32 }
 0x70a   : > { %v3974_v59 = vpop.f32.mrb[28].mxu0 }
 0x70b   : > { %v3975_v56 = vadd.f32 %v8078_v2, %v3974_v59  ;;  %v3976_v60 = vpop.f32.mrb[29].mxu0  ;;  %4054 = sbr.rel (!%p6307_p4) target bundleno = 1882 (0x75a), region = 60 }
 0x70d   : > { %4046 = vst.msk [vmem:[%s8085_s30 + $0x1f0] sm:$0xff] %vm3983_vm3, %v3975_v56 }
 0x70e   : > { %v3979_v31 = vpop.f32.mrb[30].mxu0 }
 0x70f   : > { %v3980_v13 = vadd.f32 %v8078_v2, %v3979_v31  ;;  %v3981_v33 = vpop.f32.mrb[31].mxu0 }
 0x711   : > { %4047 = vst.msk [vmem:[%s8085_s30 + $0x1f8] sm:$0xff] %vm3983_vm3, %v3980_v13 }
 0x712   : > { %s8800_s20 = smov (!%p4057_p8, %s4056_s20), 64 }
 0x713   : > { %s4725_s27 = sshll.u32 %s8800_s20, 7 }
 0x714   : > { %p4728_p9 = scmp.eq.s32.totalorder %s4725_s27, 0 }
 0x715   : > { %s8330_s28 = sshrl.u32 (!%p4728_p9), %s8800_s20, 6 }
 0x716   : > { %4065 = sbr.rel (%p4728_p9) target bundleno = 1882 (0x75a), region = 64  ;;  %p4729_p10 = scmp.le.s32.totalorder (!%p4728_p9), %s8330_s28, 0 }
 0x71d   : > { %4471 = sbr.rel (%p4729_p10) target bundleno = 1861 (0x745), region = 140  ;;  %s8791_s12 = smov (!%p4729_p10), %s8324_s26 }
 0x71e   : > { %s8792_s17 = smov (!%p4729_p10), %s8085_s30  ;;  %s8339_s24 = smov (!%p4729_p10), 0  }
 0x71f   : > { %s8341_s29 = smov (!%p4729_p10), 0  }
 0x724 LB: >> { %v4253_v2 = vld [vmem:[%s6204_s17] sm:$0xff]  ;;  %v4255_v30 = vld [vmem:[%s6204_s17 + $0x8] sm:$0xff]  ;;  %v4257_v21 = vld [vmem:[%s6204_s17 + $0x10] sm:$0xff]  ;;  %s4381_s11 = sadd.s32 1, %s6208_s24  ;;  %s4247_s29 = sadd.s32 1, %s6212_s29   ;;  %s6212_s29 = sphi %s8341_s29, %s4247_s29   ;;  %s6208_s24 = sphi %s8339_s24, %s8795_s24   ;;  %s6204_s17 = sphi %s8792_s17, %s8794_s17   ;;  %s6200_s12 = sphi %s8791_s12, %s8793_s12  }
 0x725   : >> { %4254 = vst [vmem:[%s6200_s12] sm:$0xff] %v4253_v2  ;;  %4256 = vst [vmem:[%s6200_s12 + $0x8] sm:$0xff] %v4255_v30  ;;  %v4259_v53 = vld [vmem:[%s6204_s17 + $0x18] sm:$0xff]  ;;  %v4261_v46 = vld [vmem:[%s6204_s17 + $0x20] sm:$0xff]  ;;  %p4382_p11 = scmp.ge.s32.totalorder %s4381_s11, %s8330_s28  ;;  %p4246_p12 = scmp.ge.s32.totalorder %s4247_s29, %s8330_s28 }
 0x726   : >> { %4258 = vst [vmem:[%s6200_s12 + $0x10] sm:$0xff] %v4257_v21  ;;  %v4263_v44 = vld [vmem:[%s6204_s17 + $0x28] sm:$0xff]  ;;  %4260 = vst [vmem:[%s6200_s12 + $0x18] sm:$0xff] %v4259_v53  ;;  %v4265_v34 = vld [vmem:[%s6204_s17 + $0x30] sm:$0xff] }
 0x727   : >> { %4262 = vst [vmem:[%s6200_s12 + $0x20] sm:$0xff] %v4261_v46  ;;  %4264 = vst [vmem:[%s6200_s12 + $0x28] sm:$0xff] %v4263_v44  ;;  %v4267_v3 = vld [vmem:[%s6204_s17 + $0x38] sm:$0xff]  ;;  %v4269_v61 = vld [vmem:[%s6204_s17 + $0x40] sm:$0xff]  ;;  %s8802_s11 = smov (%p4382_p11, %s4381_s11), 0 }
 0x728   : >> { %4266 = vst [vmem:[%s6200_s12 + $0x30] sm:$0xff] %v4265_v34  ;;  %4268 = vst [vmem:[%s6200_s12 + $0x38] sm:$0xff] %v4267_v3  ;;  %v4271_v55 = vld [vmem:[%s6204_s17 + $0x48] sm:$0xff]  ;;  %v4273_v40 = vld [vmem:[%s6204_s17 + $0x50] sm:$0xff]  ;;  %s4730_s14 = sshll.u32 %s8802_s11, 9  ;;  %s8795_s24 = smov %s8802_s11 }
 0x729   : >> { %4270 = vst [vmem:[%s6200_s12 + $0x40] sm:$0xff] %v4269_v61  ;;  %v4275_v0 = vld [vmem:[%s6204_s17 + $0x58] sm:$0xff]  ;;  %4272 = vst [vmem:[%s6200_s12 + $0x48] sm:$0xff] %v4271_v55  ;;  %v4277_v12 = vld [vmem:[%s6204_s17 + $0x60] sm:$0xff]  ;;  %s8397_s25 = scalar_lea.vmem %s8085_s30, %s4730_s14 [#allocation2]   ;;  %s8400_s15 = scalar_lea.vmem %s8324_s26, %s4730_s14  }
 0x72a   : >> { %4274 = vst [vmem:[%s6200_s12 + $0x50] sm:$0xff] %v4273_v40  ;;  %4276 = vst [vmem:[%s6200_s12 + $0x58] sm:$0xff] %v4275_v0  ;;  %v4279_v63 = vld [vmem:[%s6204_s17 + $0x68] sm:$0xff]  ;;  %v4281_v49 = vld [vmem:[%s6204_s17 + $0x70] sm:$0xff] }
 0x72b   : >> { %4278 = vst [vmem:[%s6200_s12 + $0x60] sm:$0xff] %v4277_v12  ;;  %4280 = vst [vmem:[%s6200_s12 + $0x68] sm:$0xff] %v4279_v63  ;;  %v4283_v22 = vld [vmem:[%s6204_s17 + $0x78] sm:$0xff]  ;;  %v4285_v1 = vld [vmem:[%s6204_s17 + $0x80] sm:$0xff] }
 0x72c   : >> { %4282 = vst [vmem:[%s6200_s12 + $0x70] sm:$0xff] %v4281_v49  ;;  %v4287_v58 = vld [vmem:[%s6204_s17 + $0x88] sm:$0xff]  ;;  %4284 = vst [vmem:[%s6200_s12 + $0x78] sm:$0xff] %v4283_v22  ;;  %v4289_v4 = vld [vmem:[%s6204_s17 + $0x90] sm:$0xff] }
 0x72d   : >> { %4286 = vst [vmem:[%s6200_s12 + $0x80] sm:$0xff] %v4285_v1  ;;  %4288 = vst [vmem:[%s6200_s12 + $0x88] sm:$0xff] %v4287_v58  ;;  %v4291_v51 = vld [vmem:[%s6204_s17 + $0x98] sm:$0xff]  ;;  %v4293_v54 = vld [vmem:[%s6204_s17 + $0xa0] sm:$0xff] }
 0x72e   : >> { %4290 = vst [vmem:[%s6200_s12 + $0x90] sm:$0xff] %v4289_v4  ;;  %4292 = vst [vmem:[%s6200_s12 + $0x98] sm:$0xff] %v4291_v51  ;;  %v4295_v27 = vld [vmem:[%s6204_s17 + $0xa8] sm:$0xff]  ;;  %v4297_v11 = vld [vmem:[%s6204_s17 + $0xb0] sm:$0xff] }
 0x72f   : >> { %4294 = vst [vmem:[%s6200_s12 + $0xa0] sm:$0xff] %v4293_v54  ;;  %v4299_v45 = vld [vmem:[%s6204_s17 + $0xb8] sm:$0xff]  ;;  %4296 = vst [vmem:[%s6200_s12 + $0xa8] sm:$0xff] %v4295_v27  ;;  %v4301_v62 = vld [vmem:[%s6204_s17 + $0xc0] sm:$0xff] }
 0x730   : >> { %4298 = vst [vmem:[%s6200_s12 + $0xb0] sm:$0xff] %v4297_v11  ;;  %4300 = vst [vmem:[%s6200_s12 + $0xb8] sm:$0xff] %v4299_v45  ;;  %v4303_v10 = vld [vmem:[%s6204_s17 + $0xc8] sm:$0xff]  ;;  %v4305_v26 = vld [vmem:[%s6204_s17 + $0xd0] sm:$0xff] }
 0x731   : >> { %4302 = vst [vmem:[%s6200_s12 + $0xc0] sm:$0xff] %v4301_v62  ;;  %4304 = vst [vmem:[%s6200_s12 + $0xc8] sm:$0xff] %v4303_v10  ;;  %v4307_v17 = vld [vmem:[%s6204_s17 + $0xd8] sm:$0xff]  ;;  %v4309_v43 = vld [vmem:[%s6204_s17 + $0xe0] sm:$0xff] }
 0x732   : >> { %4306 = vst [vmem:[%s6200_s12 + $0xd0] sm:$0xff] %v4305_v26  ;;  %v4311_v14 = vld [vmem:[%s6204_s17 + $0xe8] sm:$0xff]  ;;  %4308 = vst [vmem:[%s6200_s12 + $0xd8] sm:$0xff] %v4307_v17  ;;  %v4313_v7 = vld [vmem:[%s6204_s17 + $0xf0] sm:$0xff] }
 0x733   : >> { %4310 = vst [vmem:[%s6200_s12 + $0xe0] sm:$0xff] %v4309_v43  ;;  %4312 = vst [vmem:[%s6200_s12 + $0xe8] sm:$0xff] %v4311_v14  ;;  %v4315_v28 = vld [vmem:[%s6204_s17 + $0xf8] sm:$0xff]  ;;  %v4317_v18 = vld [vmem:[%s6204_s17 + $0x100] sm:$0xff] }
 0x734   : >> { %4314 = vst [vmem:[%s6200_s12 + $0xf0] sm:$0xff] %v4313_v7  ;;  %4316 = vst [vmem:[%s6200_s12 + $0xf8] sm:$0xff] %v4315_v28  ;;  %v4319_v37 = vld [vmem:[%s6204_s17 + $0x108] sm:$0xff]  ;;  %v4321_v23 = vld [vmem:[%s6204_s17 + $0x110] sm:$0xff] }
 0x735   : >> { %4318 = vst [vmem:[%s6200_s12 + $0x100] sm:$0xff] %v4317_v18  ;;  %v4323_v57 = vld [vmem:[%s6204_s17 + $0x118] sm:$0xff]  ;;  %4320 = vst [vmem:[%s6200_s12 + $0x108] sm:$0xff] %v4319_v37  ;;  %v4325_v19 = vld [vmem:[%s6204_s17 + $0x120] sm:$0xff] }
 0x736   : >> { %4322 = vst [vmem:[%s6200_s12 + $0x110] sm:$0xff] %v4321_v23  ;;  %4324 = vst [vmem:[%s6200_s12 + $0x118] sm:$0xff] %v4323_v57  ;;  %v4327_v50 = vld [vmem:[%s6204_s17 + $0x128] sm:$0xff]  ;;  %v4329_v20 = vld [vmem:[%s6204_s17 + $0x130] sm:$0xff] }
 0x737   : >> { %4326 = vst [vmem:[%s6200_s12 + $0x120] sm:$0xff] %v4325_v19  ;;  %4328 = vst [vmem:[%s6200_s12 + $0x128] sm:$0xff] %v4327_v50  ;;  %v4331_v25 = vld [vmem:[%s6204_s17 + $0x138] sm:$0xff]  ;;  %v4333_v41 = vld [vmem:[%s6204_s17 + $0x140] sm:$0xff] }
 0x738   : >> { %4330 = vst [vmem:[%s6200_s12 + $0x130] sm:$0xff] %v4329_v20  ;;  %v4335_v38 = vld [vmem:[%s6204_s17 + $0x148] sm:$0xff]  ;;  %4332 = vst [vmem:[%s6200_s12 + $0x138] sm:$0xff] %v4331_v25  ;;  %v4337_v42 = vld [vmem:[%s6204_s17 + $0x150] sm:$0xff] }
 0x739   : >> { %4334 = vst [vmem:[%s6200_s12 + $0x140] sm:$0xff] %v4333_v41  ;;  %4336 = vst [vmem:[%s6200_s12 + $0x148] sm:$0xff] %v4335_v38  ;;  %v4339_v24 = vld [vmem:[%s6204_s17 + $0x158] sm:$0xff]  ;;  %v4341_v29 = vld [vmem:[%s6204_s17 + $0x160] sm:$0xff] }
 0x73a   : >> { %4338 = vst [vmem:[%s6200_s12 + $0x150] sm:$0xff] %v4337_v42  ;;  %4340 = vst [vmem:[%s6200_s12 + $0x158] sm:$0xff] %v4339_v24  ;;  %v4343_v9 = vld [vmem:[%s6204_s17 + $0x168] sm:$0xff]  ;;  %v4345_v8 = vld [vmem:[%s6204_s17 + $0x170] sm:$0xff] }
 0x73b   : >> { %4342 = vst [vmem:[%s6200_s12 + $0x160] sm:$0xff] %v4341_v29  ;;  %v4347_v15 = vld [vmem:[%s6204_s17 + $0x178] sm:$0xff]  ;;  %4344 = vst [vmem:[%s6200_s12 + $0x168] sm:$0xff] %v4343_v9  ;;  %v4349_v36 = vld [vmem:[%s6204_s17 + $0x180] sm:$0xff] }
 0x73c   : >> { %4346 = vst [vmem:[%s6200_s12 + $0x170] sm:$0xff] %v4345_v8  ;;  %4348 = vst [vmem:[%s6200_s12 + $0x178] sm:$0xff] %v4347_v15  ;;  %v4351_v47 = vld [vmem:[%s6204_s17 + $0x188] sm:$0xff]  ;;  %v4353_v48 = vld [vmem:[%s6204_s17 + $0x190] sm:$0xff] }
 0x73d   : >> { %4350 = vst [vmem:[%s6200_s12 + $0x180] sm:$0xff] %v4349_v36  ;;  %4352 = vst [vmem:[%s6200_s12 + $0x188] sm:$0xff] %v4351_v47  ;;  %v4355_v52 = vld [vmem:[%s6204_s17 + $0x198] sm:$0xff]  ;;  %v4357_v5 = vld [vmem:[%s6204_s17 + $0x1a0] sm:$0xff] }
 0x73e   : >> { %4354 = vst [vmem:[%s6200_s12 + $0x190] sm:$0xff] %v4353_v48  ;;  %v4359_v39 = vld [vmem:[%s6204_s17 + $0x1a8] sm:$0xff]  ;;  %4356 = vst [vmem:[%s6200_s12 + $0x198] sm:$0xff] %v4355_v52  ;;  %v4361_v16 = vld [vmem:[%s6204_s17 + $0x1b0] sm:$0xff]  ;;  %4249 = sbr.rel (!%p4246_p12) target bundleno = 1828 (0x724), region = 146 }
 0x73f   : >> { %4358 = vst [vmem:[%s6200_s12 + $0x1a0] sm:$0xff] %v4357_v5  ;;  %4360 = vst [vmem:[%s6200_s12 + $0x1a8] sm:$0xff] %v4359_v39  ;;  %v4363_v6 = vld [vmem:[%s6204_s17 + $0x1b8] sm:$0xff]  ;;  %v4365_v32 = vld [vmem:[%s6204_s17 + $0x1c0] sm:$0xff] }
 0x740   : >> { %4362 = vst [vmem:[%s6200_s12 + $0x1b0] sm:$0xff] %v4361_v16  ;;  %4364 = vst [vmem:[%s6200_s12 + $0x1b8] sm:$0xff] %v4363_v6  ;;  %v4367_v35 = vld [vmem:[%s6204_s17 + $0x1c8] sm:$0xff]  ;;  %v4369_v59 = vld [vmem:[%s6204_s17 + $0x1d0] sm:$0xff] }
 0x741   : >> { %4366 = vst [vmem:[%s6200_s12 + $0x1c0] sm:$0xff] %v4365_v32  ;;  %v4371_v56 = vld [vmem:[%s6204_s17 + $0x1d8] sm:$0xff]  ;;  %4368 = vst [vmem:[%s6200_s12 + $0x1c8] sm:$0xff] %v4367_v35  ;;  %v4373_v60 = vld [vmem:[%s6204_s17 + $0x1e0] sm:$0xff] }
 0x742   : >> { %4370 = vst [vmem:[%s6200_s12 + $0x1d0] sm:$0xff] %v4369_v59  ;;  %4372 = vst [vmem:[%s6200_s12 + $0x1d8] sm:$0xff] %v4371_v56  ;;  %v4375_v31 = vld [vmem:[%s6204_s17 + $0x1e8] sm:$0xff]  ;;  %v4377_v13 = vld [vmem:[%s6204_s17 + $0x1f0] sm:$0xff] }
 0x743   : >> { %4374 = vst [vmem:[%s6200_s12 + $0x1e0] sm:$0xff] %v4373_v60  ;;  %4376 = vst [vmem:[%s6200_s12 + $0x1e8] sm:$0xff] %v4375_v31  ;;  %v4379_v33 = vld [vmem:[%s6204_s17 + $0x1f8] sm:$0xff]  ;;  %s8794_s17 = smov %s8397_s25 }
 0x744   : >> { %4378 = vst [vmem:[%s6200_s12 + $0x1f0] sm:$0xff] %v4377_v13  ;;  %4380 = vst [vmem:[%s6200_s12 + $0x1f8] sm:$0xff] %v4379_v33  ;;  %s8793_s12 = smov %s8400_s15 }
 0x745 PF: > { %s8505_s18 = sand.u32 63, %s8800_s20   ;;  %s4741_s19 = sshll.u32 %s8330_s28, 9 }
 0x746   : > { %s4392_s21 = scalar_lea.vmem %s8085_s30, %s4741_s19 [#allocation2]   ;;  %s4394_s22 = scalar_lea.vmem %s8324_s26, %s4741_s19  }
 0x747   : > { %p4735_p13 = scmp.le.s32.totalorder %s8505_s18, 0 }
 0x748   : > { %s6214_s23 = smov (!%p4735_p13), %s4394_s22   ;;  %s6218_s27 = smov (!%p4735_p13), %s4392_s21  }
 0x749   : > { %4485 = sbr.rel (%p4735_p13) target bundleno = 1882 (0x75a), region = 151  ;;  %s6222_s14 = smov (!%p4735_p13), 0  }
 0x74a   : > { %s6226_s11 = smov (!%p4735_p13), 0  }
 0x750 LB: >> { %v4404_v2 = vld [vmem:[%s6220_s27] sm:$0xff]  ;;  %s4406_s20 = sadd.s32 1, %s6224_s14  ;;  %s4398_s11 = sadd.s32 1, %s6228_s11   ;;  %s6228_s11 = sphi %s6226_s11, %s4398_s11   ;;  %s6224_s14 = sphi %s6222_s14, %s6223_s14   ;;  %s6220_s27 = sphi %s6218_s27, %s4411_s27   ;;  %s6216_s23 = sphi %s6214_s23, %s4412_s23  }
 0x751   : >> { %4405 = vst [vmem:[%s6216_s23] sm:$0xff] %v4404_v2  ;;  %p4407_p0 = scmp.ge.s32.totalorder %s4406_s20, %s8505_s18  ;;  %p4397_p1 = scmp.ge.s32.totalorder %s4398_s11, %s8505_s18 }
 0x753   : >> { %s8804_s20 = smov (%p4407_p0, %s4406_s20), 0  ;;  %4400 = sbr.rel (!%p4397_p1) target bundleno = 1872 (0x750), region = 157 }
 0x754   : >> { %s4736_s30 = sshll.u32 %s8804_s20, 3  ;;  %s6223_s14 = smov %s8804_s20  }
 0x755   : >> { %s4411_s27 = scalar_lea.vmem %s4392_s21, %s4736_s30 [#allocation2]   ;;  %s4412_s23 = scalar_lea.vmem %s4394_s22, %s4736_s30  }
 0x75a PF: > { %p16_p2 = scmp.ge.s32.totalorder %s6297_s13, 4   ;;  %s8796_s30 = smov %s6192_s10 }
 0x75b   : > { %s8797_s10 = smov %s6305_s16  ;;  %s8798_s11 = smov %s6297_s13 }
 0x75c   :  { %18 = sbr.rel (!%p16_p2) target bundleno = 2 (0x2), region = 168 }

</bundles_post_ra>
